<compile_context>
chip_gen: v7x
topology: tpu7x:2x2x1
jax: 0.10.0
libtpu: 0.0.40
codegen_flags: <defaults>
</compile_context>

<pallas_src>
import jax
import jax.numpy as jnp
from jax.experimental import pallas as pl
from jax.experimental.pallas import tpu as pltpu

WIDTH = 64


def enc3_kernel(n_ref,                              # scalar prefetch: [N] (SMEM)
                x_ref,                              # (3, TILE_N)  rows = [BB, V1, V2]
                w1_bb_ref, w1_v1_ref, b1_ref,       # (128, 1) f32 fused first layer
                w_mid_ref, b_mid_ref,               # (128, 128) mxu-dtype, (128, 1) f32
                w_out_ref, b_out_ref,               # (8, 128) mxu-dtype, (8, 1) f32
                pred_ref, sqerr_ref):               # (2, TILE_N), (1, 2, 128)
    tile_n = x_ref.shape[1]
    x = x_ref[...].astype(jnp.float32)              # (3, TILE_N)
    BB = x[0:1, :]                                  # (1, TILE_N)
    V1 = x[1:2, :]                                  # (1, TILE_N)
    tgt = x[1:3, :]                                 # (2, TILE_N) targets [V1, V2]

    mxu_dtype = w_mid_ref.dtype                     # bf16 (default) or f32

    # ---- layer 1 (both branches) on the VPU: rank-1 broadcast FMAs, f32.
    # sublanes 0..63 = branch1(BB), sublanes 64..127 = branch2([V1, BB]).
    h = w1_bb_ref[...] * BB + w1_v1_ref[...] * V1 + b1_ref[...]     # (128, TILE_N)
    h = jnp.maximum(h, 0.0).astype(mxu_dtype)

    # ---- layer 2 (both branches fused): block-diagonal 128x128 on the MXU, f32 acc.
    h2 = jnp.dot(w_mid_ref[...], h, preferred_element_type=jnp.float32) + b_mid_ref[...]
    h2 = jnp.maximum(h2, 0.0).astype(mxu_dtype)

    # ---- layer 3 (both heads fused): (8,128) @ (128,TILE_N); rows 2..7 are zero pad.
    y_full = jnp.dot(w_out_ref[...], h2,
                     preferred_element_type=jnp.float32) + b_out_ref[...]
    y = y_full[0:2, :]                              # (2, TILE_N)  rows: [v1_r, v2_r]

    # Lane-dense prediction store.
    pred_ref[...] = y.astype(pred_ref.dtype)

    # ---- per-tile masked sum of squared errors (f32); padded rows excluded.
    col = jax.lax.broadcasted_iota(jnp.int32, (2, tile_n), 1) + pl.program_id(0) * tile_n
    err2 = jnp.where(col < n_ref[0], (y - tgt) ** 2, 0.0)
    s = jnp.sum(err2, axis=1, keepdims=True)        # (2, 1): [sum1, sum2]
    sqerr_ref[0] = jnp.broadcast_to(s, (2, 128)).astype(sqerr_ref.dtype)


def _fuse_params(params, compute_dtype):
    """Build the fused, transposed weight tensors (done once, wrapper-side)."""
    W = WIDTH
    f32 = jnp.float32
    # Layer 1 columns (2W, 1): BB feeds branch1 and branch2's 2nd input; V1 feeds
    # branch2's 1st input.
    w1_bb = jnp.concatenate([params["w11"][0, :], params["w12"][1, :]])[:, None]
    w1_v1 = jnp.concatenate([jnp.zeros((W,), f32), params["w12"][0, :]])[:, None]
    b1 = jnp.concatenate([params["b11"][0, :], params["b12"][0, :]])[:, None]
    # Layer 2: block-diagonal, transposed (output units on sublanes): h2 = W_mid_T @ h.
    w_mid = jnp.zeros((2 * W, 2 * W), f32)
    w_mid = w_mid.at[:W, :W].set(params["w31"].T).at[W:, W:].set(params["w32"].T)
    b_mid = jnp.concatenate([params["b31"][0, :], params["b32"][0, :]])[:, None]
    # Layer 3: (8, 2W); row 0 = head1, row 1 = head2, rows 2..7 zero (sublane pad).
    w_out = jnp.zeros((8, 2 * W), f32)
    w_out = w_out.at[0, :W].set(params["w51"][:, 0]).at[1, W:].set(params["w52"][:, 0])
    b_out = jnp.zeros((8, 1), f32)
    b_out = b_out.at[0, 0].set(params["b51"][0, 0]).at[1, 0].set(params["b52"][0, 0])
    return (w1_bb, w1_v1, b1,
            w_mid.astype(compute_dtype), b_mid,
            w_out.astype(compute_dtype), b_out)


def enc3_forward(x, params, lambda_a, *, tile_n=4096, compute_dtype=jnp.bfloat16):
    """Enc_3 forward: returns (v1_r, v2_r, lambda_a*loss1 + loss2).

    compute_dtype=bf16 (default) uses bf16 MXU operands (f32 accumulation / loss math);
    expect ~1e-2-scale drift vs an f32 reference. Pass jnp.float32 for exact mode.
    """
    N = x.shape[0]
    xf = x.astype(jnp.float32)
    W = WIDTH

    w1_bb, w1_v1, b1, w_mid, b_mid, w_out, b_out = _fuse_params(params, compute_dtype)

    # ---- row tiling: lane-aligned (multiple of 128), >= 2 grid steps when possible.
    tile_n = max(128, (int(tile_n) // 128) * 128)
    n_up = ((N + 127) // 128) * 128
    if n_up >= 256 and tile_n > n_up // 2:
        tile_n = ((n_up // 2 + 127) // 128) * 128   # keep both v7x TCs busy
    tile_n = min(tile_n, n_up)
    n_pad = pl.cdiv(N, tile_n) * tile_n
    num_tiles = n_pad // tile_n

    # Lane-dense transposed input (3, n_pad); padded rows are masked in-kernel.
    x_t = jnp.transpose(xf)
    if n_pad != N:
        x_t = jnp.pad(x_t, ((0, 0), (0, n_pad - N)))

    n_arr = jnp.array([N], dtype=jnp.int32)

    def wspec(shape):
        return pl.BlockSpec(shape, lambda i, n: (0, 0))   # weights stay VMEM-resident

    grid_spec = pltpu.PrefetchScalarGridSpec(
        num_scalar_prefetch=1,
        grid=(num_tiles,),
        in_specs=[
            pl.BlockSpec((3, tile_n), lambda i, n: (0, i)),
            wspec((2 * W, 1)), wspec((2 * W, 1)), wspec((2 * W, 1)),
            wspec((2 * W, 2 * W)), wspec((2 * W, 1)),
            wspec((8, 2 * W)), wspec((8, 1)),
        ],
        out_specs=(
            pl.BlockSpec((2, tile_n), lambda i, n: (0, i)),
            pl.BlockSpec((1, 2, 128), lambda i, n: (i, 0, 0)),
        ),
    )

    pred_t, sq_part = pl.pallas_call(
        enc3_kernel,
        grid_spec=grid_spec,
        out_shape=(jax.ShapeDtypeStruct((2, n_pad), jnp.float32),
                   jax.ShapeDtypeStruct((num_tiles, 2, 128), jnp.float32)),
        compiler_params=pltpu.CompilerParams(
            dimension_semantics=("parallel",),
            vmem_limit_bytes=32 * 1024 * 1024,
        ),
    )(n_arr, x_t, w1_bb, w1_v1, b1, w_mid, b_mid, w_out, b_out)

    v1_r = pred_t[0, :N][:, None]
    v2_r = pred_t[1, :N][:, None]
    sums = jnp.sum(sq_part[:, :, 0], axis=0)        # (2,) tile-partial sums (padded rows
    loss1 = sums[0] / N                             #  already masked in-kernel)
    loss2 = sums[1] / N
    return v1_r, v2_r, lambda_a * loss1 + loss2


def init_params(key):
    """Deterministic synthetic weights. Layout: weight (in, out), bias (1, out)."""
    def linear(k, fan_in, fan_out):
        kw, kb = jax.random.split(k)
        scale = 1.0 / jnp.sqrt(jnp.float32(fan_in))
        w = jax.random.uniform(kw, (fan_in, fan_out), jnp.float32, -scale, scale)
        b = jax.random.uniform(kb, (1, fan_out), jnp.float32, -scale, scale)
        return w, b

    ks = jax.random.split(key, 6)
    p = {}
    p["w11"], p["b11"] = linear(ks[0], 1, WIDTH)
    p["w31"], p["b31"] = linear(ks[1], WIDTH, WIDTH)
    p["w51"], p["b51"] = linear(ks[2], WIDTH, 1)
    p["w12"], p["b12"] = linear(ks[3], 2, WIDTH)
    p["w32"], p["b32"] = linear(ks[4], WIDTH, WIDTH)
    p["w52"], p["b52"] = linear(ks[5], WIDTH, 1)
    return p


def enc3_reference(x, params, lambda_a):
    """Pure-JAX reference mirroring the PyTorch forward."""
    BB, V1, V2 = x[:, 0:1], x[:, 1:2], x[:, 2:3]
    h = jax.nn.relu(BB @ params["w11"] + params["b11"])
    h = jax.nn.relu(h @ params["w31"] + params["b31"])
    v1_r = h @ params["w51"] + params["b51"]
    loss1 = jnp.mean((v1_r - V1) ** 2)
    inp2 = jnp.concatenate([V1, BB], axis=1)
    h2 = jax.nn.relu(inp2 @ params["w12"] + params["b12"])
    h2 = jax.nn.relu(h2 @ params["w32"] + params["b32"])
    v2_r = h2 @ params["w52"] + params["b52"]
    loss2 = jnp.mean((v2_r - V2) ** 2)
    return v1_r, v2_r, lambda_a * loss1 + loss2


if __name__ == "__main__":
    key = jax.random.PRNGKey(0)
    k_x, k_p = jax.random.split(key)

    # N not a multiple of the tile so the grid, padding and in-kernel masking are
    # all exercised (tile clips to 1280 -> grid=(2,), 60 padded rows in the last tile).
    N = 2500
    lambda_a = 0.5
    x = jax.random.normal(k_x, (N, 3), dtype=jnp.float32)
    params = init_params(k_p)

    v1_ref, v2_ref, loss_ref = enc3_reference(x, params, lambda_a)

    # f32 MXU-operand path (tight check vs reference).
    v1_r, v2_r, loss = enc3_forward(x, params, lambda_a, compute_dtype=jnp.float32)
    jax.block_until_ready((v1_r, v2_r, loss))
    assert v1_r.shape == (N, 1) and v2_r.shape == (N, 1)
    assert jnp.allclose(v1_r, v1_ref, atol=1e-3), "v1_r mismatch (f32)"
    assert jnp.allclose(v2_r, v2_ref, atol=1e-3), "v2_r mismatch (f32)"
    assert jnp.allclose(loss, loss_ref, rtol=1e-3, atol=1e-3), "loss mismatch (f32)"

    # Default path: bf16 MXU operands (loose check due to bf16 rounding drift).
    v1_b, v2_b, loss_b = enc3_forward(x, params, lambda_a)
    jax.block_until_ready((v1_b, v2_b, loss_b))
    assert v1_b.shape == (N, 1) and v2_b.shape == (N, 1)
    assert jnp.mean(jnp.abs(v1_b - v1_ref)) < 5e-2, "bf16 v1_r drift"
    assert jnp.mean(jnp.abs(v2_b - v2_ref)) < 5e-2, "bf16 v2_r drift"
    assert bool(jnp.isfinite(loss_b)), "bf16 loss not finite"

    print("KERNEL_OK")
</pallas_src>

<mosaic_0001>
module attributes {stable_mosaic.version = 11 : i64} {
  func.func @enc3_kernel(%arg0: i32, %arg1: memref<1xi32, #tpu.memory_space<smem>>, %arg2: memref<3x1280xf32, #tpu.memory_space<vmem>>, %arg3: memref<128x1xf32, #tpu.memory_space<vmem>>, %arg4: memref<128x1xf32, #tpu.memory_space<vmem>>, %arg5: memref<128x1xf32, #tpu.memory_space<vmem>>, %arg6: memref<128x128xf32, #tpu.memory_space<vmem>>, %arg7: memref<128x1xf32, #tpu.memory_space<vmem>>, %arg8: memref<8x128xf32, #tpu.memory_space<vmem>>, %arg9: memref<8x1xf32, #tpu.memory_space<vmem>>, %arg10: memref<2x1280xf32, #tpu.memory_space<vmem>>, %arg11: memref<1x2x128xf32, #tpu.memory_space<vmem>>) attributes {dimension_semantics = [#tpu.dimension_semantics<parallel>], iteration_bounds = array<i64: 2>, scalar_prefetch = 1 : i64, scratch_operands = 0 : i64, tpu.core_type = #tpu.core_type<tc>, window_params = [{transform_indices = @transform_0, window_bounds = array<i64: 3, 1280>}, {pipeline_mode = #tpu.pipeline_mode<synchronous>, transform_indices = @transform_1, window_bounds = array<i64: 128, 1>}, {pipeline_mode = #tpu.pipeline_mode<synchronous>, transform_indices = @transform_2, window_bounds = array<i64: 128, 1>}, {pipeline_mode = #tpu.pipeline_mode<synchronous>, transform_indices = @transform_3, window_bounds = array<i64: 128, 1>}, {pipeline_mode = #tpu.pipeline_mode<synchronous>, transform_indices = @transform_4, window_bounds = array<i64: 128, 128>}, {pipeline_mode = #tpu.pipeline_mode<synchronous>, transform_indices = @transform_5, window_bounds = array<i64: 128, 1>}, {pipeline_mode = #tpu.pipeline_mode<synchronous>, transform_indices = @transform_6, window_bounds = array<i64: 8, 128>}, {pipeline_mode = #tpu.pipeline_mode<synchronous>, transform_indices = @transform_7, window_bounds = array<i64: 8, 1>}, {transform_indices = @transform_8, window_bounds = array<i64: 2, 1280>}, {transform_indices = @transform_9, window_bounds = array<i64: 1, 2, 128>}]} {
    %c0 = arith.constant 0 : index
    %c0_0 = arith.constant 0 : index
    %0 = vector.load %arg2[%c0, %c0_0] : memref<3x1280xf32, #tpu.memory_space<vmem>>, vector<3x1280xf32>
    %1 = vector.extract_strided_slice %0 {offsets = [0, 0], sizes = [1, 1280], strides = [1, 1]} : vector<3x1280xf32> to vector<1x1280xf32>
    %2 = vector.extract_strided_slice %0 {offsets = [1, 0], sizes = [1, 1280], strides = [1, 1]} : vector<3x1280xf32> to vector<1x1280xf32>
    %3 = vector.extract_strided_slice %0 {offsets = [1, 0], sizes = [2, 1280], strides = [1, 1]} : vector<3x1280xf32> to vector<2x1280xf32>
    %c0_1 = arith.constant 0 : index
    %c0_2 = arith.constant 0 : index
    %4 = vector.load %arg3[%c0_1, %c0_2] : memref<128x1xf32, #tpu.memory_space<vmem>>, vector<128x1xf32>
    %5 = vector.broadcast %4 : vector<128x1xf32> to vector<128x1280xf32>
    %6 = vector.broadcast %1 : vector<1x1280xf32> to vector<128x1280xf32>
    %7 = arith.mulf %5, %6 : vector<128x1280xf32>
    %c0_3 = arith.constant 0 : index
    %c0_4 = arith.constant 0 : index
    %8 = vector.load %arg4[%c0_3, %c0_4] : memref<128x1xf32, #tpu.memory_space<vmem>>, vector<128x1xf32>
    %9 = vector.broadcast %8 : vector<128x1xf32> to vector<128x1280xf32>
    %10 = vector.broadcast %2 : vector<1x1280xf32> to vector<128x1280xf32>
    %11 = arith.mulf %9, %10 : vector<128x1280xf32>
    %12 = arith.addf %7, %11 : vector<128x1280xf32>
    %c0_5 = arith.constant 0 : index
    %c0_6 = arith.constant 0 : index
    %13 = vector.load %arg5[%c0_5, %c0_6] : memref<128x1xf32, #tpu.memory_space<vmem>>, vector<128x1xf32>
    %14 = vector.broadcast %13 : vector<128x1xf32> to vector<128x1280xf32>
    %15 = arith.addf %12, %14 : vector<128x1280xf32>
    %cst = arith.constant 0.000000e+00 : f32
    %16 = vector.broadcast %cst : f32 to vector<128x1280xf32>
    %17 = arith.maximumf %15, %16 : vector<128x1280xf32>
    %c0_7 = arith.constant 0 : index
    %c0_8 = arith.constant 0 : index
    %18 = vector.load %arg6[%c0_7, %c0_8] : memref<128x128xf32, #tpu.memory_space<vmem>>, vector<128x128xf32>
    %cst_9 = arith.constant dense<0.000000e+00> : vector<128x1280xf32>
    %19 = tpu.matmul %18, %17, %cst_9 {dimension_numbers = #tpu.dot_dimension_numbers<[1], [0], [0], [1], [0, 0, 1, 1], [], []>} : vector<128x128xf32>, vector<128x1280xf32>, vector<128x1280xf32> -> vector<128x1280xf32>
    %c0_10 = arith.constant 0 : index
    %c0_11 = arith.constant 0 : index
    %20 = vector.load %arg7[%c0_10, %c0_11] : memref<128x1xf32, #tpu.memory_space<vmem>>, vector<128x1xf32>
    %21 = vector.broadcast %20 : vector<128x1xf32> to vector<128x1280xf32>
    %22 = arith.addf %19, %21 : vector<128x1280xf32>
    %cst_12 = arith.constant 0.000000e+00 : f32
    %23 = vector.broadcast %cst_12 : f32 to vector<128x1280xf32>
    %24 = arith.maximumf %22, %23 : vector<128x1280xf32>
    %c0_13 = arith.constant 0 : index
    %c0_14 = arith.constant 0 : index
    %25 = vector.load %arg8[%c0_13, %c0_14] : memref<8x128xf32, #tpu.memory_space<vmem>>, vector<8x128xf32>
    %cst_15 = arith.constant dense<0.000000e+00> : vector<8x1280xf32>
    %26 = tpu.matmul %25, %24, %cst_15 {dimension_numbers = #tpu.dot_dimension_numbers<[1], [0], [0], [1], [0, 0, 1, 1], [], []>} : vector<8x128xf32>, vector<128x1280xf32>, vector<8x1280xf32> -> vector<8x1280xf32>
    %c0_16 = arith.constant 0 : index
    %c0_17 = arith.constant 0 : index
    %27 = vector.load %arg9[%c0_16, %c0_17] : memref<8x1xf32, #tpu.memory_space<vmem>>, vector<8x1xf32>
    %28 = vector.broadcast %27 : vector<8x1xf32> to vector<8x1280xf32>
    %29 = arith.addf %26, %28 : vector<8x1280xf32>
    %30 = vector.extract_strided_slice %29 {offsets = [0, 0], sizes = [2, 1280], strides = [1, 1]} : vector<8x1280xf32> to vector<2x1280xf32>
    %c0_18 = arith.constant 0 : index
    %c0_19 = arith.constant 0 : index
    %31 = vector.load %arg10[%c0_18, %c0_19] : memref<2x1280xf32, #tpu.memory_space<vmem>>, vector<2x1280xf32>
    tpu.vector_store %arg10[%c0_18, %c0_19], %30 {strides = array<i32>} : memref<2x1280xf32, #tpu.memory_space<vmem>>, vector<2x1280xf32>,
    %32 = tpu.iota {dimensions = array<i32: 1>} : vector<2x1280xi32>
    %c1280_i32 = arith.constant 1280 : i32
    %33 = arith.muli %arg0, %c1280_i32 : i32
    %34 = vector.broadcast %33 : i32 to vector<2x1280xi32>
    %35 = arith.addi %32, %34 : vector<2x1280xi32>
    %c0_20 = arith.constant 0 : index
    %36 = memref.load %arg1[%c0_20] : memref<1xi32, #tpu.memory_space<smem>>
    %37 = vector.broadcast %36 : i32 to vector<2x1280xi32>
    %38 = arith.cmpi slt, %35, %37 : vector<2x1280xi32>
    %39 = arith.subf %30, %3 : vector<2x1280xf32>
    %40 = arith.mulf %39, %39 : vector<2x1280xf32>
    %cst_21 = arith.constant 0.000000e+00 : f32
    %41 = vector.broadcast %cst_21 : f32 to vector<2x1280xf32>
    %42 = arith.select %38, %40, %41 : vector<2x1280xi1>, vector<2x1280xf32>
    %cst_22 = arith.constant dense<0.000000e+00> : vector<2xf32>
    %43 = vector.multi_reduction <add>, %42, %cst_22 [1] : vector<2x1280xf32> to vector<2xf32>
    %44 = vector.shape_cast %43 : vector<2xf32> to vector<2x1xf32>
    %45 = vector.shape_cast %44 : vector<2x1xf32> to vector<2x1xf32>
    %46 = vector.broadcast %45 : vector<2x1xf32> to vector<2x128xf32>
    %c0_23 = arith.constant 0 : index
    %c0_24 = arith.constant 0 : index
    %c0_25 = arith.constant 0 : index
    %47 = vector.load %arg11[%c0_23, %c0_24, %c0_25] : memref<1x2x128xf32, #tpu.memory_space<vmem>>, vector<1x2x128xf32>
    %48 = vector.shape_cast %47 : vector<1x2x128xf32> to vector<2x128xf32>
    %49 = vector.shape_cast %46 : vector<2x128xf32> to vector<1x2x128xf32>
    tpu.vector_store %arg11[%c0_23, %c0_24, %c0_25], %49 {strides = array<i32>} : memref<1x2x128xf32, #tpu.memory_space<vmem>>, vector<1x2x128xf32>,
    return
  }
  func.func @transform_0(%arg0: i32, %arg1: memref<1xi32, #tpu.memory_space<smem>>) -> (i32, i32) {
    %c0_i32 = arith.constant 0 : i32
    %c0_i32_0 = arith.constant 0 : i32
    return %c0_i32, %arg0 : i32, i32
  }
  func.func @transform_1(%arg0: i32, %arg1: memref<1xi32, #tpu.memory_space<smem>>) -> (i32, i32) {
    %c0_i32 = arith.constant 0 : i32
    %c0_i32_0 = arith.constant 0 : i32
    %c0_i32_1 = arith.constant 0 : i32
    return %c0_i32, %c0_i32_0 : i32, i32
  }
  func.func @transform_2(%arg0: i32, %arg1: memref<1xi32, #tpu.memory_space<smem>>) -> (i32, i32) {
    %c0_i32 = arith.constant 0 : i32
    %c0_i32_0 = arith.constant 0 : i32
    %c0_i32_1 = arith.constant 0 : i32
    return %c0_i32, %c0_i32_0 : i32, i32
  }
  func.func @transform_3(%arg0: i32, %arg1: memref<1xi32, #tpu.memory_space<smem>>) -> (i32, i32) {
    %c0_i32 = arith.constant 0 : i32
    %c0_i32_0 = arith.constant 0 : i32
    %c0_i32_1 = arith.constant 0 : i32
    return %c0_i32, %c0_i32_0 : i32, i32
  }
  func.func @transform_4(%arg0: i32, %arg1: memref<1xi32, #tpu.memory_space<smem>>) -> (i32, i32) {
    %c0_i32 = arith.constant 0 : i32
    %c0_i32_0 = arith.constant 0 : i32
    %c0_i32_1 = arith.constant 0 : i32
    return %c0_i32, %c0_i32_0 : i32, i32
  }
  func.func @transform_5(%arg0: i32, %arg1: memref<1xi32, #tpu.memory_space<smem>>) -> (i32, i32) {
    %c0_i32 = arith.constant 0 : i32
    %c0_i32_0 = arith.constant 0 : i32
    %c0_i32_1 = arith.constant 0 : i32
    return %c0_i32, %c0_i32_0 : i32, i32
  }
  func.func @transform_6(%arg0: i32, %arg1: memref<1xi32, #tpu.memory_space<smem>>) -> (i32, i32) {
    %c0_i32 = arith.constant 0 : i32
    %c0_i32_0 = arith.constant 0 : i32
    %c0_i32_1 = arith.constant 0 : i32
    return %c0_i32, %c0_i32_0 : i32, i32
  }
  func.func @transform_7(%arg0: i32, %arg1: memref<1xi32, #tpu.memory_space<smem>>) -> (i32, i32) {
    %c0_i32 = arith.constant 0 : i32
    %c0_i32_0 = arith.constant 0 : i32
    %c0_i32_1 = arith.constant 0 : i32
    return %c0_i32, %c0_i32_0 : i32, i32
  }
  func.func @transform_8(%arg0: i32, %arg1: memref<1xi32, #tpu.memory_space<smem>>) -> (i32, i32) {
    %c0_i32 = arith.constant 0 : i32
    %c0_i32_0 = arith.constant 0 : i32
    return %c0_i32, %arg0 : i32, i32
  }
  func.func @transform_9(%arg0: i32, %arg1: memref<1xi32, #tpu.memory_space<smem>>) -> (i32, i32, i32) {
    %c0_i32 = arith.constant 0 : i32
    %c0_i32_0 = arith.constant 0 : i32
    %c0_i32_1 = arith.constant 0 : i32
    return %arg0, %c0_i32, %c0_i32_0 : i32, i32, i32
  }
}

</mosaic_0001>

<bundles_post_ra>
// kernel: tpu_custom_call.1
= control target key start
LH: loop header
LB: loop body
LE: loop exit
PB: predicated region body
PF: predicated region fallthrough
CT: control target
= control target key end

     0   :  { %s6042_s0 = inlined_call_operand.<no memory space> [shape: s32[1], index: 0, kind: input, shape index: {}]   ;;  %s6043_s1 = inlined_call_operand.vmem [shape: f32[3,2560], index: 1, kind: input, shape index: {}]   ;;  %s6044_s2 = inlined_call_operand.vmem [shape: f32[128,1], index: 2, kind: input, shape index: {}]   ;;  %s6045_s3 = inlined_call_operand.vmem [shape: f32[128,1], index: 3, kind: input, shape index: {}]   ;;  %s6046_s4 = inlined_call_operand.vmem [shape: f32[128,1], index: 4, kind: input, shape index: {}]   ;;  %s6047_s5 = inlined_call_operand.vmem [shape: f32[128,128], index: 5, kind: input, shape index: {}]   ;;  %s6048_s6 = inlined_call_operand.vmem [shape: f32[128,1], index: 6, kind: input, shape index: {}]   ;;  %s6049_s7 = inlined_call_operand.vmem [shape: f32[8,128], index: 7, kind: input, shape index: {}]   ;;  %s6050_s8 = inlined_call_operand.vmem [shape: f32[8,1], index: 8, kind: input, shape index: {}]   ;;  %s6051_s9 = inlined_call_operand.hbm [shape: f32[2,2560], index: 9, kind: output, shape index: {0}]   ;;  %s6052_s10 = inlined_call_operand.hbm [shape: f32[2,2,128], index: 10, kind: output, shape index: {1}]  }
   0x1   :  { %6167 = sst [smem:[#allocation50_spill]] %s6043_s1 }
   0x2   :  { %16 = sst [smem:[#allocation3]] %s6042_s0 }
   0x3   :  { %17 = vsyncpa [#allocation5], 0 }
   0x4   :  { %19 = vsyncpa [#allocation5 + $0x1], 0 }
   0x5   :  { %20 = vsyncpa [#allocation7], 0 }
   0x6   :  { %22 = vsyncpa [#allocation7 + $0x1], 0  ;;  %s3920_s15 = smov 0   ;;  %s3922_s16 = smov 0  }
   0x7   :  { %s3924_s17 = smov 0   ;;  %s3926_s18 = smov 0  }
   0x8 LB: > { %s3941_s0 = sadd.s32 4294967295, %s3855_s18   ;;  %s3359_s19 = sadd.s32 4294967294, %s3855_s18   ;;  %s3855_s18 = sphi %s3926_s18, %s6293_s18   ;;  %s3851_s17 = sphi %s3924_s17, %s6292_s17   ;;  %s3847_s16 = sphi %s3922_s16, %s6291_s16   ;;  %s3843_s15 = sphi %s3920_s15, %s6290_s15  }
   0x9   : > { %s3945_s20 = sadd.s32 1, %s3855_s18   ;;  %s208_s21 = sadd.s32 1, %s3851_s17 }
   0xa   : > { %s205_s22 = ssub.s32 %s3855_s18, %s3945_s20  ;;  %p218_p0 = scmp.ne.s32.totalorder %s3851_s17, %s3847_s16 }
   0xb   : > { %p206_p1 = scmp.eq.s32.totalorder %s205_s22, 0  ;;  %p219_p2 = scmp.eq.s32.totalorder %s3941_s0, 1 }
   0xc   : > { %p224_p3 = scmp.ne.s32.totalorder %s3847_s16, %s3843_s15  ;;  %p225_p4 = scmp.eq.s32.totalorder %s3359_s19, 1 }
   0xd   : > { %s3956_s23 = scalar_select %p206_p1, %s3851_s17, %s208_s21  }
   0xe   : > { %p3958_p5 = por %p219_p2, %p218_p0  ;;  %p3962_p6 = por %p225_p4, %p224_p3 }
   0xf   : > { %p3362_p7 = scmp.ge.s32.totalorder %s3855_s18, 1  ;;  %p299_p8 = scmp.lt.s32.totalorder %s3855_s18, 3 }
  0x11   : > { %p300_p9 = pnand %p3362_p7, %p299_p8 }
  0x13   : > { %303 = sbr.rel (%p300_p9) target bundleno = 1075 (0x433), region = 52 }
  0x1a   : > { %v703_v0 = vld [vmem:[%s6045_s3] sm:$0xff]  ;;  %v3857_v2 = vmov 0   ;;  %v704_v3 = vld [vmem:[%s6045_s3 + $0x8] sm:$0xff]  ;;  %v355_v5 = vld [vmem:[%s6044_s2 + $0x18] sm:$0xff]  ;;  %s340_s30 = smul.u32 10, %s3941_s0  ;;  %v6054_v55 = vmov 0.0   ;;  %v6053_v58 = vlaneseq }
  0x1b   : > { %v352_v1 = vld [vmem:[%s6044_s2] sm:$0xff]  ;;  %3741 = vset.pattern.permute.xlu1 %v3857_v2  ;;  %3740 = vset.pattern.permute.xlu0 %v3857_v2  ;;  %v353_v4 = vld [vmem:[%s6044_s2 + $0x8] sm:$0xff]  ;;  %v354_v6 = vld [vmem:[%s6044_s2 + $0x10] sm:$0xff]  ;;  %s6171_s1 = sld [smem:[#allocation50_spill]]  ;;  %vm3212_vm1 = vcmask 1041408   ;;  %s5920_s29 = sand.u32 1, %s3847_s16  }
  0x1c   : > { %721 = vperm.xlu1 %3741, %v703_v0   ;;  %370 = vperm.xlu0 %3740, %v352_v1   ;;  %v706_v7 = vld [vmem:[%s6045_s3 + $0x18] sm:$0xff]  ;;  %v705_v8 = vld [vmem:[%s6045_s3 + $0x10] sm:$0xff]  ;;  %v1210_v9 = vld [vmem:[%s6046_s4 + $0x8] sm:$0xff]  ;;  %p341_p10 = scmp.lt.s32.totalorder %s340_s30, 19  ;;  %v4146_v61 = vshrl.u32 %v6053_v58, 7  ;;  %s3145_s28 = sld [smem:[#allocation3]] }
  0x1d   : > { %v1209_v10 = vld [vmem:[%s6046_s4] sm:$0xff]  ;;  %v357_v11 = vld [vmem:[%s6044_s2 + $0x28] sm:$0xff]  ;;  %v1212_v15 = vld [vmem:[%s6046_s4 + $0x18] sm:$0xff]  ;;  %1801 = vmatprep.mubr.f32.mxu0 %v6054_v55  ;;  %1962 = vmatprep.mubr.f32.mxu1 %v6054_v55  ;;  %s3692_s11 = smul.u32 20, %s5920_s29  ;;  %s3236_s22 = scalar_lea.sflag [#allocation5], %s5920_s29 }
  0x1e   : > { %v356_v12 = vld [vmem:[%s6044_s2 + $0x20] sm:$0xff]  ;;  %v708_v13 = vld [vmem:[%s6045_s3 + $0x28] sm:$0xff]  ;;  %v1211_v16 = vld [vmem:[%s6046_s4 + $0x10] sm:$0xff]  ;;  %s6295_s30 = smov (!%p341_p10, %s340_s30), 19  ;;  %6170 = vst [vmem:[#allocation10_spill] sm:$0xff] %v4146_v61  ;;  %v459_v0 = vsub.s32 4, %v4146_v61 }
  0x1f   : > { %v707_v14 = vld [vmem:[%s6045_s3 + $0x20] sm:$0xff]  ;;  %v359_v17 = vld [vmem:[%s6044_s2 + $0x38] sm:$0xff]  ;;  %v358_v18 = vld [vmem:[%s6044_s2 + $0x30] sm:$0xff]  ;;  %s3364_s12 = sshll.u32 %s6295_s30, 2  ;;  %v4161_v1 = vsub.s32 5, %v4146_v61  ;;  %s3133_s30 = smul.u32 1280, %s3941_s0 }
  0x20   : > { %726 = vperm.xlu1 %3741, %v704_v3   ;;  %375 = vperm.xlu0 %3740, %v353_v4   ;;  %v710_v19 = vld [vmem:[%s6045_s3 + $0x38] sm:$0xff]  ;;  %v709_v20 = vld [vmem:[%s6045_s3 + $0x30] sm:$0xff]  ;;  %v1214_v21 = vld [vmem:[%s6046_s4 + $0x28] sm:$0xff]  ;;  %v4165_v3 = vsub.s32 0, %v4146_v61  ;;  %v4168_v4 = vsub.s32 1, %v4146_v61 }
  0x21   : > { %v1213_v22 = vld [vmem:[%s6046_s4 + $0x20] sm:$0xff]  ;;  %v361_v23 = vld [vmem:[%s6044_s2 + $0x48] sm:$0xff]  ;;  %v1216_v27 = vld [vmem:[%s6046_s4 + $0x38] sm:$0xff]  ;;  %s4151_s27 = scalar_lea.vmem %s6171_s1, %s3364_s12  ;;  %6172 = vst [vmem:[#allocation11_spill] sm:$0xff] %v4161_v1  ;;  %s5931_s12 = scalar_lea.vmem [#allocation4], %s3692_s11 }
  0x22   : > { %v360_v24 = vld [vmem:[%s6044_s2 + $0x40] sm:$0xff]  ;;  %v712_v25 = vld [vmem:[%s6045_s3 + $0x48] sm:$0xff]  ;;  %v1215_v28 = vld [vmem:[%s6046_s4 + $0x30] sm:$0xff]  ;;  %6173 = vst [vmem:[#allocation12_spill] sm:$0xff] %v4165_v3  ;;  %s3255_s13 = sshll.u32 %s5931_s12, 4  ;;  %s3256_s13 = int_to_ptr.vmem [resolvable:$true] %s3255_s13 }
  0x23   : > { %v711_v26 = vld [vmem:[%s6045_s3 + $0x40] sm:$0xff]  ;;  %v363_v29 = vld [vmem:[%s6044_s2 + $0x58] sm:$0xff]  ;;  %v362_v30 = vld [vmem:[%s6044_s2 + $0x50] sm:$0xff]  ;;  %6174 = vst [vmem:[#allocation13_spill] sm:$0xff] %v4168_v4  ;;  %s3761_s26 = scalar_lea.vmem %s3256_s13, 320 }
  0x24   : > { %385 = vperm.xlu1 %3741, %v355_v5   ;;  %380 = vperm.xlu0 %3740, %v354_v6   ;;  %v714_v31 = vld [vmem:[%s6045_s3 + $0x58] sm:$0xff]  ;;  %v713_v32 = vld [vmem:[%s6045_s3 + $0x50] sm:$0xff]  ;;  %v1218_v33 = vld [vmem:[%s6046_s4 + $0x48] sm:$0xff]  ;;  %p3762_p11 = scmp.ne.s32.totalorder %s3256_s13, %s3761_s26 }
  0x25   : > { %v1217_v34 = vld [vmem:[%s6046_s4 + $0x40] sm:$0xff]  ;;  %v365_v35 = vld [vmem:[%s6044_s2 + $0x68] sm:$0xff]  ;;  %v1220_v39 = vld [vmem:[%s6046_s4 + $0x58] sm:$0xff] }
  0x26   : > { %v364_v36 = vld [vmem:[%s6044_s2 + $0x60] sm:$0xff]  ;;  %v716_v37 = vld [vmem:[%s6045_s3 + $0x68] sm:$0xff]  ;;  %v1219_v40 = vld [vmem:[%s6046_s4 + $0x50] sm:$0xff]  ;;  %p3763_p12 = pnand %p3762_p11, %p3958_p5 }
  0x27   : > { %v715_v38 = vld [vmem:[%s6045_s3 + $0x60] sm:$0xff]  ;;  %v367_v41 = vld [vmem:[%s6044_s2 + $0x78] sm:$0xff]  ;;  %v366_v42 = vld [vmem:[%s6044_s2 + $0x70] sm:$0xff] }
  0x28   : > { %736 = vperm.xlu1 %3741, %v706_v7   ;;  %731 = vperm.xlu0 %3740, %v705_v8   ;;  %v718_v43 = vld [vmem:[%s6045_s3 + $0x78] sm:$0xff]  ;;  %v717_v44 = vld [vmem:[%s6045_s3 + $0x70] sm:$0xff]  ;;  %v1222_v45 = vld [vmem:[%s6046_s4 + $0x68] sm:$0xff]  ;;  %p3764_p13 = pneg %p3763_p12 }
  0x29   : > { %v1221_v46 = vld [vmem:[%s6046_s4 + $0x60] sm:$0xff]  ;;  %v1224_v47 = vld [vmem:[%s6046_s4 + $0x78] sm:$0xff]  ;;  %v1223_v48 = vld [vmem:[%s6046_s4 + $0x70] sm:$0xff] }
  0x2a   : > { %v1642_v49 = vld [vmem:[%s6048_s6 + $0x8] sm:$0xff]  ;;  %v1641_v50 = vld [vmem:[%s6048_s6] sm:$0xff]  ;;  %v1644_v51 = vld [vmem:[%s6048_s6 + $0x18] sm:$0xff] }
  0x2b   : > { %v1643_v52 = vld [vmem:[%s6048_s6 + $0x10] sm:$0xff]  ;;  %v1646_v53 = vld [vmem:[%s6048_s6 + $0x28] sm:$0xff]  ;;  %v1645_v54 = vld [vmem:[%s6048_s6 + $0x20] sm:$0xff] }
  0x2c   : > { %1232 = vperm.xlu1 %3741, %v1210_v9   ;;  %1227 = vperm.xlu0 %3740, %v1209_v10   ;;  %v1648_v56 = vld [vmem:[%s6048_s6 + $0x38] sm:$0xff]  ;;  %v1647_v57 = vld [vmem:[%s6048_s6 + $0x30] sm:$0xff]  ;;  %v1650_v59 = vld [vmem:[%s6048_s6 + $0x48] sm:$0xff] }
  0x2d   : > { %v1649_v60 = vld [vmem:[%s6048_s6 + $0x40] sm:$0xff]  ;;  %v1652_v62 = vld [vmem:[%s6048_s6 + $0x58] sm:$0xff]  ;;  %v1651_v63 = vld [vmem:[%s6048_s6 + $0x50] sm:$0xff] }
  0x2e   : > { %v347_v2 = vld [vmem:[%s4151_s27] sm:$0x77]  ;;  %v348_v5 = vld [vmem:[%s4151_s27 + $0x8] sm:$0x77]  ;;  %v349_v10 = vld [vmem:[%s4151_s27 + $0x10] sm:$0x77] }
  0x2f   : > { %v1654_v6 = vld [vmem:[%s6048_s6 + $0x68] sm:$0xff]  ;;  %v1653_v7 = vld [vmem:[%s6048_s6 + $0x60] sm:$0xff]  ;;  %v460_v8 = vrot.slane %v347_v2, %v459_v0  ;;  %v806_v9 = vrot.slane %v347_v2, %v4161_v1 }
  0x30   : > { %395 = vperm.xlu1 %3741, %v357_v11   ;;  %390 = vperm.xlu0 %3740, %v356_v12   ;;  %v468_v11 = vrot.slane %v348_v5, %v459_v0  ;;  %v456_v12 = vrot.slane %v347_v2, %v4165_v3 }
  0x34   : > { %746 = vperm.xlu1 %3741, %v708_v13   ;;  %741 = vperm.xlu0 %3740, %v707_v14   ;;  %v350_v13 = vld [vmem:[%s4151_s27 + $0x18] sm:$0x77]  ;;  %v814_v14 = vrot.slane %v348_v5, %v4161_v1 }
  0x38   : > { %1242 = vperm.xlu1 %3741, %v1212_v15   ;;  %1237 = vperm.xlu0 %3740, %v1211_v16   ;;  %v802_v15 = vrot.slane %v347_v2, %v4168_v4  ;;  %v464_v16 = vrot.slane %v348_v5, %v4165_v3 }
  0x3c   : > { %405 = vperm.xlu1 %3741, %v359_v17   ;;  %400 = vperm.xlu0 %3740, %v358_v18   ;;  %v351_v17 = vld [vmem:[%s4151_s27 + $0x20] sm:$0x77]  ;;  %v1656_v18 = vld [vmem:[%s6048_s6 + $0x78] sm:$0xff] }
  0x40   : > { %756 = vperm.xlu1 %3741, %v710_v19   ;;  %751 = vperm.xlu0 %3740, %v709_v20   ;;  %v1655_v19 = vld [vmem:[%s6048_s6 + $0x70] sm:$0xff]  ;;  %v4192_v20 = vrot.slane %v460_v8, %v4165_v3 }
  0x44   : > { %1252 = vperm.xlu1 %3741, %v1214_v21   ;;  %1247 = vperm.xlu0 %3740, %v1213_v22   ;;  %v4195_v21 = vrot.slane %v806_v9, %v4168_v4  ;;  %v810_v22 = vrot.slane %v348_v5, %v4168_v4 }
  0x48   : > { %415 = vperm.xlu1 %3741, %v361_v23   ;;  %410 = vperm.xlu0 %3740, %v360_v24   ;;  %v476_v23 = vrot.slane %v349_v10, %v459_v0  ;;  %v822_v24 = vrot.slane %v349_v10, %v4161_v1 }
  0x4c   : > { %766 = vperm.xlu1 %3741, %v712_v25   ;;  %761 = vperm.xlu0 %3740, %v711_v26   ;;  %v484_v25 = vrot.slane %v350_v13, %v459_v0  ;;  %v830_v26 = vrot.slane %v350_v13, %v4161_v1 }
  0x50   : > { %1262 = vperm.xlu1 %3741, %v1216_v27   ;;  %1257 = vperm.xlu0 %3740, %v1215_v28   ;;  %v472_v27 = vrot.slane %v349_v10, %v4165_v3  ;;  %v818_v28 = vrot.slane %v349_v10, %v4168_v4 }
  0x54   : > { %425 = vperm.xlu1 %3741, %v363_v29   ;;  %420 = vperm.xlu0 %3740, %v362_v30   ;;  %v480_v29 = vrot.slane %v350_v13, %v4165_v3  ;;  %v826_v30 = vrot.slane %v350_v13, %v4168_v4 }
  0x58   : > { %776 = vperm.xlu1 %3741, %v714_v31   ;;  %771 = vperm.xlu0 %3740, %v713_v32   ;;  %v492_v31 = vrot.slane %v351_v17, %v459_v0  ;;  %v4205_v32 = vrot.slane %v468_v11, %v4165_v3 }
  0x5c   : > { %1272 = vperm.xlu1 %3741, %v1218_v33   ;;  %1267 = vperm.xlu0 %3740, %v1217_v34   ;;  %v4208_v33 = vrot.slane %v814_v14, %v4168_v4  ;;  %v4211_v34 = vrot.slane %v456_v12, %v4165_v3 }
  0x60   : > { %435 = vperm.xlu1 %3741, %v365_v35   ;;  %430 = vperm.xlu0 %3740, %v364_v36   ;;  %v2703_v35 = vld [vmem:[%s6050_s8] sm:$0xff]  ;;  %v4217_v36 = vrot.slane %v802_v15, %v4168_v4 }
  0x64   : > { %786 = vperm.xlu1 %3741, %v716_v37   ;;  %781 = vperm.xlu0 %3740, %v715_v38   ;;  %v4220_v37 = vrot.slane %v464_v16, %v4165_v3  ;;  %v4223_v38 = vrot.slane %v810_v22, %v4168_v4 }
  0x68   : > { %1282 = vperm.xlu1 %3741, %v1220_v39   ;;  %1277 = vperm.xlu0 %3740, %v1219_v40   ;;  %v4226_v39 = vrot.slane %v476_v23, %v4165_v3  ;;  %v4229_v40 = vrot.slane %v822_v24, %v4168_v4 }
  0x6a   : > { %6175 = vst [vmem:[#allocation14_spill] sm:$0xff] %v4229_v40 }
  0x6c   : > { %445 = vperm.xlu1 %3741, %v367_v41   ;;  %440 = vperm.xlu0 %3740, %v366_v42   ;;  %v4232_v41 = vrot.slane %v484_v25, %v4165_v3  ;;  %v4235_v42 = vrot.slane %v830_v26, %v4168_v4 }
  0x6e   : > { %6176 = vst [vmem:[#allocation15_spill] sm:$0xff] %v4232_v41  ;;  %6177 = vst [vmem:[#allocation16_spill] sm:$0xff] %v4235_v42 }
  0x70   : > { %796 = vperm.xlu1 %3741, %v718_v43   ;;  %791 = vperm.xlu0 %3740, %v717_v44   ;;  %v4238_v43 = vrot.slane %v472_v27, %v4165_v3 }
  0x72   : > { %6178 = vst [vmem:[#allocation17_spill] sm:$0xff] %v4238_v43 }
  0x74   : > { %1292 = vperm.xlu1 %3741, %v1222_v45   ;;  %1287 = vperm.xlu0 %3740, %v1221_v46   ;;  %v4245_v46 = vrot.slane %v818_v28, %v4168_v4 }
  0x76   : > { %6180 = vst [vmem:[#allocation19_spill] sm:$0xff] %v4245_v46 }
  0x78   : > { %1302 = vperm.xlu1 %3741, %v1224_v47   ;;  %1297 = vperm.xlu0 %3740, %v1223_v48   ;;  %v4248_v47 = vrot.slane %v480_v29, %v4165_v3  ;;  %v4251_v48 = vrot.slane %v826_v30, %v4168_v4 }
  0x7c   : > { %1664 = vperm.xlu1 %3741, %v1642_v49   ;;  %1659 = vperm.xlu0 %3740, %v1641_v50   ;;  %v4254_v49 = vrot.slane %v492_v31, %v4165_v3 }
  0x7e   : > { %6181 = vst [vmem:[#allocation20_spill] sm:$0xff] %v4254_v49 }
  0x80   : > { %1674 = vperm.xlu1 %3741, %v1644_v51   ;;  %1669 = vperm.xlu0 %3740, %v1643_v52  }
  0x84   : > { %1684 = vperm.xlu1 %3741, %v1646_v53   ;;  %1679 = vperm.xlu0 %3740, %v1645_v54  }
  0x88   : > { %1694 = vperm.xlu1 %3741, %v1648_v56   ;;  %1689 = vperm.xlu0 %3740, %v1647_v57  }
  0x8c   : > { %1704 = vperm.xlu1 %3741, %v1650_v59   ;;  %1699 = vperm.xlu0 %3740, %v1649_v60  }
  0x90   : > { %1714 = vperm.xlu1 %3741, %v1652_v62   ;;  %1709 = vperm.xlu0 %3740, %v1651_v63  }
  0x94   : > { %1724 = vperm.xlu1 %3741, %v1654_v6   ;;  %1719 = vperm.xlu0 %3740, %v1653_v7  }
  0x98   : > { %1734 = vperm.xlu1 %3741, %v1656_v18   ;;  %1729 = vperm.xlu0 %3740, %v1655_v19  }
  0x9b   : > { %v4240_v44 = vpop.permute.xlu1 %721  ;;  %v4242_v45 = vpop.permute.xlu0 %370 }
  0x9c   : > { %6179 = vst [vmem:[#allocation18_spill] sm:$0xff] %v4242_v45  ;;  %2706 = vperm.xlu0 %3740, %v2703_v35   ;;  %v544_v50 = vmul.f32 %v4192_v20, %v4242_v45  ;;  %v890_v51 = vmul.f32 %v4195_v21, %v4240_v44  ;;  %v546_v52 = vmul.f32 %v4205_v32, %v4242_v45 }
  0x9d   : > { %v892_v53 = vmul.f32 %v4208_v33, %v4240_v44  ;;  %v543_v54 = vmul.f32 %v4211_v34, %v4242_v45  ;;  %v889_v56 = vmul.f32 %v4217_v36, %v4240_v44  ;;  %v545_v57 = vmul.f32 %v4220_v37, %v4242_v45 }
  0x9e   : > { %v891_v59 = vmul.f32 %v4223_v38, %v4240_v44  ;;  %v4272_v60 = vadd.f32 %v890_v51, %v544_v50  ;;  %v548_v63 = vmul.f32 %v4226_v39, %v4242_v45  ;;  %v894_v0 = vmul.f32 %v4229_v40, %v4240_v44 }
  0x9f   : > { %v4274_v62 = vadd.f32 %v892_v53, %v546_v52  ;;  %v4280_v2 = vpop.permute.xlu1 %726  ;;  %v4282_v5 = vpop.permute.xlu0 %375  ;;  %v1049_v6 = vadd.f32 %v889_v56, %v543_v54  ;;  %v550_v8 = vmul.f32 %v4232_v41, %v4242_v45  ;;  %v896_v9 = vmul.f32 %v4235_v42, %v4240_v44 }
  0xa0   : > { %6182 = vst [vmem:[#allocation21_spill] sm:$0xff] %v4282_v5  ;;  %v4284_v7 = vadd.f32 %v891_v59, %v545_v57  ;;  %v554_v10 = vmul.f32 %v4192_v20, %v4282_v5  ;;  %v900_v11 = vmul.f32 %v4195_v21, %v4280_v2  ;;  %v556_v12 = vmul.f32 %v4205_v32, %v4282_v5 }
  0xa1   : > { %v902_v13 = vmul.f32 %v4208_v33, %v4280_v2  ;;  %v553_v14 = vmul.f32 %v4211_v34, %v4282_v5  ;;  %v899_v15 = vmul.f32 %v4217_v36, %v4280_v2  ;;  %v555_v16 = vmul.f32 %v4220_v37, %v4282_v5 }
  0xa2   : > { %v901_v17 = vmul.f32 %v4223_v38, %v4280_v2  ;;  %v1060_v18 = vadd.f32 %v900_v11, %v554_v10  ;;  %v558_v22 = vmul.f32 %v4226_v39, %v4282_v5  ;;  %v904_v23 = vmul.f32 %v4229_v40, %v4280_v2 }
  0xa3   : > { %v1062_v19 = vadd.f32 %v902_v13, %v556_v12  ;;  %v4310_v24 = vpop.permute.xlu1 %385  ;;  %v4312_v25 = vpop.permute.xlu0 %380  ;;  %v1059_v26 = vadd.f32 %v899_v15, %v553_v14  ;;  %v4314_v28 = vadd.f32 %v894_v0, %v548_v63  ;;  %v4318_v29 = vmul.f32 %v4232_v41, %v4282_v5 }
  0xa4   : > { %v1061_v27 = vadd.f32 %v901_v17, %v555_v16  ;;  %v564_v30 = vmul.f32 %v4192_v20, %v4312_v25  ;;  %v574_v31 = vmul.f32 %v4192_v20, %v4310_v24  ;;  %v566_v35 = vmul.f32 %v4205_v32, %v4312_v25 }
  0xa5   : > { %v576_v50 = vmul.f32 %v4205_v32, %v4310_v24  ;;  %v563_v51 = vmul.f32 %v4211_v34, %v4312_v25  ;;  %v573_v52 = vmul.f32 %v4211_v34, %v4310_v24  ;;  %v565_v53 = vmul.f32 %v4220_v37, %v4312_v25 }
  0xa6   : > { %v575_v54 = vmul.f32 %v4220_v37, %v4310_v24  ;;  %v4336_v56 = vadd.f32 %v904_v23, %v558_v22  ;;  %v4340_v57 = vmul.f32 %v4235_v42, %v4280_v2  ;;  %v4342_v59 = vadd.f32 %v896_v9, %v550_v8 }
  0xa7   : > { %v4346_v63 = vmul.f32 %v4238_v43, %v4242_v45  ;;  %v4348_v0 = vpop.permute.xlu1 %736  ;;  %v4350_v10 = vpop.permute.xlu0 %731  ;;  %v4354_v11 = vmul.f32 %v4238_v43, %v4282_v5  ;;  %v4358_v12 = vmul.f32 %v4245_v46, %v4240_v44  ;;  %v4362_v8 = vmul.f32 %v4245_v46, %v4280_v2 }
  0xa8   : > { %6183 = vst [vmem:[#allocation22_spill] sm:$0xff] %v4348_v0  ;;  %v4366_v9 = vmul.f32 %v4248_v47, %v4242_v45  ;;  %v910_v13 = vmul.f32 %v4195_v21, %v4350_v10  ;;  %v920_v14 = vmul.f32 %v4195_v21, %v4348_v0  ;;  %v912_v15 = vmul.f32 %v4208_v33, %v4350_v10 }
  0xa9   : > { %v922_v16 = vmul.f32 %v4208_v33, %v4348_v0  ;;  %v909_v17 = vmul.f32 %v4217_v36, %v4350_v10  ;;  %v919_v22 = vmul.f32 %v4217_v36, %v4348_v0  ;;  %v911_v23 = vmul.f32 %v4223_v38, %v4350_v10 }
  0xaa   : > { %v921_v58 = vmul.f32 %v4223_v38, %v4348_v0  ;;  %v4384_v55 = vadd.f32 %v910_v13, %v564_v30  ;;  %v4386_v61 = vadd.f32 %v920_v14, %v574_v31  ;;  %v4388_v4 = vadd.f32 %v912_v15, %v566_v35 }
  0xab   : > { %v4390_v3 = vadd.f32 %v922_v16, %v576_v50  ;;  %v4392_v1 = vpop.permute.xlu1 %1232  ;;  %v4394_v49 = vpop.permute.xlu0 %1227  ;;  %v4396_v45 = vadd.f32 %v909_v17, %v563_v51  ;;  %v4398_v46 = vadd.f32 %v919_v22, %v573_v52  ;;  %v4400_v43 = vadd.f32 %v911_v23, %v565_v53 }
  0xac   : > { %v4402_v42 = vadd.f32 %v921_v58, %v575_v54  ;;  %v1306_v30 = vadd.f32 %v4394_v49, %v4272_v60  ;;  %v1316_v31 = vadd.f32 %v4392_v1, %v1060_v18  ;;  %v1308_v35 = vadd.f32 %v4394_v49, %v4274_v62 }
  0xad   : > { %v1318_v50 = vadd.f32 %v4392_v1, %v1062_v19  ;;  %v1305_v13 = vadd.f32 %v4394_v49, %v1049_v6  ;;  %v1315_v51 = vadd.f32 %v4392_v1, %v1059_v26  ;;  %v1307_v52 = vadd.f32 %v4394_v49, %v4284_v7 }
  0xae   : > { %v1317_v58 = vadd.f32 %v4392_v1, %v1061_v27  ;;  %v1466_v53 = vmax.f32 %v1306_v30, 0.0  ;;  %v1476_v54 = vmax.f32 %v1316_v31, 0.0  ;;  %v1468_v14 = vmax.f32 %v1308_v35, 0.0 }
  0xaf   : > { %v1478_v60 = vmax.f32 %v1318_v50, 0.0  ;;  %v4415_v15 = vpop.permute.xlu1 %395  ;;  %v4417_v18 = vpop.permute.xlu0 %390  ;;  %v1465_v62 = vmax.f32 %v1305_v13, 0.0  ;;  %v1475_v16 = vmax.f32 %v1315_v51, 0.0  ;;  %v1467_v19 = vmax.f32 %v1307_v52, 0.0 }
  0xb0   : > { %6184 = vst [vmem:[#allocation23_spill] sm:$0xff] %v4415_v15  ;;  %6185 = vst [vmem:[#allocation24_spill] sm:$0xff] %v4417_v18  ;;  %v1477_v17 = vmax.f32 %v1317_v58, 0.0  ;;  %v3372_v6 = vpack.c.bf16 %v1476_v54, %v1466_v53  ;;  %v584_v26 = vmul.f32 %v4192_v20, %v4417_v18  ;;  %v594_v7 = vmul.f32 %v4192_v20, %v4415_v15 }
  0xb1   : > { %v3404_v22 = vpack.c.bf16 %v1478_v60, %v1468_v14  ;;  %v3374_v27 = vpack.c.bf16 %v1475_v16, %v1465_v62  ;;  %v586_v30 = vmul.f32 %v4205_v32, %v4417_v18  ;;  %v596_v31 = vmul.f32 %v4205_v32, %v4415_v15 }
  0xb2   : > { %v3406_v23 = vpack.c.bf16 %v1477_v17, %v1467_v19  ;;  %3373 = vmatprep.subr.bf16.mxu0 %v3372_v6  ;;  %v583_v35 = vmul.f32 %v4211_v34, %v4417_v18  ;;  %v593_v50 = vmul.f32 %v4211_v34, %v4415_v15  ;;  %v585_v13 = vmul.f32 %v4220_v37, %v4417_v18 }
  0xb3   : > { %3405 = vmatprep.subr.bf16.mxu1 %v3404_v22  ;;  %v4433_v51 = vpop.permute.xlu1 %746  ;;  %v4435_v52 = vpop.permute.xlu0 %741  ;;  %3375 = vmatpush1.bf16.msra.mxu0 %v3374_v27  ;;  %v595_v58 = vmul.f32 %v4220_v37, %v4415_v15  ;;  %v4441_v53 = vadd.f32 %v4394_v49, %v4314_v28  ;;  %v4445_v54 = vadd.f32 %v4392_v1, %v4336_v56 }
  0xb4   : > { %6186 = vst [vmem:[#allocation25_spill] sm:$0xff] %v4433_v51  ;;  %6187 = vst [vmem:[#allocation26_spill] sm:$0xff] %v4435_v52  ;;  %3407 = vmatpush1.bf16.msra.mxu1 %v3406_v23  ;;  %v930_v14 = vmul.f32 %v4195_v21, %v4435_v52  ;;  %v940_v60 = vmul.f32 %v4195_v21, %v4433_v51  ;;  %v932_v62 = vmul.f32 %v4208_v33, %v4435_v52 }
  0xb5   : > { %v942_v16 = vmul.f32 %v4208_v33, %v4433_v51  ;;  %v929_v28 = vmul.f32 %v4217_v36, %v4435_v52  ;;  %v939_v19 = vmul.f32 %v4217_v36, %v4433_v51  ;;  %v931_v56 = vmul.f32 %v4223_v38, %v4435_v52 }
  0xb6   : > { %v941_v17 = vmul.f32 %v4223_v38, %v4433_v51  ;;  %v4463_v6 = vadd.f32 %v930_v14, %v584_v26  ;;  %v4465_v22 = vadd.f32 %v940_v60, %v594_v7  ;;  %v4467_v27 = vadd.f32 %v932_v62, %v586_v30 }
  0xb7   : > { %v4469_v23 = vadd.f32 %v942_v16, %v596_v31  ;;  %v4471_v15 = vpop.permute.xlu1 %1242  ;;  %v4473_v18 = vpop.permute.xlu0 %1237  ;;  %v4475_v41 = vadd.f32 %v929_v28, %v583_v35  ;;  %v4477_v0 = vadd.f32 %v939_v19, %v593_v50  ;;  %v4479_v52 = vadd.f32 %v931_v56, %v585_v13 }
  0xb8   : > { %6188 = vst [vmem:[#allocation27_spill] sm:$0xff] %v4471_v15  ;;  %v4481_v40 = vadd.f32 %v941_v17, %v595_v58  ;;  %v1326_v26 = vadd.f32 %v4473_v18, %v4384_v55  ;;  %v1336_v7 = vadd.f32 %v4471_v15, %v4386_v61  ;;  %v1328_v30 = vadd.f32 %v4473_v18, %v4388_v4 }
  0xb9   : > { %v1338_v31 = vadd.f32 %v4471_v15, %v4390_v3  ;;  %v1325_v35 = vadd.f32 %v4473_v18, %v4396_v45  ;;  %v1335_v50 = vadd.f32 %v4471_v15, %v4398_v46  ;;  %v1327_v13 = vadd.f32 %v4473_v18, %v4400_v43 }
  0xba   : > { %v1337_v55 = vadd.f32 %v4471_v15, %v4402_v42  ;;  %v1486_v58 = vmax.f32 %v1326_v26, 0.0  ;;  %v1496_v61 = vmax.f32 %v1336_v7, 0.0  ;;  %v1488_v14 = vmax.f32 %v1328_v30, 0.0 }
  0xbb   : > { %v1498_v60 = vmax.f32 %v1338_v31, 0.0  ;;  %v4499_v4 = vpop.permute.xlu1 %405  ;;  %v4501_v62 = vpop.permute.xlu0 %400  ;;  %v1485_v3 = vmax.f32 %v1325_v35, 0.0  ;;  %v1495_v16 = vmax.f32 %v1335_v50, 0.0  ;;  %v1487_v45 = vmax.f32 %v1327_v13, 0.0 }
  0xbc   : > { %6189 = vst [vmem:[#allocation28_spill] sm:$0xff] %v4499_v4  ;;  %6190 = vst [vmem:[#allocation29_spill] sm:$0xff] %v4501_v62  ;;  %v1497_v28 = vmax.f32 %v1337_v55, 0.0  ;;  %v3376_v19 = vpack.c.bf16 %v1496_v61, %v1486_v58  ;;  %v604_v43 = vmul.f32 %v4192_v20, %v4501_v62  ;;  %v614_v42 = vmul.f32 %v4192_v20, %v4499_v4 }
  0xbd   : > { %v3408_v46 = vpack.c.bf16 %v1498_v60, %v1488_v14  ;;  %v3378_v56 = vpack.c.bf16 %v1495_v16, %v1485_v3  ;;  %v606_v26 = vmul.f32 %v4205_v32, %v4501_v62  ;;  %v616_v7 = vmul.f32 %v4205_v32, %v4499_v4 }
  0xbe   : > { %v3410_v17 = vpack.c.bf16 %v1497_v28, %v1487_v45  ;;  %3377 = vmatprep.subr.bf16.mxu0 %v3376_v19  ;;  %v603_v30 = vmul.f32 %v4211_v34, %v4501_v62  ;;  %v613_v31 = vmul.f32 %v4211_v34, %v4499_v4  ;;  %v605_v35 = vmul.f32 %v4220_v37, %v4501_v62 }
  0xbf   : > { %3409 = vmatprep.subr.bf16.mxu1 %v3408_v46  ;;  %v4518_v13 = vpop.permute.xlu1 %756  ;;  %v4520_v55 = vpop.permute.xlu0 %751  ;;  %3379 = vmatpush1.bf16.msra.mxu0 %v3378_v56  ;;  %v615_v58 = vmul.f32 %v4220_v37, %v4499_v4  ;;  %v1480_v61 = vmax.f32 %v4445_v54, 0.0  ;;  %v1066_v14 = vadd.f32 %v4340_v57, %v4318_v29  ;;  %v4529_v60 = vadd.f32 %v4394_v49, %v4342_v59 }
  0xc0   : > { %6191 = vst [vmem:[#allocation30_spill] sm:$0xff] %v4518_v13  ;;  %6192 = vst [vmem:[#allocation31_spill] sm:$0xff] %v4520_v55  ;;  %3411 = vmatpush1.bf16.msra.mxu1 %v3410_v17  ;;  %v950_v3 = vmul.f32 %v4195_v21, %v4520_v55  ;;  %v960_v16 = vmul.f32 %v4195_v21, %v4518_v13  ;;  %v952_v45 = vmul.f32 %v4208_v33, %v4520_v55 }
  0xc1   : > { %v962_v28 = vmul.f32 %v4208_v33, %v4518_v13  ;;  %v949_v54 = vmul.f32 %v4217_v36, %v4520_v55  ;;  %v959_v29 = vmul.f32 %v4217_v36, %v4518_v13  ;;  %v951_v57 = vmul.f32 %v4223_v38, %v4520_v55 }
  0xc2   : > { %v961_v59 = vmul.f32 %v4223_v38, %v4518_v13  ;;  %v4547_v19 = vadd.f32 %v950_v3, %v604_v43  ;;  %v4549_v46 = vadd.f32 %v960_v16, %v614_v42  ;;  %v4551_v56 = vadd.f32 %v952_v45, %v606_v26 }
  0xc3   : > { %v4553_v17 = vadd.f32 %v962_v28, %v616_v7  ;;  %v4555_v50 = vpop.permute.xlu1 %1252  ;;  %v4557_v4 = vpop.permute.xlu0 %1247  ;;  %v4559_v62 = vadd.f32 %v949_v54, %v603_v30  ;;  %v4561_v51 = vadd.f32 %v959_v29, %v613_v31  ;;  %v4563_v55 = vadd.f32 %v951_v57, %v605_v35 }
  0xc4   : > { %6193 = vst [vmem:[#allocation32_spill] sm:$0xff] %v4555_v50  ;;  %6194 = vst [vmem:[#allocation33_spill] sm:$0xff] %v4557_v4  ;;  %v4565_v15 = vadd.f32 %v961_v59, %v615_v58  ;;  %v1346_v43 = vadd.f32 %v4557_v4, %v4463_v6  ;;  %v1356_v42 = vadd.f32 %v4555_v50, %v4465_v22 }
  0xc5   : > { %v1348_v26 = vadd.f32 %v4557_v4, %v4467_v27  ;;  %v1358_v7 = vadd.f32 %v4555_v50, %v4469_v23  ;;  %v1345_v30 = vadd.f32 %v4557_v4, %v4475_v41  ;;  %v1355_v31 = vadd.f32 %v4555_v50, %v4477_v0 }
  0xc6   : > { %v1347_v35 = vadd.f32 %v4557_v4, %v4479_v52  ;;  %v1357_v6 = vadd.f32 %v4555_v50, %v4481_v40  ;;  %v1506_v58 = vmax.f32 %v1346_v43, 0.0  ;;  %v1516_v22 = vmax.f32 %v1356_v42, 0.0 }
  0xc7   : > { %v1508_v3 = vmax.f32 %v1348_v26, 0.0  ;;  %v1518_v16 = vmax.f32 %v1358_v7, 0.0  ;;  %v4583_v27 = vpop.permute.xlu1 %415  ;;  %v4585_v45 = vpop.permute.xlu0 %410  ;;  %v1505_v23 = vmax.f32 %v1345_v30, 0.0  ;;  %v1515_v28 = vmax.f32 %v1355_v31, 0.0 }
  0xc8   : > { %6195 = vst [vmem:[#allocation34_spill] sm:$0xff] %v4583_v27  ;;  %6196 = vst [vmem:[#allocation35_spill] sm:$0xff] %v4585_v45  ;;  %v1507_v41 = vmax.f32 %v1347_v35, 0.0  ;;  %v1517_v54 = vmax.f32 %v1357_v6, 0.0  ;;  %v3380_v29 = vpack.c.bf16 %v1516_v22, %v1506_v58  ;;  %v624_v52 = vmul.f32 %v4192_v20, %v4585_v45 }
  0xc9   : > { %v3412_v0 = vpack.c.bf16 %v1518_v16, %v1508_v3  ;;  %v634_v40 = vmul.f32 %v4192_v20, %v4583_v27  ;;  %v3382_v57 = vpack.c.bf16 %v1515_v28, %v1505_v23  ;;  %v626_v43 = vmul.f32 %v4205_v32, %v4585_v45 }
  0xca   : > { %v3414_v59 = vpack.c.bf16 %v1517_v54, %v1507_v41  ;;  %v636_v42 = vmul.f32 %v4205_v32, %v4583_v27  ;;  %3381 = vmatprep.subr.bf16.mxu0 %v3380_v29  ;;  %v623_v26 = vmul.f32 %v4211_v34, %v4585_v45  ;;  %v633_v7 = vmul.f32 %v4211_v34, %v4583_v27 }
  0xcb   : > { %3413 = vmatprep.subr.bf16.mxu1 %v3412_v0  ;;  %v625_v30 = vmul.f32 %v4220_v37, %v4585_v45  ;;  %v4601_v31 = vpop.permute.xlu1 %766  ;;  %v4603_v35 = vpop.permute.xlu0 %761  ;;  %3383 = vmatpush1.bf16.msra.mxu0 %v3382_v57  ;;  %v635_v6 = vmul.f32 %v4220_v37, %v4583_v27  ;;  %v6199_v58 = vmax.f32 %v4441_v53, 0.0  ;;  %v4612_v3 = vadd.f32 %v4392_v1, %v1066_v14 }
  0xcc   : > { %6197 = vst [vmem:[#allocation36_spill] sm:$0xff] %v4601_v31  ;;  %6198 = vst [vmem:[#allocation37_spill] sm:$0xff] %v4603_v35  ;;  %3415 = vmatpush1.bf16.msra.mxu1 %v3414_v59  ;;  %v970_v16 = vmul.f32 %v4195_v21, %v4603_v35  ;;  %v980_v23 = vmul.f32 %v4195_v21, %v4601_v31  ;;  %v972_v28 = vmul.f32 %v4208_v33, %v4603_v35 }
  0xcd   : > { %v4609_v22 = vpack.c.bf16 %v1480_v61, %v6199_v58  ;;  %v982_v41 = vmul.f32 %v4208_v33, %v4601_v31  ;;  %v969_v53 = vmul.f32 %v4217_v36, %v4603_v35  ;;  %v979_v61 = vmul.f32 %v4217_v36, %v4601_v31 }
  0xce   : > { %v971_v14 = vmul.f32 %v4223_v38, %v4603_v35  ;;  %v981_v54 = vmul.f32 %v4223_v38, %v4601_v31  ;;  %v4630_v29 = vadd.f32 %v970_v16, %v624_v52  ;;  %v4632_v0 = vadd.f32 %v980_v23, %v634_v40 }
  0xcf   : > { %v4634_v57 = vadd.f32 %v972_v28, %v626_v43  ;;  %v4636_v59 = vadd.f32 %v982_v41, %v636_v42  ;;  %v4638_v58 = vpop.permute.xlu1 %1262  ;;  %v4640_v27 = vpop.permute.xlu0 %1257  ;;  %v4642_v45 = vadd.f32 %v969_v53, %v623_v26  ;;  %v4644_v13 = vadd.f32 %v979_v61, %v633_v7 }
  0xd0   : > { %6200 = vst [vmem:[#allocation38_spill] sm:$0xff] %v4640_v27  ;;  %v4646_v35 = vadd.f32 %v971_v14, %v625_v30  ;;  %v4648_v50 = vadd.f32 %v981_v54, %v635_v6  ;;  %v1366_v52 = vadd.f32 %v4640_v27, %v4547_v19  ;;  %v1376_v40 = vadd.f32 %v4638_v58, %v4549_v46 }
  0xd1   : > { %v1368_v43 = vadd.f32 %v4640_v27, %v4551_v56  ;;  %v1378_v42 = vadd.f32 %v4638_v58, %v4553_v17  ;;  %v1365_v26 = vadd.f32 %v4640_v27, %v4559_v62  ;;  %v1375_v7 = vadd.f32 %v4638_v58, %v4561_v51 }
  0xd2   : > { %v1367_v30 = vadd.f32 %v4640_v27, %v4563_v55  ;;  %v1377_v19 = vadd.f32 %v4638_v58, %v4565_v15  ;;  %v1526_v6 = vmax.f32 %v1366_v52, 0.0  ;;  %v1536_v46 = vmax.f32 %v1376_v40, 0.0 }
  0xd3   : > { %v1528_v16 = vmax.f32 %v1368_v43, 0.0  ;;  %v1538_v23 = vmax.f32 %v1378_v42, 0.0  ;;  %v4666_v56 = vpop.permute.xlu1 %425  ;;  %v4668_v28 = vpop.permute.xlu0 %420  ;;  %v1525_v17 = vmax.f32 %v1365_v26, 0.0  ;;  %v1535_v41 = vmax.f32 %v1375_v7, 0.0 }
  0xd4   : > { %6201 = vst [vmem:[#allocation39_spill] sm:$0xff] %v4666_v56  ;;  %6202 = vst [vmem:[#allocation40_spill] sm:$0xff] %v4668_v28  ;;  %v1527_v62 = vmax.f32 %v1367_v30, 0.0  ;;  %v1537_v53 = vmax.f32 %v1377_v19, 0.0  ;;  %v3384_v61 = vpack.c.bf16 %v1536_v46, %v1526_v6  ;;  %v644_v55 = vmul.f32 %v4192_v20, %v4668_v28 }
  0xd5   : > { %v3416_v51 = vpack.c.bf16 %v1538_v23, %v1528_v16  ;;  %v654_v15 = vmul.f32 %v4192_v20, %v4666_v56  ;;  %v3386_v14 = vpack.c.bf16 %v1535_v41, %v1525_v17  ;;  %v646_v52 = vmul.f32 %v4205_v32, %v4668_v28 }
  0xd6   : > { %v3418_v54 = vpack.c.bf16 %v1537_v53, %v1527_v62  ;;  %v656_v40 = vmul.f32 %v4205_v32, %v4666_v56  ;;  %3385 = vmatprep.subr.bf16.mxu0 %v3384_v61  ;;  %v643_v43 = vmul.f32 %v4211_v34, %v4668_v28  ;;  %v653_v42 = vmul.f32 %v4211_v34, %v4666_v56 }
  0xd7   : > { %3417 = vmatprep.subr.bf16.mxu1 %v3416_v51  ;;  %v645_v26 = vmul.f32 %v4220_v37, %v4668_v28  ;;  %v4685_v30 = vpop.permute.xlu1 %776  ;;  %v4687_v19 = vpop.permute.xlu0 %771  ;;  %3387 = vmatpush1.bf16.msra.mxu0 %v3386_v14  ;;  %v655_v6 = vmul.f32 %v4220_v37, %v4666_v56  ;;  %v1482_v46 = vmax.f32 %v4612_v3, 0.0  ;;  %v1053_v16 = vadd.f32 %v4358_v12, %v4346_v63 }
  0xd8   : > { %6203 = vst [vmem:[#allocation41_spill] sm:$0xff] %v4685_v30  ;;  %6204 = vst [vmem:[#allocation42_spill] sm:$0xff] %v4687_v19  ;;  %3419 = vmatpush1.bf16.msra.mxu1 %v3418_v54  ;;  %v4696_v23 = vadd.f32 %v4362_v8, %v4354_v11  ;;  %v990_v17 = vmul.f32 %v4195_v21, %v4687_v19  ;;  %v1000_v41 = vmul.f32 %v4195_v21, %v4685_v30 }
  0xd9   : > { %v992_v62 = vmul.f32 %v4208_v33, %v4687_v19  ;;  %v1002_v53 = vmul.f32 %v4208_v33, %v4685_v30  ;;  %v989_v3 = vmul.f32 %v4217_v36, %v4687_v19  ;;  %v999_v63 = vmul.f32 %v4217_v36, %v4685_v30 }
  0xda   : > { %v991_v11 = vmul.f32 %v4223_v38, %v4687_v19  ;;  %v1001_v12 = vmul.f32 %v4223_v38, %v4685_v30  ;;  %v4714_v8 = vadd.f32 %v990_v17, %v644_v55  ;;  %v4716_v61 = vadd.f32 %v1000_v41, %v654_v15 }
  0xdb   : > { %v4718_v51 = vadd.f32 %v992_v62, %v646_v52  ;;  %v4720_v14 = vadd.f32 %v1002_v53, %v656_v40  ;;  %v4722_v54 = vpop.permute.xlu1 %1272  ;;  %v4724_v7 = vpop.permute.xlu0 %1267  ;;  %v4726_v56 = vadd.f32 %v989_v3, %v643_v43  ;;  %v4728_v28 = vadd.f32 %v999_v63, %v653_v42 }
  0xdc   : > { %6205 = vst [vmem:[#allocation43_spill] sm:$0xff] %v4722_v54  ;;  %6206 = vst [vmem:[#allocation44_spill] sm:$0xff] %v4724_v7  ;;  %v4730_v19 = vadd.f32 %v991_v11, %v645_v26  ;;  %v4732_v31 = vadd.f32 %v1001_v12, %v655_v6  ;;  %v1386_v55 = vadd.f32 %v4724_v7, %v4630_v29 }
  0xdd   : > { %v1396_v15 = vadd.f32 %v4722_v54, %v4632_v0  ;;  %v1388_v52 = vadd.f32 %v4724_v7, %v4634_v57  ;;  %v1398_v40 = vadd.f32 %v4722_v54, %v4636_v59  ;;  %v1385_v43 = vadd.f32 %v4724_v7, %v4642_v45 }
  0xde   : > { %v1395_v42 = vadd.f32 %v4722_v54, %v4644_v13  ;;  %v1387_v26 = vadd.f32 %v4724_v7, %v4646_v35  ;;  %v1397_v29 = vadd.f32 %v4722_v54, %v4648_v50  ;;  %v1546_v6 = vmax.f32 %v1386_v55, 0.0 }
  0xdf   : > { %v1556_v0 = vmax.f32 %v1396_v15, 0.0  ;;  %v1548_v17 = vmax.f32 %v1388_v52, 0.0  ;;  %v1558_v41 = vmax.f32 %v1398_v40, 0.0  ;;  %v4750_v57 = vpop.permute.xlu1 %435  ;;  %v4752_v62 = vpop.permute.xlu0 %430  ;;  %v1545_v59 = vmax.f32 %v1385_v43, 0.0 }
  0xe0   : > { %6207 = vst [vmem:[#allocation45_spill] sm:$0xff] %v4750_v57  ;;  %6208 = vst [vmem:[#allocation46_spill] sm:$0xff] %v4752_v62  ;;  %v1555_v53 = vmax.f32 %v1395_v42, 0.0  ;;  %v1547_v45 = vmax.f32 %v1387_v26, 0.0  ;;  %v1557_v3 = vmax.f32 %v1397_v29, 0.0  ;;  %v664_v35 = vmul.f32 %v4192_v20, %v4752_v62 }
  0xe1   : > { %v3388_v63 = vpack.c.bf16 %v1556_v0, %v1546_v6  ;;  %v3420_v13 = vpack.c.bf16 %v1558_v41, %v1548_v17  ;;  %v674_v50 = vmul.f32 %v4192_v20, %v4750_v57  ;;  %v666_v55 = vmul.f32 %v4205_v32, %v4752_v62 }
  0xe2   : > { %v3390_v11 = vpack.c.bf16 %v1555_v53, %v1545_v59  ;;  %v3422_v12 = vpack.c.bf16 %v1557_v3, %v1547_v45  ;;  %v676_v15 = vmul.f32 %v4205_v32, %v4750_v57  ;;  %v663_v52 = vmul.f32 %v4211_v34, %v4752_v62 }
  0xe3   : > { %3389 = vmatprep.subr.bf16.mxu0 %v3388_v63  ;;  %3421 = vmatprep.subr.bf16.mxu1 %v3420_v13  ;;  %v673_v40 = vmul.f32 %v4211_v34, %v4750_v57  ;;  %v665_v43 = vmul.f32 %v4220_v37, %v4752_v62  ;;  %v4768_v42 = vpop.permute.xlu1 %786  ;;  %v4770_v26 = vpop.permute.xlu0 %781  ;;  %v675_v29 = vmul.f32 %v4220_v37, %v4750_v57  ;;  %v6210_v6 = vmax.f32 %v4529_v60, 0.0 }
  0xe4   : > { %6209 = vst [vmem:[#allocation47_spill] sm:$0xff] %v4770_v26  ;;  %3391 = vmatpush1.bf16.msra.mxu0 %v3390_v11  ;;  %3423 = vmatpush1.bf16.msra.mxu1 %v3422_v12  ;;  %v4779_v17 = vadd.f32 %v4394_v49, %v1053_v16  ;;  %v1010_v41 = vmul.f32 %v4195_v21, %v4770_v26 }
  0xe5   : > { %v4776_v0 = vpack.c.bf16 %v1482_v46, %v6210_v6  ;;  %v1020_v59 = vmul.f32 %v4195_v21, %v4768_v42  ;;  %v1012_v53 = vmul.f32 %v4208_v33, %v4770_v26  ;;  %v1022_v45 = vmul.f32 %v4208_v33, %v4768_v42 }
  0xe6   : > { %v1009_v60 = vmul.f32 %v4217_v36, %v4770_v26  ;;  %v1019_v46 = vmul.f32 %v4217_v36, %v4768_v42  ;;  %v1011_v16 = vmul.f32 %v4223_v38, %v4770_v26  ;;  %v1021_v3 = vmul.f32 %v4223_v38, %v4768_v42 }
  0xe7   : > { %v4797_v63 = vadd.f32 %v1010_v41, %v664_v35  ;;  %v4799_v13 = vadd.f32 %v1020_v59, %v674_v50  ;;  %v4801_v11 = vadd.f32 %v1012_v53, %v666_v55  ;;  %v4803_v12 = vadd.f32 %v1022_v45, %v676_v15  ;;  %v4805_v6 = vpop.permute.xlu1 %1282  ;;  %v4807_v57 = vpop.permute.xlu0 %1277 }
  0xe8   : > { %6211 = vst [vmem:[#allocation48_spill] sm:$0xff] %v4807_v57  ;;  %v4809_v62 = vadd.f32 %v1009_v60, %v663_v52  ;;  %v4811_v30 = vadd.f32 %v1019_v46, %v673_v40  ;;  %v4813_v26 = vadd.f32 %v1011_v16, %v665_v43  ;;  %v4815_v54 = vadd.f32 %v1021_v3, %v675_v29 }
  0xe9   : > { %v1406_v35 = vadd.f32 %v4807_v57, %v4714_v8  ;;  %v1416_v50 = vadd.f32 %v4805_v6, %v4716_v61  ;;  %v1408_v55 = vadd.f32 %v4807_v57, %v4718_v51  ;;  %v1418_v15 = vadd.f32 %v4805_v6, %v4720_v14 }
  0xea   : > { %v1405_v52 = vadd.f32 %v4807_v57, %v4726_v56  ;;  %v1415_v40 = vadd.f32 %v4805_v6, %v4728_v28  ;;  %v1407_v43 = vadd.f32 %v4807_v57, %v4730_v19  ;;  %v1417_v8 = vadd.f32 %v4805_v6, %v4732_v31 }
  0xeb   : > { %v1566_v29 = vmax.f32 %v1406_v35, 0.0  ;;  %v1576_v61 = vmax.f32 %v1416_v50, 0.0  ;;  %v1568_v41 = vmax.f32 %v1408_v55, 0.0  ;;  %v1578_v59 = vmax.f32 %v1418_v15, 0.0  ;;  %v4833_v51 = vpop.permute.xlu1 %445  ;;  %v4835_v53 = vpop.permute.xlu0 %440 }
  0xec   : > { %v1565_v14 = vmax.f32 %v1405_v52, 0.0  ;;  %v1575_v45 = vmax.f32 %v1415_v40, 0.0  ;;  %v1567_v56 = vmax.f32 %v1407_v43, 0.0  ;;  %v1577_v60 = vmax.f32 %v1417_v8, 0.0 }
  0xed   : > { %v3392_v46 = vpack.c.bf16 %v1576_v61, %v1566_v29  ;;  %v3424_v28 = vpack.c.bf16 %v1578_v59, %v1568_v41  ;;  %v684_v19 = vmul.f32 %v4192_v20, %v4835_v53  ;;  %v694_v31 = vmul.f32 %v4192_v20, %v4833_v51 }
  0xee   : > { %v3394_v16 = vpack.c.bf16 %v1575_v45, %v1565_v14  ;;  %v3426_v3 = vpack.c.bf16 %v1577_v60, %v1567_v56  ;;  %v686_v35 = vmul.f32 %v4205_v32, %v4835_v53  ;;  %v696_v50 = vmul.f32 %v4205_v32, %v4833_v51 }
  0xef   : > { %3393 = vmatprep.subr.bf16.mxu0 %v3392_v46  ;;  %3425 = vmatprep.subr.bf16.mxu1 %v3424_v28  ;;  %v683_v55 = vmul.f32 %v4211_v34, %v4835_v53  ;;  %v693_v15 = vmul.f32 %v4211_v34, %v4833_v51  ;;  %v685_v52 = vmul.f32 %v4220_v37, %v4835_v53  ;;  %v4851_v20 = vpop.permute.xlu1 %796  ;;  %v4853_v40 = vpop.permute.xlu0 %791 }
  0xf0   : > { %6212 = vst [vmem:[#allocation49_spill] sm:$0xff] %v4853_v40  ;;  %3395 = vmatpush1.bf16.msra.mxu0 %v3394_v16  ;;  %3427 = vmatpush1.bf16.msra.mxu1 %v3426_v3  ;;  %v695_v32 = vmul.f32 %v4220_v37, %v4833_v51  ;;  %v4859_v43 = vadd.f32 %v4392_v1, %v4696_v23 }
  0xf1   : > { %v4864_v34 = vmul.f32 %v4248_v47, %v4282_v5  ;;  %v1030_v29 = vmul.f32 %v4195_v21, %v4853_v40  ;;  %v1040_v61 = vmul.f32 %v4195_v21, %v4851_v20  ;;  %v1032_v41 = vmul.f32 %v4208_v33, %v4853_v40 }
  0xf2   : > { %v1042_v37 = vmul.f32 %v4208_v33, %v4851_v20  ;;  %v1029_v23 = vmul.f32 %v4217_v36, %v4853_v40  ;;  %v1039_v59 = vmul.f32 %v4217_v36, %v4851_v20  ;;  %v1031_v14 = vmul.f32 %v4223_v38, %v4853_v40 }
  0xf3   : > { %v1041_v45 = vmul.f32 %v4223_v38, %v4851_v20  ;;  %v1190_v56 = vadd.f32 %v1030_v29, %v684_v19  ;;  %v1200_v21 = vadd.f32 %v1040_v61, %v694_v31  ;;  %v1192_v60 = vadd.f32 %v1032_v41, %v686_v35  ;;  %v4882_v28 = vpop.permute.xlu1 %1292  ;;  %v4884_v16 = vpop.permute.xlu0 %1287 }
  0xf4   : > { %v1202_v46 = vadd.f32 %v1042_v37, %v696_v50  ;;  %v1189_v33 = vadd.f32 %v1029_v23, %v683_v55  ;;  %v1199_v3 = vadd.f32 %v1039_v59, %v693_v15  ;;  %v1191_v8 = vadd.f32 %v1031_v14, %v685_v52 }
  0xf5   : > { %v1201_v5 = vadd.f32 %v1041_v45, %v695_v32  ;;  %v1426_v36 = vadd.f32 %v4884_v16, %v4797_v63  ;;  %v1436_v40 = vadd.f32 %v4882_v28, %v4799_v13  ;;  %v1428_v38 = vadd.f32 %v4884_v16, %v4801_v11 }
  0xf6   : > { %v1438_v19 = vadd.f32 %v4882_v28, %v4803_v12  ;;  %v1425_v31 = vadd.f32 %v4884_v16, %v4809_v62  ;;  %v1435_v35 = vadd.f32 %v4882_v28, %v4811_v30  ;;  %v1427_v50 = vadd.f32 %v4884_v16, %v4813_v26 }
  0xf7   : > { %v1437_v63 = vadd.f32 %v4882_v28, %v4815_v54  ;;  %v1586_v55 = vmax.f32 %v1426_v36, 0.0  ;;  %v1596_v13 = vmax.f32 %v1436_v40, 0.0  ;;  %v1588_v15 = vmax.f32 %v1428_v38, 0.0  ;;  %v4902_v11 = vpop.permute.xlu1 %1302  ;;  %v4904_v32 = vpop.permute.xlu0 %1297 }
  0xf8   : > { %v1598_v52 = vmax.f32 %v1438_v19, 0.0  ;;  %v1585_v12 = vmax.f32 %v1425_v31, 0.0  ;;  %v1595_v29 = vmax.f32 %v1435_v35, 0.0  ;;  %v1587_v62 = vmax.f32 %v1427_v50, 0.0 }
  0xf9   : > { %v1597_v61 = vmax.f32 %v1437_v63, 0.0  ;;  %v3396_v41 = vpack.c.bf16 %v1596_v13, %v1586_v55  ;;  %v1446_v37 = vadd.f32 %v4904_v32, %v1190_v56  ;;  %v1456_v26 = vadd.f32 %v4902_v11, %v1200_v21 }
  0xfa   : > { %v3428_v30 = vpack.c.bf16 %v1598_v52, %v1588_v15  ;;  %v3398_v23 = vpack.c.bf16 %v1595_v29, %v1585_v12  ;;  %v1448_v40 = vadd.f32 %v4904_v32, %v1192_v60  ;;  %v1458_v59 = vadd.f32 %v4902_v11, %v1202_v46 }
  0xfb   : > { %v3430_v54 = vpack.c.bf16 %v1597_v61, %v1587_v62  ;;  %3397 = vmatprep.subr.bf16.mxu0 %v3396_v41  ;;  %v1606_v14 = vmax.f32 %v1446_v37, 0.0  ;;  %v1616_v45 = vmax.f32 %v1456_v26, 0.0  ;;  %v1445_v36 = vadd.f32 %v4904_v32, %v1189_v33  ;;  %v6214_v62 = vld [vmem:[#allocation14_spill] sm:$0xff]  ;;  %v6216_v26 = vld [vmem:[#allocation15_spill] sm:$0xff] }
  0xfc   : > { %3429 = vmatprep.subr.bf16.mxu1 %v3428_v30  ;;  %v1455_v38 = vadd.f32 %v4902_v11, %v1199_v3  ;;  %3399 = vmatpush1.bf16.msra.mxu0 %v3398_v23  ;;  %v1608_v19 = vmax.f32 %v1448_v40, 0.0  ;;  %v1618_v56 = vmax.f32 %v1458_v59, 0.0  ;;  %v1447_v21 = vadd.f32 %v4904_v32, %v1191_v8  ;;  %v6215_v30 = vld [vmem:[#allocation22_spill] sm:$0xff]  ;;  %v6217_v59 = vld [vmem:[#allocation16_spill] sm:$0xff] }
  0xfd   : > { %3431 = vmatpush1.bf16.msra.mxu1 %v3430_v54  ;;  %v1457_v31 = vadd.f32 %v4902_v11, %v1201_v5  ;;  %v3400_v35 = vpack.c.bf16 %v1616_v45, %v1606_v14  ;;  %v1605_v60 = vmax.f32 %v1445_v36, 0.0  ;;  %v1479_v46 = vmax.f32 %v4859_v43, 0.0 }
  0xfe   : > { %v1615_v50 = vmax.f32 %v1455_v38, 0.0  ;;  %v3432_v63 = vpack.c.bf16 %v1618_v56, %v1608_v19  ;;  %v1607_v55 = vmax.f32 %v1447_v21, 0.0  ;;  %v895_v33 = vmul.f32 %v4251_v48, %v4240_v44  ;;  %v6218_v38 = vld [vmem:[#allocation17_spill] sm:$0xff] }
  0xff   : > { %v1617_v13 = vmax.f32 %v1457_v31, 0.0  ;;  %3401 = vmatprep.subr.bf16.mxu0 %v3400_v35  ;;  %v6213_v15 = vmax.f32 %v4779_v17, 0.0  ;;  %v905_v8 = vmul.f32 %v4251_v48, %v4280_v2  ;;  %v568_v5 = vmul.f32 %v4226_v39, %v4312_v25  ;;  %v4931_v17 = vld [vmem:[%s6047_s5] sm:$0xff]  ;;  %v6219_v35 = vld [vmem:[#allocation27_spill] sm:$0xff] }
 0x100   : > { %v3402_v3 = vpack.c.bf16 %v1615_v50, %v1605_v60  ;;  %3433 = vmatprep.subr.bf16.mxu1 %v3432_v63  ;;  %v1055_v43 = vadd.f32 %v895_v33, %v4366_v9  ;;  %v578_v29 = vmul.f32 %v4226_v39, %v4310_v24  ;;  %v914_v61 = vmul.f32 %v6214_v62, %v4350_v10  ;;  %v6220_v63 = vld [vmem:[#allocation19_spill] sm:$0xff] }
 0x101   : > { %v3438_v52 = vpack.c.bf16 %v1479_v46, %v6213_v15  ;;  %v3434_v12 = vpack.c.bf16 %v1617_v13, %v1607_v55  ;;  %v1065_v41 = vadd.f32 %v905_v8, %v4864_v34  ;;  %v924_v37 = vmul.f32 %v6214_v62, %v6215_v30  ;;  %v4959_v46 = vld [vmem:[%s6047_s5 + $0x8] sm:$0xff] }
 0x102   : > { %3403 = vmatpush1.bf16.msra.mxu0 %v3402_v3  ;;  %v570_v9 = vmul.f32 %v6216_v26, %v4312_v25  ;;  %v580_v23 = vmul.f32 %v6216_v26, %v4310_v24  ;;  %v1311_v54 = vadd.f32 %v4394_v49, %v1055_v43  ;;  %v1074_v40 = vadd.f32 %v914_v61, %v568_v5 }
 0x103   : > { %3435 = vmatpush1.bf16.msra.mxu1 %v3434_v12  ;;  %3437 = vmatprep.subr.bf16.mxu0 %v4609_v22  ;;  %v916_v14 = vmul.f32 %v6217_v59, %v4350_v10  ;;  %v1321_v34 = vadd.f32 %v4392_v1, %v1065_v41  ;;  %v1084_v45 = vadd.f32 %v924_v37, %v578_v29  ;;  %v6221_v3 = vmov 0.0  }
 0x104   : > { %3469 = vmatprep.subr.bf16.mxu1 %v4776_v0  ;;  %v926_v36 = vmul.f32 %v6217_v59, %v6215_v30  ;;  %v567_v19 = vmul.f32 %v6218_v38, %v4312_v25  ;;  %v1471_v22 = vmax.f32 %v1311_v54, 0.0  ;;  %v1330_v56 = vadd.f32 %v4473_v18, %v1074_v40 }
 0x105   : > { %1802 = vmatmul.mubr.f32.vlgmr.msra.gmra.mrb[0].mxu0 %v4931_v17  ;;  %v1076_v21 = vadd.f32 %v916_v14, %v570_v9  ;;  %v577_v31 = vmul.f32 %v6218_v38, %v4310_v24  ;;  %v1481_v0 = vmax.f32 %v1321_v34, 0.0  ;;  %v1340_v60 = vadd.f32 %v6219_v35, %v1084_v45  ;;  %v4983_v14 = vld [vmem:[%s6047_s5 + $0x10] sm:$0xff] }
 0x106   : > { %1963 = vmatmul.mubr.f32.vlgmr.msra.gmra.mrb[0].mxu1 %v4931_v17  ;;  %3439 = vmatpush1.bf16.msra.mxu0 %v3438_v52  ;;  %v1086_v50 = vadd.f32 %v926_v36, %v580_v23  ;;  %v913_v55 = vmul.f32 %v6220_v63, %v4350_v10  ;;  %v1490_v13 = vmax.f32 %v1330_v56, 0.0  ;;  %v923_v15 = vmul.f32 %v6220_v63, %v6215_v30  ;;  %v6223_v36 = vld [vmem:[#allocation24_spill] sm:$0xff] }
 0x107   : > { %v1332_v33 = vadd.f32 %v4473_v18, %v1076_v21  ;;  %1807 = vmatprep.mubr.f32.mxu0 %v6221_v3  ;;  %1968 = vmatprep.mubr.f32.mxu1 %v6221_v3  ;;  %v569_v52 = vmul.f32 %v4248_v47, %v4312_v25  ;;  %v3470_v8 = vpack.c.bf16 %v1481_v0, %v1471_v22  ;;  %v1500_v5 = vmax.f32 %v1340_v60, 0.0  ;;  %v6224_v22 = vld [vmem:[#allocation23_spill] sm:$0xff]  ;;  %v6225_v60 = vld [vmem:[#allocation26_spill] sm:$0xff] }
 0x108   : > { %v1342_v12 = vadd.f32 %v6219_v35, %v1086_v50  ;;  %v1073_v43 = vadd.f32 %v913_v55, %v567_v19  ;;  %v1083_v61 = vadd.f32 %v923_v15, %v577_v31  ;;  %v579_v41 = vmul.f32 %v4248_v47, %v4310_v24  ;;  %6222 = vst [vmem:[#allocation14_spill] sm:$0xff] %v4983_v14 }
 0x109   : > { %v1492_v29 = vmax.f32 %v1332_v33, 0.0  ;;  %1808 = vmatmul.mubr.f32.gmra.mrb[2].mxu0 %v4959_v46  ;;  %v915_v37 = vmul.f32 %v4251_v48, %v4350_v10  ;;  %3471 = vmatpush1.bf16.msra.mxu1 %v3470_v8  ;;  %v3440_v9 = vpack.c.bf16 %v1500_v5, %v1490_v13  ;;  %v925_v40 = vmul.f32 %v4251_v48, %v6215_v30  ;;  %v6226_v33 = vld [vmem:[#allocation25_spill] sm:$0xff] }
 0x10a   : > { %v1502_v23 = vmax.f32 %v1342_v12, 0.0  ;;  %v1329_v54 = vadd.f32 %v4473_v18, %v1073_v43  ;;  %1813 = vmatprep.mubr.f32.mxu0 %v6221_v3  ;;  %1969 = vmatmul.mubr.f32.gmra.mrb[2].mxu1 %v4959_v46  ;;  %v1339_v34 = vadd.f32 %v6219_v35, %v1083_v61  ;;  %v588_v19 = vmul.f32 %v4226_v39, %v6223_v36 }
 0x10b   : > { %v1075_v45 = vadd.f32 %v915_v37, %v569_v52  ;;  %v598_v56 = vmul.f32 %v4226_v39, %v6224_v22  ;;  %3441 = vmatprep.subr.bf16.mxu0 %v3440_v9  ;;  %v1085_v0 = vadd.f32 %v925_v40, %v579_v41  ;;  %v934_v50 = vmul.f32 %v6214_v62, %v6225_v60  ;;  %v5012_v9 = vld [vmem:[%s6047_s5 + $0x18] sm:$0xff] }
 0x10c   : > { %v3472_v21 = vpack.c.bf16 %v1502_v23, %v1492_v29  ;;  %v1489_v31 = vmax.f32 %v1329_v54, 0.0  ;;  %1974 = vmatprep.mubr.f32.mxu1 %v6221_v3  ;;  %v1499_v55 = vmax.f32 %v1339_v34, 0.0  ;;  %v944_v15 = vmul.f32 %v6214_v62, %v6226_v33  ;;  %6227 = vst [vmem:[#allocation22_spill] sm:$0xff] %v5012_v9 }
 0x10d   : > { %v1331_v13 = vadd.f32 %v4473_v18, %v1075_v45  ;;  %v590_v52 = vmul.f32 %v6216_v26, %v6223_v36  ;;  %1814 = vmatmul.mubr.f32.gmra.mrb[4].mxu0 %v4983_v14  ;;  %v1341_v8 = vadd.f32 %v6219_v35, %v1085_v0  ;;  %v1094_v5 = vadd.f32 %v934_v50, %v588_v19  ;;  %v6228_v45 = vld [vmem:[#allocation32_spill] sm:$0xff] }
 0x10e   : > { %3473 = vmatprep.subr.bf16.mxu1 %v3472_v21  ;;  %v600_v12 = vmul.f32 %v6216_v26, %v6224_v22  ;;  %v936_v43 = vmul.f32 %v6217_v59, %v6225_v60  ;;  %v3442_v29 = vpack.c.bf16 %v1499_v55, %v1489_v31  ;;  %v1104_v41 = vadd.f32 %v944_v15, %v598_v56 }
 0x10f   : > { %v1491_v61 = vmax.f32 %v1331_v13, 0.0  ;;  %v946_v37 = vmul.f32 %v6217_v59, %v6226_v33  ;;  %1975 = vmatmul.mubr.f32.gmra.mrb[4].mxu1 %v4983_v14  ;;  %1819 = vmatprep.mubr.f32.mxu0 %v6221_v3  ;;  %v1501_v23 = vmax.f32 %v1341_v8, 0.0  ;;  %v1350_v54 = vadd.f32 %v4557_v4, %v1094_v5 }
 0x110   : > { %v1096_v40 = vadd.f32 %v936_v43, %v590_v52  ;;  %v587_v34 = vmul.f32 %v6218_v38, %v6223_v36  ;;  %1980 = vmatprep.mubr.f32.mxu1 %v6221_v3  ;;  %3443 = vmatpush1.bf16.msra.mxu0 %v3442_v29  ;;  %v1360_v19 = vadd.f32 %v6228_v45, %v1104_v41 }
 0x111   : > { %v1106_v56 = vadd.f32 %v946_v37, %v600_v12  ;;  %v597_v21 = vmul.f32 %v6218_v38, %v6224_v22  ;;  %v933_v31 = vmul.f32 %v6220_v63, %v6225_v60  ;;  %v3474_v0 = vpack.c.bf16 %v1501_v23, %v1491_v61  ;;  %1820 = vmatmul.mubr.f32.gmra.mrb[6].mxu0 %v5012_v9  ;;  %v5035_v12 = vld [vmem:[%s6047_s5 + $0x20] sm:$0xff] }
 0x112   : > { %v1510_v50 = vmax.f32 %v1350_v54, 0.0  ;;  %v1352_v55 = vadd.f32 %v4557_v4, %v1096_v40  ;;  %v943_v13 = vmul.f32 %v6220_v63, %v6226_v33  ;;  %v1520_v15 = vmax.f32 %v1360_v19, 0.0  ;;  %1825 = vmatprep.mubr.f32.mxu0 %v6221_v3  ;;  %6229 = vst [vmem:[#allocation15_spill] sm:$0xff] %v5035_v12 }
 0x113   : > { %v1362_v52 = vadd.f32 %v6228_v45, %v1106_v56  ;;  %v1093_v8 = vadd.f32 %v933_v31, %v587_v34  ;;  %v589_v5 = vmul.f32 %v4248_v47, %v6223_v36  ;;  %1981 = vmatmul.mubr.f32.gmra.mrb[6].mxu1 %v5012_v9  ;;  %v599_v61 = vmul.f32 %v4248_v47, %v6224_v22  ;;  %v6230_v56 = vld [vmem:[#allocation29_spill] sm:$0xff]  ;;  %v6231_v31 = vld [vmem:[#allocation28_spill] sm:$0xff] }
 0x114   : > { %3475 = vmatpush1.bf16.msra.mxu1 %v3474_v0  ;;  %v1512_v43 = vmax.f32 %v1352_v55, 0.0  ;;  %v1103_v29 = vadd.f32 %v943_v13, %v597_v21  ;;  %v935_v41 = vmul.f32 %v4251_v48, %v6225_v60  ;;  %1986 = vmatprep.mubr.f32.mxu1 %v6221_v3  ;;  %v3444_v37 = vpack.c.bf16 %v1520_v15, %v1510_v50  ;;  %v6232_v15 = vld [vmem:[#allocation31_spill] sm:$0xff] }
 0x115   : > { %v1522_v23 = vmax.f32 %v1362_v52, 0.0  ;;  %v1349_v54 = vadd.f32 %v4557_v4, %v1093_v8  ;;  %v945_v40 = vmul.f32 %v4251_v48, %v6226_v33  ;;  %v608_v21 = vmul.f32 %v4226_v39, %v6230_v56  ;;  %1826 = vmatmul.mubr.f32.gmra.mrb[8].mxu0 %v5035_v12  ;;  %v5057_v8 = vld [vmem:[%s6047_s5 + $0x28] sm:$0xff] }
 0x116   : > { %v1359_v34 = vadd.f32 %v6228_v45, %v1103_v29  ;;  %v1095_v19 = vadd.f32 %v935_v41, %v589_v5  ;;  %v618_v0 = vmul.f32 %v4226_v39, %v6231_v31  ;;  %3445 = vmatprep.subr.bf16.mxu0 %v3444_v37  ;;  %v954_v52 = vmul.f32 %v6214_v62, %v6232_v15  ;;  %v6234_v41 = vld [vmem:[#allocation30_spill] sm:$0xff] }
 0x117   : > { %v3476_v55 = vpack.c.bf16 %v1522_v23, %v1512_v43  ;;  %v1509_v50 = vmax.f32 %v1349_v54, 0.0  ;;  %v1105_v13 = vadd.f32 %v945_v40, %v599_v61  ;;  %1987 = vmatmul.mubr.f32.gmra.mrb[8].mxu1 %v5035_v12  ;;  %6233 = vst [vmem:[#allocation16_spill] sm:$0xff] %v5057_v8  ;;  %v964_v9 = vmul.f32 %v6214_v62, %v6234_v41 }
 0x118   : > { %v1519_v5 = vmax.f32 %v1359_v34, 0.0  ;;  %v1351_v29 = vadd.f32 %v4557_v4, %v1095_v19  ;;  %v610_v43 = vmul.f32 %v6216_v26, %v6230_v56  ;;  %1831 = vmatprep.mubr.f32.mxu0 %v6221_v3  ;;  %1992 = vmatprep.mubr.f32.mxu1 %v6221_v3  ;;  %v1114_v37 = vadd.f32 %v954_v52, %v608_v21 }
 0x119   : > { %3477 = vmatprep.subr.bf16.mxu1 %v3476_v55  ;;  %v1361_v61 = vadd.f32 %v6228_v45, %v1105_v13  ;;  %v620_v23 = vmul.f32 %v6216_v26, %v6231_v31  ;;  %v956_v54 = vmul.f32 %v6217_v59, %v6232_v15  ;;  %v1124_v19 = vadd.f32 %v964_v9, %v618_v0  ;;  %v5082_v9 = vld [vmem:[%s6047_s5 + $0x30] sm:$0xff] }
 0x11a   : > { %v3446_v40 = vpack.c.bf16 %v1519_v5, %v1509_v50  ;;  %v1511_v34 = vmax.f32 %v1351_v29, 0.0  ;;  %v966_v12 = vmul.f32 %v6217_v59, %v6234_v41  ;;  %1832 = vmatmul.mubr.f32.gmra.mrb[10].mxu0 %v5057_v8  ;;  %v1370_v55 = vadd.f32 %v4640_v27, %v1114_v37  ;;  %6235 = vst [vmem:[#allocation17_spill] sm:$0xff] %v5082_v9 }
 0x11b   : > { %v1521_v14 = vmax.f32 %v1361_v61, 0.0  ;;  %v1116_v4 = vadd.f32 %v956_v54, %v610_v43  ;;  %v607_v21 = vmul.f32 %v6218_v38, %v6230_v56  ;;  %1993 = vmatmul.mubr.f32.gmra.mrb[10].mxu1 %v5057_v8  ;;  %1837 = vmatprep.mubr.f32.mxu0 %v6221_v3  ;;  %v1380_v0 = vadd.f32 %v4638_v58, %v1124_v19  ;;  %v5105_v19 = vld [vmem:[%s6047_s5 + $0x38] sm:$0xff] }
 0x11c   : > { %3447 = vmatpush1.bf16.msra.mxu0 %v3446_v40  ;;  %v1126_v50 = vadd.f32 %v966_v12, %v620_v23  ;;  %v617_v13 = vmul.f32 %v6218_v38, %v6231_v31  ;;  %v953_v52 = vmul.f32 %v6220_v63, %v6232_v15  ;;  %v1530_v29 = vmax.f32 %v1370_v55, 0.0  ;;  %1998 = vmatprep.mubr.f32.mxu1 %v6221_v3 }
 0x11d   : > { %v3478_v5 = vpack.c.bf16 %v1521_v14, %v1511_v34  ;;  %v1372_v43 = vadd.f32 %v4640_v27, %v1116_v4  ;;  %v963_v61 = vmul.f32 %v6220_v63, %v6234_v41  ;;  %v1540_v37 = vmax.f32 %v1380_v0, 0.0  ;;  %6236 = vst [vmem:[#allocation27_spill] sm:$0xff] %v5105_v19 }
 0x11e   : > { %v1382_v54 = vadd.f32 %v4638_v58, %v1126_v50  ;;  %v1113_v40 = vadd.f32 %v953_v52, %v607_v21  ;;  %v609_v12 = vmul.f32 %v4248_v47, %v6230_v56  ;;  %1838 = vmatmul.mubr.f32.gmra.mrb[12].mxu0 %v5082_v9  ;;  %v619_v4 = vmul.f32 %v4248_v47, %v6231_v31 }
 0x11f   : > { %3479 = vmatpush1.bf16.msra.mxu1 %v3478_v5  ;;  %v1532_v23 = vmax.f32 %v1372_v43, 0.0  ;;  %v1123_v14 = vadd.f32 %v963_v61, %v617_v13  ;;  %v955_v34 = vmul.f32 %v4251_v48, %v6232_v15  ;;  %1843 = vmatprep.mubr.f32.mxu0 %v6221_v3  ;;  %v3448_v55 = vpack.c.bf16 %v1540_v37, %v1530_v29  ;;  %v6237_v5 = vld [vmem:[#allocation35_spill] sm:$0xff]  ;;  %v6238_v61 = vld [vmem:[#allocation34_spill] sm:$0xff] }
 0x120   : > { %v1542_v21 = vmax.f32 %v1382_v54, 0.0  ;;  %v1369_v0 = vadd.f32 %v4640_v27, %v1113_v40  ;;  %v965_v50 = vmul.f32 %v4251_v48, %v6234_v41  ;;  %1999 = vmatmul.mubr.f32.gmra.mrb[12].mxu1 %v5082_v9  ;;  %v628_v43 = vmul.f32 %v4226_v39, %v6237_v5  ;;  %v6239_v40 = vld [vmem:[#allocation37_spill] sm:$0xff] }
 0x121   : > { %v1379_v13 = vadd.f32 %v4638_v58, %v1123_v14  ;;  %v1115_v52 = vadd.f32 %v955_v34, %v609_v12  ;;  %v638_v8 = vmul.f32 %v4226_v39, %v6238_v61  ;;  %2004 = vmatprep.mubr.f32.mxu1 %v6221_v3  ;;  %3449 = vmatprep.subr.bf16.mxu0 %v3448_v55  ;;  %v6240_v14 = vld [vmem:[#allocation36_spill] sm:$0xff] }
 0x122   : > { %v3480_v29 = vpack.c.bf16 %v1542_v21, %v1532_v23  ;;  %v1529_v37 = vmax.f32 %v1369_v0, 0.0  ;;  %v1125_v54 = vadd.f32 %v965_v50, %v619_v4  ;;  %v974_v41 = vmul.f32 %v6214_v62, %v6239_v40  ;;  %1844 = vmatmul.mubr.f32.gmra.mrb[14].mxu0 %v5105_v19  ;;  %v5129_v23 = vld [vmem:[%s6047_s5 + $0x40] sm:$0xff] }
 0x123   : > { %v1539_v9 = vmax.f32 %v1379_v13, 0.0  ;;  %v1371_v12 = vadd.f32 %v4640_v27, %v1115_v52  ;;  %v984_v34 = vmul.f32 %v6214_v62, %v6240_v14  ;;  %v630_v15 = vmul.f32 %v6216_v26, %v6237_v5  ;;  %1849 = vmatprep.mubr.f32.mxu0 %v6221_v3  ;;  %6241 = vst [vmem:[#allocation19_spill] sm:$0xff] %v5129_v23 }
 0x124   : > { %3481 = vmatprep.subr.bf16.mxu1 %v3480_v29  ;;  %v1381_v4 = vadd.f32 %v4638_v58, %v1125_v54  ;;  %v1134_v55 = vadd.f32 %v974_v41, %v628_v43  ;;  %v640_v21 = vmul.f32 %v6216_v26, %v6238_v61  ;;  %v976_v0 = vmul.f32 %v6217_v59, %v6239_v40 }
 0x125   : > { %v3450_v50 = vpack.c.bf16 %v1539_v9, %v1529_v37  ;;  %v1531_v13 = vmax.f32 %v1371_v12, 0.0  ;;  %v1144_v52 = vadd.f32 %v984_v34, %v638_v8  ;;  %v986_v27 = vmul.f32 %v6217_v59, %v6240_v14  ;;  %2005 = vmatmul.mubr.f32.gmra.mrb[14].mxu1 %v5105_v19  ;;  %v6242_v9 = vld [vmem:[#allocation43_spill] sm:$0xff] }
 0x126   : > { %v1541_v45 = vmax.f32 %v1381_v4, 0.0  ;;  %v1390_v29 = vadd.f32 %v4724_v7, %v1134_v55  ;;  %v1136_v31 = vadd.f32 %v976_v0, %v630_v15  ;;  %v627_v41 = vmul.f32 %v6218_v38, %v6237_v5  ;;  %2010 = vmatprep.mubr.f32.mxu1 %v6221_v3  ;;  %1850 = vmatmul.mubr.f32.gmra.mrb[16].mxu0 %v5129_v23  ;;  %v5156_v55 = vld [vmem:[%s6047_s5 + $0x48] sm:$0xff] }
 0x127   : > { %3451 = vmatpush1.bf16.msra.mxu0 %v3450_v50  ;;  %v1400_v43 = vadd.f32 %v6242_v9, %v1144_v52  ;;  %v1146_v8 = vadd.f32 %v986_v27, %v640_v21  ;;  %v637_v37 = vmul.f32 %v6218_v38, %v6238_v61  ;;  %v973_v54 = vmul.f32 %v6220_v63, %v6239_v40 }
 0x128   : > { %v3482_v12 = vpack.c.bf16 %v1541_v45, %v1531_v13  ;;  %v1550_v34 = vmax.f32 %v1390_v29, 0.0  ;;  %v1392_v15 = vadd.f32 %v4724_v7, %v1136_v31  ;;  %v983_v4 = vmul.f32 %v6220_v63, %v6240_v14  ;;  %1855 = vmatprep.mubr.f32.mxu0 %v6221_v3  ;;  %6243 = vst [vmem:[#allocation24_spill] sm:$0xff] %v5156_v55 }
 0x129   : > { %v1560_v27 = vmax.f32 %v1400_v43, 0.0  ;;  %v1402_v21 = vadd.f32 %v6242_v9, %v1146_v8  ;;  %v1133_v0 = vadd.f32 %v973_v54, %v627_v41  ;;  %v629_v45 = vmul.f32 %v4248_v47, %v6237_v5  ;;  %2011 = vmatmul.mubr.f32.gmra.mrb[16].mxu1 %v5129_v23 }
 0x12a   : > { %3483 = vmatpush1.bf16.msra.mxu1 %v3482_v12  ;;  %v1552_v31 = vmax.f32 %v1392_v15, 0.0  ;;  %v1143_v50 = vadd.f32 %v983_v4, %v637_v37  ;;  %v639_v13 = vmul.f32 %v4248_v47, %v6238_v61  ;;  %v975_v52 = vmul.f32 %v4251_v48, %v6239_v40  ;;  %2016 = vmatprep.mubr.f32.mxu1 %v6221_v3  ;;  %v6244_v12 = vld [vmem:[#allocation40_spill] sm:$0xff]  ;;  %v6245_v4 = vld [vmem:[#allocation39_spill] sm:$0xff] }
 0x12b   : > { %v3452_v29 = vpack.c.bf16 %v1560_v27, %v1550_v34  ;;  %v1562_v43 = vmax.f32 %v1402_v21, 0.0  ;;  %v1389_v41 = vadd.f32 %v4724_v7, %v1133_v0  ;;  %v985_v8 = vmul.f32 %v4251_v48, %v6240_v14  ;;  %1856 = vmatmul.mubr.f32.gmra.mrb[18].mxu0 %v5156_v55  ;;  %v6246_v0 = vld [vmem:[#allocation42_spill] sm:$0xff]  ;;  %v6248_v14 = vld [vmem:[#allocation41_spill] sm:$0xff] }
 0x12c   : > { %v1399_v54 = vadd.f32 %v6242_v9, %v1143_v50  ;;  %v1135_v37 = vadd.f32 %v975_v52, %v629_v45  ;;  %v648_v15 = vmul.f32 %v4226_v39, %v6244_v12  ;;  %v658_v23 = vmul.f32 %v4226_v39, %v6245_v4  ;;  %1861 = vmatprep.mubr.f32.mxu0 %v6221_v3  ;;  %v5183_v45 = vld [vmem:[%s6047_s5 + $0x50] sm:$0xff] }
 0x12d   : > { %3453 = vmatprep.subr.bf16.mxu0 %v3452_v29  ;;  %v3484_v34 = vpack.c.bf16 %v1562_v43, %v1552_v31  ;;  %v1549_v27 = vmax.f32 %v1389_v41, 0.0  ;;  %v1145_v21 = vadd.f32 %v985_v8, %v639_v13  ;;  %v994_v19 = vmul.f32 %v6214_v62, %v6246_v0  ;;  %2017 = vmatmul.mubr.f32.gmra.mrb[18].mxu1 %v5156_v55 }
 0x12e   : > { %6247 = vst [vmem:[#allocation23_spill] sm:$0xff] %v5183_v45  ;;  %v1559_v50 = vmax.f32 %v1399_v54, 0.0  ;;  %v1391_v52 = vadd.f32 %v4724_v7, %v1135_v37  ;;  %v1004_v40 = vmul.f32 %v6214_v62, %v6248_v14  ;;  %v650_v31 = vmul.f32 %v6216_v26, %v6244_v12  ;;  %2022 = vmatprep.mubr.f32.mxu1 %v6221_v3 }
 0x12f   : > { %3485 = vmatprep.subr.bf16.mxu1 %v3484_v34  ;;  %v1401_v13 = vadd.f32 %v6242_v9, %v1145_v21  ;;  %v1154_v29 = vadd.f32 %v994_v19, %v648_v15  ;;  %v660_v43 = vmul.f32 %v6216_v26, %v6245_v4  ;;  %v996_v41 = vmul.f32 %v6217_v59, %v6246_v0 }
 0x130   : > { %v3454_v8 = vpack.c.bf16 %v1559_v50, %v1549_v27  ;;  %v1551_v54 = vmax.f32 %v1391_v52, 0.0  ;;  %v1164_v37 = vadd.f32 %v1004_v40, %v658_v23  ;;  %v1006_v55 = vmul.f32 %v6217_v59, %v6248_v14  ;;  %1862 = vmatmul.mubr.f32.gmra.mrb[20].mxu0 %v5183_v45  ;;  %v5207_v40 = vld [vmem:[%s6047_s5 + $0x58] sm:$0xff] }
 0x131   : > { %v1561_v7 = vmax.f32 %v1401_v13, 0.0  ;;  %v1410_v34 = vadd.f32 %v4807_v57, %v1154_v29  ;;  %v1156_v61 = vadd.f32 %v996_v41, %v650_v31  ;;  %v647_v19 = vmul.f32 %v6218_v38, %v6244_v12  ;;  %2023 = vmatmul.mubr.f32.gmra.mrb[20].mxu1 %v5183_v45  ;;  %1867 = vmatprep.mubr.f32.mxu0 %v6221_v3 }
 0x132   : > { %6249 = vst [vmem:[#allocation26_spill] sm:$0xff] %v5207_v40  ;;  %3455 = vmatpush1.bf16.msra.mxu0 %v3454_v8  ;;  %v1420_v23 = vadd.f32 %v4805_v6, %v1164_v37  ;;  %v1166_v15 = vadd.f32 %v1006_v55, %v660_v43  ;;  %v657_v27 = vmul.f32 %v6218_v38, %v6245_v4  ;;  %v5230_v37 = vld [vmem:[%s6047_s5 + $0x60] sm:$0xff] }
 0x133   : > { %v993_v21 = vmul.f32 %v6220_v63, %v6246_v0  ;;  %v3486_v50 = vpack.c.bf16 %v1561_v7, %v1551_v54  ;;  %v1570_v52 = vmax.f32 %v1410_v34, 0.0  ;;  %v1412_v31 = vadd.f32 %v4807_v57, %v1156_v61  ;;  %2028 = vmatprep.mubr.f32.mxu1 %v6221_v3 }
 0x134   : > { %v1003_v13 = vmul.f32 %v6220_v63, %v6248_v14  ;;  %v1580_v29 = vmax.f32 %v1420_v23, 0.0  ;;  %v1422_v41 = vadd.f32 %v4805_v6, %v1166_v15  ;;  %v649_v55 = vmul.f32 %v4248_v47, %v6244_v12  ;;  %1868 = vmatmul.mubr.f32.gmra.mrb[22].mxu0 %v5207_v40 }
 0x135   : > { %v1153_v8 = vadd.f32 %v993_v21, %v647_v19  ;;  %3487 = vmatpush1.bf16.msra.mxu1 %v3486_v50  ;;  %v1572_v43 = vmax.f32 %v1412_v31, 0.0  ;;  %v659_v61 = vmul.f32 %v4248_v47, %v6245_v4  ;;  %v995_v54 = vmul.f32 %v4251_v48, %v6246_v0  ;;  %1873 = vmatprep.mubr.f32.mxu0 %v6221_v3  ;;  %v6250_v50 = vld [vmem:[#allocation46_spill] sm:$0xff] }
 0x136   : > { %v1163_v7 = vadd.f32 %v1003_v13, %v657_v27  ;;  %v3456_v34 = vpack.c.bf16 %v1580_v29, %v1570_v52  ;;  %v1582_v19 = vmax.f32 %v1422_v41, 0.0  ;;  %v1005_v15 = vmul.f32 %v4251_v48, %v6248_v14  ;;  %2029 = vmatmul.mubr.f32.gmra.mrb[22].mxu1 %v5207_v40  ;;  %v6251_v13 = vld [vmem:[#allocation45_spill] sm:$0xff] }
 0x137   : > { %v1409_v23 = vadd.f32 %v4807_v57, %v1153_v8  ;;  %v1155_v21 = vadd.f32 %v995_v54, %v649_v55  ;;  %v668_v31 = vmul.f32 %v4226_v39, %v6250_v50  ;;  %v678_v45 = vmul.f32 %v4226_v39, %v6251_v13  ;;  %2034 = vmatprep.mubr.f32.mxu1 %v6221_v3  ;;  %v6252_v8 = vld [vmem:[#allocation47_spill] sm:$0xff] }
 0x138   : > { %v1419_v27 = vadd.f32 %v4805_v6, %v1163_v7  ;;  %3457 = vmatprep.subr.bf16.mxu0 %v3456_v34  ;;  %v3488_v52 = vpack.c.bf16 %v1582_v19, %v1572_v43  ;;  %v1165_v41 = vadd.f32 %v1005_v15, %v659_v61  ;;  %v1014_v14 = vmul.f32 %v6214_v62, %v6252_v8  ;;  %v5254_v43 = vld [vmem:[%s6047_s5 + $0x68] sm:$0xff] }
 0x139   : > { %v1569_v29 = vmax.f32 %v1409_v23, 0.0  ;;  %1874 = vmatmul.mubr.f32.gmra.mrb[24].mxu0 %v5230_v37  ;;  %v1411_v55 = vadd.f32 %v4807_v57, %v1155_v21  ;;  %v1024_v7 = vmul.f32 %v6214_v62, %v4768_v42  ;;  %v670_v54 = vmul.f32 %v6216_v26, %v6250_v50 }
 0x13a   : > { %v1579_v40 = vmax.f32 %v1419_v27, 0.0  ;;  %1879 = vmatprep.mubr.f32.mxu0 %v6221_v3  ;;  %3489 = vmatprep.subr.bf16.mxu1 %v3488_v52  ;;  %v1421_v61 = vadd.f32 %v4805_v6, %v1165_v41  ;;  %v1174_v34 = vadd.f32 %v1014_v14, %v668_v31  ;;  %v680_v19 = vmul.f32 %v6216_v26, %v6251_v13 }
 0x13b   : > { %v1016_v23 = vmul.f32 %v6217_v59, %v6252_v8  ;;  %v1571_v27 = vmax.f32 %v1411_v55, 0.0  ;;  %v1184_v21 = vadd.f32 %v1024_v7, %v678_v45  ;;  %v1026_v57 = vmul.f32 %v6217_v59, %v4768_v42  ;;  %2035 = vmatmul.mubr.f32.gmra.mrb[24].mxu1 %v5230_v37 }
 0x13c   : > { %v3458_v15 = vpack.c.bf16 %v1579_v40, %v1569_v29  ;;  %v1581_v0 = vmax.f32 %v1421_v61, 0.0  ;;  %v1430_v52 = vadd.f32 %v4884_v16, %v1174_v34  ;;  %v667_v14 = vmul.f32 %v6218_v38, %v6250_v50  ;;  %2040 = vmatprep.mubr.f32.mxu1 %v6221_v3  ;;  %v5281_v61 = vld [vmem:[%s6047_s5 + $0x70] sm:$0xff] }
 0x13d   : > { %v1176_v4 = vadd.f32 %v1016_v23, %v670_v54  ;;  %1880 = vmatmul.mubr.f32.gmra.mrb[26].mxu0 %v5254_v43  ;;  %v1440_v40 = vadd.f32 %v4882_v28, %v1184_v21  ;;  %v1186_v45 = vadd.f32 %v1026_v57, %v680_v19  ;;  %v677_v31 = vmul.f32 %v6218_v38, %v6251_v13 }
 0x13e   : > { %3459 = vmatpush1.bf16.msra.mxu0 %v3458_v15  ;;  %v1013_v29 = vmul.f32 %v6220_v63, %v6252_v8  ;;  %v3490_v41 = vpack.c.bf16 %v1581_v0, %v1571_v27  ;;  %v1590_v55 = vmax.f32 %v1430_v52, 0.0  ;;  %v1023_v54 = vmul.f32 %v6220_v63, %v4768_v42  ;;  %1885 = vmatprep.mubr.f32.mxu0 %v6221_v3 }
 0x13f   : > { %v1432_v7 = vadd.f32 %v4884_v16, %v1176_v4  ;;  %6253 = vst [vmem:[#allocation25_spill] sm:$0xff] %v5281_v61  ;;  %v1600_v57 = vmax.f32 %v1440_v40, 0.0  ;;  %v1442_v34 = vadd.f32 %v4882_v28, %v1186_v45  ;;  %v669_v0 = vmul.f32 %v4248_v47, %v6250_v50  ;;  %2041 = vmatmul.mubr.f32.gmra.mrb[26].mxu1 %v5254_v43 }
 0x140   : > { %v1173_v19 = vadd.f32 %v1013_v29, %v667_v14  ;;  %3491 = vmatpush1.bf16.msra.mxu1 %v3490_v41  ;;  %v1183_v23 = vadd.f32 %v1023_v54, %v677_v31  ;;  %v679_v15 = vmul.f32 %v4248_v47, %v6251_v13  ;;  %v1015_v27 = vmul.f32 %v4251_v48, %v6252_v8 }
 0x141   : > { %v1592_v4 = vmax.f32 %v1432_v7, 0.0  ;;  %2046 = vmatprep.mubr.f32.mxu1 %v6221_v3  ;;  %v3460_v21 = vpack.c.bf16 %v1600_v57, %v1590_v55  ;;  %v1602_v52 = vmax.f32 %v1442_v34, 0.0  ;;  %v1025_v40 = vmul.f32 %v4251_v48, %v4768_v42  ;;  %1886 = vmatmul.mubr.f32.gmra.mrb[28].mxu0 %v5281_v61  ;;  %v6254_v57 = vld [vmem:[#allocation49_spill] sm:$0xff] }
 0x142   : > { %v1429_v14 = vadd.f32 %v4884_v16, %v1173_v19  ;;  %v1439_v45 = vadd.f32 %v4882_v28, %v1183_v23  ;;  %v1175_v31 = vadd.f32 %v1015_v27, %v669_v0  ;;  %v688_v29 = vmul.f32 %v4226_v39, %v4835_v53  ;;  %1891 = vmatprep.mubr.f32.mxu0 %v6221_v3  ;;  %v5308_v19 = vld [vmem:[%s6047_s5 + $0x78] sm:$0xff] }
 0x143   : > { %v698_v41 = vmul.f32 %v4226_v39, %v4833_v51  ;;  %3461 = vmatprep.subr.bf16.mxu0 %v3460_v21  ;;  %v3492_v55 = vpack.c.bf16 %v1602_v52, %v1592_v4  ;;  %v1185_v54 = vadd.f32 %v1025_v40, %v679_v15  ;;  %v1034_v34 = vmul.f32 %v6214_v62, %v6254_v57 }
 0x144   : > { %v1589_v7 = vmax.f32 %v1429_v14, 0.0  ;;  %2047 = vmatmul.mubr.f32.gmra.mrb[28].mxu1 %v5281_v61  ;;  %6255 = vst [vmem:[#allocation29_spill] sm:$0xff] %v5308_v19  ;;  %v1599_v0 = vmax.f32 %v1439_v45, 0.0  ;;  %v1431_v23 = vadd.f32 %v4884_v16, %v1175_v31  ;;  %v1044_v39 = vmul.f32 %v6214_v62, %v4851_v20 }
 0x145   : > { %v690_v4 = vmul.f32 %v6216_v26, %v4835_v53  ;;  %2052 = vmatprep.mubr.f32.mxu1 %v6221_v3  ;;  %3493 = vmatprep.subr.bf16.mxu1 %v3492_v55  ;;  %v1441_v15 = vadd.f32 %v4882_v28, %v1185_v54  ;;  %v1194_v27 = vadd.f32 %v1034_v34, %v688_v29 }
 0x146   : > { %v700_v21 = vmul.f32 %v6216_v26, %v4833_v51  ;;  %v1036_v52 = vmul.f32 %v6217_v59, %v6254_v57  ;;  %v3462_v14 = vpack.c.bf16 %v1599_v0, %v1589_v7  ;;  %v1591_v40 = vmax.f32 %v1431_v23, 0.0  ;;  %1892 = vmatmul.mubr.f32.gmra.mrb[30].mxu0 %v5308_v19 }
 0x147   : > { %v1204_v45 = vadd.f32 %v1044_v39, %v698_v41  ;;  %v1046_v62 = vmul.f32 %v6217_v59, %v4851_v20  ;;  %v1601_v31 = vmax.f32 %v1441_v15, 0.0  ;;  %v1450_v55 = vadd.f32 %v4904_v32, %v1194_v27  ;;  %2123 = vmatprep.mubr.f32.mxu0 %v6221_v3 }
 0x148   : > { %v1196_v61 = vadd.f32 %v1036_v52, %v690_v4  ;;  %v687_v29 = vmul.f32 %v6218_v38, %v4835_v53  ;;  %2053 = vmatmul.mubr.f32.gmra.mrb[30].mxu1 %v5308_v19  ;;  %3463 = vmatpush1.bf16.msra.mxu0 %v3462_v14  ;;  %v697_v59 = vmul.f32 %v6218_v38, %v4833_v51 }
 0x149   : > { %v1460_v26 = vadd.f32 %v4902_v11, %v1204_v45  ;;  %v1206_v41 = vadd.f32 %v1046_v62, %v700_v21  ;;  %v1033_v7 = vmul.f32 %v6220_v63, %v6254_v57  ;;  %v3494_v54 = vpack.c.bf16 %v1601_v31, %v1591_v40  ;;  %2284 = vmatprep.mubr.f32.mxu1 %v6221_v3 }
 0x14a   : > { %v1610_v34 = vmax.f32 %v1450_v55, 0.0  ;;  %v1452_v0 = vadd.f32 %v4904_v32, %v1196_v61  ;;  %v1043_v23 = vmul.f32 %v6220_v63, %v4851_v20  ;;  %v689_v27 = vmul.f32 %v4248_v47, %v4835_v53  ;;  %v6256_v55 = vld [vmem:[#allocation18_spill] sm:$0xff] }
 0x14b   : > { %v1620_v39 = vmax.f32 %v1460_v26, 0.0  ;;  %v1462_v4 = vadd.f32 %v4902_v11, %v1206_v41  ;;  %v1193_v15 = vadd.f32 %v1033_v7, %v687_v29  ;;  %3495 = vmatpush1.bf16.msra.mxu1 %v3494_v54  ;;  %v699_v52 = vmul.f32 %v4248_v47, %v4833_v51  ;;  %v6257_v29 = vld [vmem:[#allocation20_spill] sm:$0xff]  ;;  %v6258_v41 = vld [vmem:[#allocation21_spill] sm:$0xff] }
 0x14c   : > { %v1612_v38 = vmax.f32 %v1452_v0, 0.0  ;;  %v1203_v21 = vadd.f32 %v1043_v23, %v697_v59  ;;  %v1035_v61 = vmul.f32 %v4251_v48, %v6254_v57  ;;  %v1045_v45 = vmul.f32 %v4251_v48, %v4851_v20  ;;  %v6259_v0 = vld [vmem:[#allocation11_spill] sm:$0xff]  ;;  %v6260_v48 = vld [vmem:[#allocation12_spill] sm:$0xff] }
 0x14d   : > { %v3464_v63 = vpack.c.bf16 %v1620_v39, %v1610_v34  ;;  %v1622_v14 = vmax.f32 %v1462_v4, 0.0  ;;  %v1449_v40 = vadd.f32 %v4904_v32, %v1193_v15  ;;  %v552_v26 = vmul.f32 %v6257_v29, %v6256_v55  ;;  %v3746_v34 = vld [vmem:[%s4151_s27 + $0x20] sm:$0x77] }
 0x14e   : > { %v1459_v62 = vadd.f32 %v4902_v11, %v1203_v21  ;;  %v1195_v31 = vadd.f32 %v1035_v61, %v689_v27  ;;  %v562_v59 = vmul.f32 %v6257_v29, %v6258_v41  ;;  %v1205_v54 = vadd.f32 %v1045_v45, %v699_v52  ;;  %v6261_v21 = vld [vmem:[#allocation13_spill] sm:$0xff] }
 0x14f   : > { %3465 = vmatprep.subr.bf16.mxu0 %v3464_v63  ;;  %v3496_v47 = vpack.c.bf16 %v1622_v14, %v1612_v38  ;;  %v1609_v7 = vmax.f32 %v1449_v40, 0.0  ;;  %v838_v23 = vrot.slane %v3746_v34, %v6259_v0  ;;  %v488_v15 = vrot.slane %v3746_v34, %v6260_v48 }
 0x150   : > { %v1619_v39 = vmax.f32 %v1459_v62, 0.0  ;;  %v1451_v4 = vadd.f32 %v4904_v32, %v1195_v31  ;;  %v834_v27 = vrot.slane %v3746_v34, %v6261_v21  ;;  %v1461_v61 = vadd.f32 %v4902_v11, %v1205_v54 }
 0x151   : > { %3497 = vmatprep.subr.bf16.mxu1 %v3496_v47  ;;  %v5360_v19 = vrot.slane %v838_v23, %v6261_v21  ;;  %v572_v38 = vmul.f32 %v6257_v29, %v4312_v25  ;;  %v582_v52 = vmul.f32 %v6257_v29, %v4310_v24  ;;  %v5367_v40 = vrot.slane %v488_v15, %v6260_v48 }
 0x152   : > { %v3466_v63 = vpack.c.bf16 %v1619_v39, %v1609_v7  ;;  %v1611_v14 = vmax.f32 %v1451_v4, 0.0  ;;  %v5370_v45 = vrot.slane %v834_v27, %v6261_v21  ;;  %v1621_v62 = vmax.f32 %v1461_v61, 0.0 }
 0x153   : > { %v898_v31 = vmul.f32 %v5360_v19, %v4240_v44  ;;  %v908_v47 = vmul.f32 %v5360_v19, %v4280_v2  ;;  %v918_v54 = vmul.f32 %v5360_v19, %v4350_v10  ;;  %v551_v7 = vmul.f32 %v5367_v40, %v6256_v55 }
 0x154   : > { %3467 = vmatpush1.bf16.msra.mxu0 %v3466_v63  ;;  %v561_v34 = vmul.f32 %v5367_v40, %v6258_v41  ;;  %v897_v0 = vmul.f32 %v5370_v45, %v4240_v44  ;;  %v907_v23 = vmul.f32 %v5370_v45, %v4280_v2  ;;  %v3498_v39 = vpack.c.bf16 %v1621_v62, %v1611_v14 }
 0x155   : > { %v1058_v4 = vadd.f32 %v898_v31, %v552_v26  ;;  %v1068_v48 = vadd.f32 %v908_v47, %v562_v59  ;;  %v928_v15 = vmul.f32 %v5360_v19, %v6215_v30  ;;  %v1078_v61 = vadd.f32 %v918_v54, %v572_v38 }
 0x156   : > { %v1057_v21 = vadd.f32 %v897_v0, %v551_v7  ;;  %v1067_v27 = vadd.f32 %v907_v23, %v561_v34  ;;  %v571_v55 = vmul.f32 %v5367_v40, %v4312_v25  ;;  %3499 = vmatpush1.bf16.msra.mxu1 %v3498_v39  ;;  %v581_v38 = vmul.f32 %v5367_v40, %v4310_v24 }
 0x157   : > { %v1314_v41 = vadd.f32 %v4394_v49, %v1058_v4  ;;  %v1324_v44 = vadd.f32 %v4392_v1, %v1068_v48  ;;  %2124 = vmatmul.mubr.f32.vlgmr.msra.gmra.mrb[32].mxu0 %v4931_v17  ;;  %v1088_v2 = vadd.f32 %v928_v15, %v582_v52  ;;  %v1334_v63 = vadd.f32 %v4473_v18, %v1078_v61 }
 0x158   : > { %v1313_v26 = vadd.f32 %v4394_v49, %v1057_v21  ;;  %v1323_v59 = vadd.f32 %v4392_v1, %v1067_v27  ;;  %2129 = vmatprep.mubr.f32.mxu0 %v6221_v3  ;;  %v917_v31 = vmul.f32 %v5370_v45, %v4350_v10  ;;  %v927_v1 = vmul.f32 %v5370_v45, %v6215_v30 }
 0x159   : > { %v1474_v25 = vmax.f32 %v1314_v41, 0.0  ;;  %v1484_v14 = vmax.f32 %v1324_v44, 0.0  ;;  %v1344_v62 = vadd.f32 %v6219_v35, %v1088_v2  ;;  %2285 = vmatmul.mubr.f32.vlgmr.msra.gmra.mrb[32].mxu1 %v4931_v17  ;;  %v1494_v47 = vmax.f32 %v1334_v63, 0.0  ;;  %v6262_v44 = vld [vmem:[#allocation33_spill] sm:$0xff]  ;;  %v6263_v2 = vld [vmem:[#allocation14_spill] sm:$0xff] }
 0x15a   : > { %v1473_v52 = vmax.f32 %v1313_v26, 0.0  ;;  %v1483_v49 = vmax.f32 %v1323_v59, 0.0  ;;  %2290 = vmatprep.mubr.f32.mxu1 %v6221_v3  ;;  %v1077_v24 = vadd.f32 %v917_v31, %v571_v55  ;;  %v592_v34 = vmul.f32 %v6257_v29, %v6223_v36  ;;  %v6265_v59 = vld [vmem:[#allocation32_spill] sm:$0xff]  ;;  %v6267_v31 = vld [vmem:[#allocation30_spill] sm:$0xff] }
 0x15b   : > { %v3500_v54 = vpack.c.bf16 %v1484_v14, %v1474_v25  ;;  %v1504_v7 = vmax.f32 %v1344_v62, 0.0  ;;  %2130 = vmatmul.mubr.f32.gmra.mrb[34].mxu0 %v4959_v46  ;;  %v1087_v10 = vadd.f32 %v927_v1, %v581_v38  ;;  %v602_v17 = vmul.f32 %v6257_v29, %v6224_v22  ;;  %v6266_v14 = vld [vmem:[#allocation31_spill] sm:$0xff] }
 0x15c   : > { %v3502_v0 = vpack.c.bf16 %v1483_v49, %v1473_v52  ;;  %v938_v23 = vmul.f32 %v5360_v19, %v6225_v60  ;;  %2135 = vmatprep.mubr.f32.mxu0 %v6221_v3  ;;  %v1333_v39 = vadd.f32 %v4473_v18, %v1077_v24  ;;  %v948_v4 = vmul.f32 %v5360_v19, %v6226_v33 }
 0x15d   : > { %3501 = vmatprep.subr.bf16.mxu0 %v3500_v54  ;;  %v3504_v30 = vpack.c.bf16 %v1504_v7, %v1494_v47  ;;  %v591_v48 = vmul.f32 %v5367_v40, %v6223_v36  ;;  %2291 = vmatmul.mubr.f32.gmra.mrb[34].mxu1 %v4959_v46  ;;  %v1343_v15 = vadd.f32 %v6219_v35, %v1087_v10 }
 0x15e   : > { %3503 = vmatpush1.bf16.msra.mxu0 %v3502_v0  ;;  %v1098_v21 = vadd.f32 %v938_v23, %v592_v34  ;;  %v601_v27 = vmul.f32 %v5367_v40, %v6224_v22  ;;  %v1493_v61 = vmax.f32 %v1333_v39, 0.0  ;;  %v1108_v55 = vadd.f32 %v948_v4, %v602_v17  ;;  %2296 = vmatprep.mubr.f32.mxu1 %v6221_v3  ;;  %v6264_v22 = vld [vmem:[#allocation28_spill] sm:$0xff]  ;;  %v6269_v4 = vld [vmem:[#allocation22_spill] sm:$0xff] }
 0x15f   : > { %3505 = vmatprep.subr.bf16.mxu0 %v3504_v30  ;;  %v937_v18 = vmul.f32 %v5370_v45, %v6225_v60  ;;  %v947_v36 = vmul.f32 %v5370_v45, %v6226_v33  ;;  %v1503_v41 = vmax.f32 %v1343_v15, 0.0  ;;  %2136 = vmatmul.mubr.f32.gmra.mrb[36].mxu0 %v6263_v2  ;;  %v612_v35 = vmul.f32 %v6257_v29, %v6230_v56  ;;  %v6268_v30 = vld [vmem:[#allocation38_spill] sm:$0xff] }
 0x160   : > { %v1354_v46 = vadd.f32 %v6262_v44, %v1098_v21  ;;  %v622_v26 = vmul.f32 %v6257_v29, %v6264_v22  ;;  %v1364_v63 = vadd.f32 %v6265_v59, %v1108_v55  ;;  %v958_v60 = vmul.f32 %v5360_v19, %v6266_v14  ;;  %2141 = vmatprep.mubr.f32.mxu0 %v6221_v3 }
 0x161   : > { %v1097_v38 = vadd.f32 %v937_v18, %v591_v48  ;;  %v1107_v25 = vadd.f32 %v947_v36, %v601_v27  ;;  %v3506_v33 = vpack.c.bf16 %v1503_v41, %v1493_v61  ;;  %2297 = vmatmul.mubr.f32.gmra.mrb[36].mxu1 %v6263_v2  ;;  %v968_v52 = vmul.f32 %v5360_v19, %v6267_v31  ;;  %v6270_v18 = vld [vmem:[#allocation34_spill] sm:$0xff]  ;;  %v6271_v41 = vld [vmem:[#allocation37_spill] sm:$0xff] }
 0x162   : > { %v1514_v62 = vmax.f32 %v1354_v46, 0.0  ;;  %v611_v49 = vmul.f32 %v5367_v40, %v6230_v56  ;;  %v1524_v47 = vmax.f32 %v1364_v63, 0.0  ;;  %v1118_v7 = vadd.f32 %v958_v60, %v612_v35  ;;  %2302 = vmatprep.mubr.f32.mxu1 %v6221_v3 }
 0x163   : > { %v1353_v1 = vadd.f32 %v6262_v44, %v1097_v38  ;;  %v1363_v54 = vadd.f32 %v6265_v59, %v1107_v25  ;;  %3507 = vmatpush1.bf16.msra.mxu0 %v3506_v33  ;;  %v1128_v24 = vadd.f32 %v968_v52, %v622_v26  ;;  %v621_v34 = vmul.f32 %v5367_v40, %v6264_v22  ;;  %v6272_v22 = vld [vmem:[#allocation36_spill] sm:$0xff] }
 0x164   : > { %v957_v0 = vmul.f32 %v5370_v45, %v6266_v14  ;;  %v967_v10 = vmul.f32 %v5370_v45, %v6267_v31  ;;  %v3508_v56 = vpack.c.bf16 %v1524_v47, %v1514_v62  ;;  %v1374_v39 = vadd.f32 %v6268_v30, %v1118_v7  ;;  %2142 = vmatmul.mubr.f32.gmra.mrb[38].mxu0 %v6269_v4  ;;  %v6273_v62 = vld [vmem:[#allocation15_spill] sm:$0xff]  ;;  %v6274_v31 = vld [vmem:[#allocation44_spill] sm:$0xff] }
 0x165   : > { %v1513_v17 = vmax.f32 %v1353_v1, 0.0  ;;  %v1523_v23 = vmax.f32 %v1363_v54, 0.0  ;;  %v1384_v48 = vadd.f32 %v4638_v58, %v1128_v24  ;;  %2303 = vmatmul.mubr.f32.gmra.mrb[38].mxu1 %v6269_v4  ;;  %v632_v27 = vmul.f32 %v6257_v29, %v6237_v5  ;;  %2147 = vmatprep.mubr.f32.mxu0 %v6221_v3  ;;  %v6275_v7 = vld [vmem:[#allocation39_spill] sm:$0xff] }
 0x166   : > { %v1117_v15 = vadd.f32 %v957_v0, %v611_v49  ;;  %v1127_v21 = vadd.f32 %v967_v10, %v621_v34  ;;  %3509 = vmatprep.subr.bf16.mxu0 %v3508_v56  ;;  %v1534_v55 = vmax.f32 %v1374_v39, 0.0  ;;  %v642_v36 = vmul.f32 %v6257_v29, %v6270_v18  ;;  %2308 = vmatprep.mubr.f32.mxu1 %v6221_v3  ;;  %v6276_v34 = vld [vmem:[#allocation42_spill] sm:$0xff] }
 0x167   : > { %v3510_v61 = vpack.c.bf16 %v1523_v23, %v1513_v17  ;;  %v978_v44 = vmul.f32 %v5360_v19, %v6271_v41  ;;  %v1544_v46 = vmax.f32 %v1384_v48, 0.0  ;;  %v988_v26 = vmul.f32 %v5360_v19, %v6272_v22  ;;  %v6277_v23 = vld [vmem:[#allocation41_spill] sm:$0xff]  ;;  %v6278_v48 = vld [vmem:[#allocation16_spill] sm:$0xff] }
 0x168   : > { %v1373_v2 = vadd.f32 %v6268_v30, %v1117_v15  ;;  %v1383_v35 = vadd.f32 %v4638_v58, %v1127_v21  ;;  %v631_v63 = vmul.f32 %v5367_v40, %v6237_v5  ;;  %v641_v38 = vmul.f32 %v5367_v40, %v6270_v18  ;;  %2148 = vmatmul.mubr.f32.gmra.mrb[40].mxu0 %v6273_v62 }
 0x169   : > { %3511 = vmatpush1.bf16.msra.mxu0 %v3510_v61  ;;  %v1138_v59 = vadd.f32 %v978_v44, %v632_v27  ;;  %v977_v25 = vmul.f32 %v5370_v45, %v6271_v41  ;;  %v3512_v14 = vpack.c.bf16 %v1544_v46, %v1534_v55  ;;  %v1148_v58 = vadd.f32 %v988_v26, %v642_v36  ;;  %v6279_v41 = vld [vmem:[#allocation48_spill] sm:$0xff] }
 0x16a   : > { %v1533_v60 = vmax.f32 %v1373_v2, 0.0  ;;  %v1543_v33 = vmax.f32 %v1383_v35, 0.0  ;;  %2309 = vmatmul.mubr.f32.gmra.mrb[40].mxu1 %v6273_v62  ;;  %v987_v49 = vmul.f32 %v5370_v45, %v6272_v22  ;;  %v652_v47 = vmul.f32 %v6257_v29, %v6244_v12  ;;  %2153 = vmatprep.mubr.f32.mxu0 %v6221_v3 }
 0x16b   : > { %v1394_v52 = vadd.f32 %v6274_v31, %v1138_v59  ;;  %v1137_v5 = vadd.f32 %v977_v25, %v631_v63  ;;  %3513 = vmatprep.subr.bf16.mxu0 %v3512_v14  ;;  %v1404_v54 = vadd.f32 %v6242_v9, %v1148_v58  ;;  %v662_v24 = vmul.f32 %v6257_v29, %v6275_v7  ;;  %v6280_v25 = vld [vmem:[#allocation17_spill] sm:$0xff] }
 0x16c   : > { %v3514_v1 = vpack.c.bf16 %v1543_v33, %v1533_v60  ;;  %v998_v0 = vmul.f32 %v5360_v19, %v6276_v34  ;;  %v1147_v56 = vadd.f32 %v987_v49, %v641_v38  ;;  %v1008_v30 = vmul.f32 %v5360_v19, %v6277_v23  ;;  %2314 = vmatprep.mubr.f32.mxu1 %v6221_v3 }
 0x16d   : > { %v1554_v10 = vmax.f32 %v1394_v52, 0.0  ;;  %v1393_v17 = vadd.f32 %v6274_v31, %v1137_v5  ;;  %v1564_v39 = vmax.f32 %v1404_v54, 0.0  ;;  %v651_v15 = vmul.f32 %v5367_v40, %v6244_v12  ;;  %2154 = vmatmul.mubr.f32.gmra.mrb[42].mxu0 %v6278_v48 }
 0x16e   : > { %3515 = vmatpush1.bf16.msra.mxu0 %v3514_v1  ;;  %v1158_v4 = vadd.f32 %v998_v0, %v652_v47  ;;  %2315 = vmatmul.mubr.f32.gmra.mrb[42].mxu1 %v6278_v48  ;;  %v661_v21 = vmul.f32 %v5367_v40, %v6275_v7  ;;  %v1403_v27 = vadd.f32 %v6242_v9, %v1147_v56 }
 0x16f   : > { %v1553_v61 = vmax.f32 %v1393_v17, 0.0  ;;  %v1168_v55 = vadd.f32 %v1008_v30, %v662_v24  ;;  %v997_v18 = vmul.f32 %v5370_v45, %v6276_v34  ;;  %2320 = vmatprep.mubr.f32.mxu1 %v6221_v3  ;;  %v3516_v36 = vpack.c.bf16 %v1564_v39, %v1554_v10  ;;  %2159 = vmatprep.mubr.f32.mxu0 %v6221_v3 }
 0x170   : > { %v1414_v44 = vadd.f32 %v6279_v41, %v1158_v4  ;;  %v1007_v12 = vmul.f32 %v5370_v45, %v6277_v23  ;;  %v672_v46 = vmul.f32 %v6257_v29, %v6250_v50  ;;  %v1563_v9 = vmax.f32 %v1403_v27, 0.0 }
 0x171   : > { %v1424_v2 = vadd.f32 %v4805_v6, %v1168_v55  ;;  %v1157_v35 = vadd.f32 %v997_v18, %v651_v15  ;;  %v682_v22 = vmul.f32 %v6257_v29, %v6251_v13  ;;  %3517 = vmatprep.subr.bf16.mxu0 %v3516_v36  ;;  %v1018_v63 = vmul.f32 %v5360_v19, %v6252_v8  ;;  %v6282_v55 = vld [vmem:[#allocation19_spill] sm:$0xff] }
 0x172   : > { %v1574_v26 = vmax.f32 %v1414_v44, 0.0  ;;  %v1167_v59 = vadd.f32 %v1007_v12, %v661_v21  ;;  %v1028_v38 = vmul.f32 %v5360_v19, %v4768_v42  ;;  %2321 = vmatmul.mubr.f32.gmra.mrb[44].mxu1 %v6280_v25  ;;  %v3518_v14 = vpack.c.bf16 %v1563_v9, %v1553_v61  ;;  %2160 = vmatmul.mubr.f32.gmra.mrb[44].mxu0 %v6280_v25  ;;  %v3752_v25 = vld [vmem:[%s6047_s5 + $0x28] sm:$0xff] }
 0x173   : > { %v1584_v60 = vmax.f32 %v1424_v2, 0.0  ;;  %v1413_v33 = vadd.f32 %v6279_v41, %v1157_v35  ;;  %v671_v58 = vmul.f32 %v5367_v40, %v6250_v50  ;;  %2326 = vmatprep.mubr.f32.mxu1 %v6221_v3  ;;  %v1178_v31 = vadd.f32 %v1018_v63, %v672_v46  ;;  %2165 = vmatprep.mubr.f32.mxu0 %v6221_v3  ;;  %v6284_v2 = vld [vmem:[#allocation23_spill] sm:$0xff]  ;;  %v6287_v35 = vld [vmem:[#allocation29_spill] sm:$0xff] }
 0x174   : > { %v1423_v62 = vadd.f32 %v4805_v6, %v1167_v59  ;;  %v1188_v52 = vadd.f32 %v1028_v38, %v682_v22  ;;  %v681_v49 = vmul.f32 %v5367_v40, %v6251_v13  ;;  %3519 = vmatpush1.bf16.msra.mxu0 %v3518_v14  ;;  %v1017_v1 = vmul.f32 %v5370_v45, %v6252_v8  ;;  %v6281_v13 = vld [vmem:[#allocation27_spill] sm:$0xff]  ;;  %v3747_v22 = vld [vmem:[%s6047_s5] sm:$0xff] }
 0x175   : > { %v3520_v5 = vpack.c.bf16 %v1584_v60, %v1574_v26  ;;  %v1573_v47 = vmax.f32 %v1413_v33, 0.0  ;;  %v1027_v50 = vmul.f32 %v5370_v45, %v4768_v42  ;;  %v1434_v7 = vadd.f32 %v4884_v16, %v1178_v31  ;;  %v3748_v26 = vld [vmem:[%s6047_s5 + $0x8] sm:$0xff]  ;;  %v3749_v59 = vld [vmem:[%s6047_s5 + $0x10] sm:$0xff]  ;;  %v3750_v63 = vld [vmem:[%s6047_s5 + $0x18] sm:$0xff] }
 0x176   : > { %v1583_v54 = vmax.f32 %v1423_v62, 0.0  ;;  %v1444_v6 = vadd.f32 %v4882_v28, %v1188_v52  ;;  %v692_v24 = vmul.f32 %v6257_v29, %v4835_v53  ;;  %2327 = vmatmul.mubr.f32.gmra.mrb[46].mxu1 %v6281_v13  ;;  %v1177_v34 = vadd.f32 %v1017_v1, %v671_v58  ;;  %2166 = vmatmul.mubr.f32.gmra.mrb[46].mxu0 %v6281_v13  ;;  %v3751_v38 = vld [vmem:[%s6047_s5 + $0x20] sm:$0xff]  ;;  %v3753_v14 = vld [vmem:[%s6047_s5 + $0x30] sm:$0xff]  ;;  %v3754_v60 = vld [vmem:[%s6047_s5 + $0x38] sm:$0xff]  ;;  %v5638_v52 = vpop.permute.xlu0 %1659 }
 0x177   : > { %3521 = vmatprep.subr.bf16.mxu0 %v3520_v5  ;;  %v1187_v0 = vadd.f32 %v1027_v50, %v681_v49  ;;  %v702_v10 = vmul.f32 %v6257_v29, %v4833_v51  ;;  %v1038_v8 = vmul.f32 %v5360_v19, %v6254_v57  ;;  %v1594_v56 = vmax.f32 %v1434_v7, 0.0  ;;  %2332 = vmatprep.mubr.f32.mxu1 %v6221_v3  ;;  %v3755_v33 = vld [vmem:[%s6047_s5 + $0x40] sm:$0xff]  ;;  %v5641_v5 = vpop.permute.xlu1 %1664 }
 0x178   : > { %v3522_v42 = vpack.c.bf16 %v1583_v54, %v1573_v47  ;;  %v1604_v17 = vmax.f32 %v1444_v6, 0.0  ;;  %v1048_v23 = vmul.f32 %v5360_v19, %v4851_v20  ;;  %v1433_v30 = vadd.f32 %v4884_v16, %v1177_v34  ;;  %2171 = vmatprep.mubr.f32.mxu0 %v6221_v3 }
 0x179   : > { %v1443_v39 = vadd.f32 %v4882_v28, %v1187_v0  ;;  %v1198_v4 = vadd.f32 %v1038_v8, %v692_v24  ;;  %v691_v29 = vmul.f32 %v5367_v40, %v4835_v53  ;;  %v701_v19 = vmul.f32 %v5367_v40, %v4833_v51 }
 0x17a   : > { %3523 = vmatpush1.bf16.msra.mxu0 %v3522_v42  ;;  %v3524_v48 = vpack.c.bf16 %v1604_v17, %v1594_v56  ;;  %v1208_v15 = vadd.f32 %v1048_v23, %v702_v10  ;;  %v1037_v21 = vmul.f32 %v5370_v45, %v6254_v57  ;;  %v1593_v27 = vmax.f32 %v1433_v30, 0.0  ;;  %2333 = vmatmul.mubr.f32.gmra.mrb[48].mxu1 %v6282_v55 }
 0x17b   : > { %v1603_v61 = vmax.f32 %v1443_v39, 0.0  ;;  %v1454_v16 = vadd.f32 %v4904_v32, %v1198_v4  ;;  %v1047_v28 = vmul.f32 %v5370_v45, %v4851_v20  ;;  %2172 = vmatmul.mubr.f32.gmra.mrb[48].mxu0 %v6282_v55  ;;  %2338 = vmatprep.mubr.f32.mxu1 %v6221_v3  ;;  %v6283_v45 = vld [vmem:[#allocation24_spill] sm:$0xff]  ;;  %v5657_v55 = vpop.permute.xlu1 %1674 }
 0x17c   : > { %3525 = vmatprep.subr.bf16.mxu0 %v3524_v48  ;;  %v1464_v53 = vadd.f32 %v4902_v11, %v1208_v15  ;;  %v1197_v18 = vadd.f32 %v1037_v21, %v691_v29  ;;  %2177 = vmatprep.mubr.f32.mxu0 %v6221_v3  ;;  %v5650_v21 = vpop.permute.xlu0 %1669 }
 0x17d   : > { %v3526_v36 = vpack.c.bf16 %v1603_v61, %v1593_v27  ;;  %v1614_v51 = vmax.f32 %v1454_v16, 0.0  ;;  %v1207_v40 = vadd.f32 %v1047_v28, %v701_v19 }
 0x17e   : > { %v1624_v57 = vmax.f32 %v1464_v53, 0.0  ;;  %v1453_v41 = vadd.f32 %v4904_v32, %v1197_v18  ;;  %2339 = vmatmul.mubr.f32.gmra.mrb[50].mxu1 %v6283_v45  ;;  %v6286_v32 = vld [vmem:[#allocation25_spill] sm:$0xff] }
 0x17f   : > { %3527 = vmatpush1.bf16.msra.mxu0 %v3526_v36  ;;  %v1463_v20 = vadd.f32 %v4902_v11, %v1207_v40  ;;  %2344 = vmatprep.mubr.f32.mxu1 %v6221_v3  ;;  %v6285_v11 = vld [vmem:[#allocation26_spill] sm:$0xff] }
 0x180   : > { %v3528_v44 = vpack.c.bf16 %v1624_v57, %v1614_v51  ;;  %v1613_v12 = vmax.f32 %v1453_v41, 0.0  ;;  %2178 = vmatmul.mubr.f32.gmra.mrb[50].mxu0 %v6283_v45 }
 0x181   : > { %v1623_v46 = vmax.f32 %v1463_v20, 0.0  ;;  %2183 = vmatprep.mubr.f32.mxu0 %v6221_v3 }
 0x182   : > { %3529 = vmatprep.subr.bf16.mxu0 %v3528_v44  ;;  %2345 = vmatmul.mubr.f32.gmra.mrb[52].mxu1 %v6284_v2 }
 0x183   : > { %v3530_v9 = vpack.c.bf16 %v1623_v46, %v1613_v12  ;;  %2350 = vmatprep.mubr.f32.mxu1 %v6221_v3 }
 0x184   : > { %2184 = vmatmul.mubr.f32.gmra.mrb[52].mxu0 %v6284_v2 }
 0x185   : > { %3531 = vmatpush1.bf16.msra.mxu0 %v3530_v9  ;;  %2189 = vmatprep.mubr.f32.mxu0 %v6221_v3 }
 0x186   : > { %2351 = vmatmul.mubr.f32.gmra.mrb[54].mxu1 %v6285_v11 }
 0x187   : > { %2356 = vmatprep.mubr.f32.mxu1 %v6221_v3 }
 0x188   : > { %2190 = vmatmul.mubr.f32.gmra.mrb[54].mxu0 %v6285_v11 }
 0x189   : > { %2195 = vmatprep.mubr.f32.mxu0 %v6221_v3 }
 0x18a   : > { %2357 = vmatmul.mubr.f32.gmra.mrb[56].mxu1 %v5230_v37 }
 0x18b   : > { %2362 = vmatprep.mubr.f32.mxu1 %v6221_v3 }
 0x18c   : > { %2196 = vmatmul.mubr.f32.gmra.mrb[56].mxu0 %v5230_v37 }
 0x18d   : > { %2201 = vmatprep.mubr.f32.mxu0 %v6221_v3 }
 0x18e   : > { %2363 = vmatmul.mubr.f32.gmra.mrb[58].mxu1 %v5254_v43 }
 0x18f   : > { %2368 = vmatprep.mubr.f32.mxu1 %v6221_v3 }
 0x190   : > { %2202 = vmatmul.mubr.f32.gmra.mrb[58].mxu0 %v5254_v43 }
 0x191   : > { %2207 = vmatprep.mubr.f32.mxu0 %v6221_v3 }
 0x192   : > { %2369 = vmatmul.mubr.f32.gmra.mrb[60].mxu1 %v6286_v32 }
 0x193   : > { %2374 = vmatprep.mubr.f32.mxu1 %v6221_v3 }
 0x194   : > { %2208 = vmatmul.mubr.f32.gmra.mrb[60].mxu0 %v6286_v32 }
 0x195   : > { %2213 = vmatprep.mubr.f32.mxu0 %v6221_v3 }
 0x196   : > { %2375 = vmatmul.mubr.f32.gmra.mrb[62].mxu1 %v6287_v35 }
 0x197   : > { %2773 = vmatprep.mubr.f32.mxu1 %v6221_v3 }
 0x198   : > { %2214 = vmatmul.mubr.f32.gmra.mrb[62].mxu0 %v6287_v35 }
 0x199   : > { %2445 = vmatprep.mubr.f32.mxu0 %v6221_v3 }
 0x19c   : > { %2446 = vmatmul.mubr.f32.vlgmr.msra.gmra.mrb[64].mxu0 %v3747_v22 }
 0x19d   : > { %2451 = vmatprep.mubr.f32.mxu0 %v6221_v3 }
 0x1a0   : > { %2452 = vmatmul.mubr.f32.gmra.mrb[66].mxu0 %v3748_v26 }
 0x1a1   : > { %2457 = vmatprep.mubr.f32.mxu0 %v6221_v3 }
 0x1a4   : > { %2458 = vmatmul.mubr.f32.gmra.mrb[68].mxu0 %v3749_v59 }
 0x1a5   : > { %2463 = vmatprep.mubr.f32.mxu0 %v6221_v3 }
 0x1a8   : > { %2464 = vmatmul.mubr.f32.gmra.mrb[70].mxu0 %v3750_v63 }
 0x1a9   : > { %2469 = vmatprep.mubr.f32.mxu0 %v6221_v3 }
 0x1ac   : > { %2470 = vmatmul.mubr.f32.gmra.mrb[72].mxu0 %v3751_v38 }
 0x1ad   : > { %2475 = vmatprep.mubr.f32.mxu0 %v6221_v3 }
 0x1b0   : > { %2476 = vmatmul.mubr.f32.gmra.mrb[74].mxu0 %v3752_v25 }
 0x1b1   : > { %2481 = vmatprep.mubr.f32.mxu0 %v6221_v3 }
 0x1b4   : > { %2482 = vmatmul.mubr.f32.gmra.mrb[76].mxu0 %v3753_v14  ;;  %v5666_v14 = vpop.permute.xlu0 %1679 }
 0x1b5   : > { %2487 = vmatprep.mubr.f32.mxu0 %v6221_v3 }
 0x1b8   : > { %2488 = vmatmul.mubr.f32.gmra.mrb[78].mxu0 %v3754_v60 }
 0x1b9   : > { %2493 = vmatprep.mubr.f32.mxu0 %v6221_v3 }
 0x1bc   : > { %2494 = vmatmul.mubr.f32.gmra.mrb[80].mxu0 %v3755_v33 }
 0x1bd   : > { %2499 = vmatprep.mubr.f32.mxu0 %v6221_v3 }
 0x1c0   : > { %2500 = vmatmul.mubr.f32.gmra.mrb[82].mxu0 %v6283_v45 }
 0x1c1   : > { %2505 = vmatprep.mubr.f32.mxu0 %v6221_v3 }
 0x1c4   : > { %2506 = vmatmul.mubr.f32.gmra.mrb[84].mxu0 %v6284_v2 }
 0x1c5   : > { %2511 = vmatprep.mubr.f32.mxu0 %v6221_v3 }
 0x1c8   : > { %2512 = vmatmul.mubr.f32.gmra.mrb[86].mxu0 %v6285_v11 }
 0x1c9   : > { %2517 = vmatprep.mubr.f32.mxu0 %v6221_v3 }
 0x1cc   : > { %2518 = vmatmul.mubr.f32.gmra.mrb[88].mxu0 %v5230_v37 }
 0x1cd   : > { %2523 = vmatprep.mubr.f32.mxu0 %v6221_v3 }
 0x1d0   : > { %2524 = vmatmul.mubr.f32.gmra.mrb[90].mxu0 %v5254_v43 }
 0x1d1   : > { %2529 = vmatprep.mubr.f32.mxu0 %v6221_v3 }
 0x1d4   : > { %2530 = vmatmul.mubr.f32.gmra.mrb[92].mxu0 %v6286_v32 }
 0x1d5   : > { %2535 = vmatprep.mubr.f32.mxu0 %v6221_v3 }
 0x1d8   : > { %2536 = vmatmul.mubr.f32.gmra.mrb[94].mxu0 %v6287_v35  ;;  %v1803_v58 = vpop.f32.mrb[0].mxu0 }
 0x1d9   : > { %2915 = vmatprep.mubr.f32.mxu0 %v6221_v3  ;;  %v1964_v62 = vpop.f32.mrb[0].mxu1  ;;  %v1805_v31 = vpop.f32.mrb[1].mxu0  ;;  %v1804_v49 = vadd.f32 %v1803_v58, %v5638_v52 }
 0x1da   : > { %v1966_v37 = vpop.f32.mrb[1].mxu1  ;;  %v1806_v43 = vadd.f32 %v1805_v31, %v5638_v52  ;;  %v1965_v1 = vadd.f32 %v1964_v62, %v5638_v52 }
 0x1db   : > { %v1967_v7 = vadd.f32 %v1966_v37, %v5638_v52  ;;  %v2542_v13 = vmax.f32 %v1804_v49, 0.0  ;;  %v5673_v37 = vpop.permute.xlu1 %1684 }
 0x1dc   : > { %v1809_v47 = vpop.f32.mrb[2].mxu0  ;;  %v2543_v8 = vmax.f32 %v1806_v43, 0.0  ;;  %v2544_v23 = vmax.f32 %v1965_v1, 0.0 }
 0x1dd   : > { %v1810_v50 = vadd.f32 %v1809_v47, %v5641_v5  ;;  %v1811_v54 = vpop.f32.mrb[3].mxu0  ;;  %v1970_v6 = vpop.f32.mrb[2].mxu1  ;;  %v2545_v29 = vmax.f32 %v1967_v7, 0.0 }
 0x1de   : > { %v1812_v24 = vadd.f32 %v1811_v54, %v5641_v5  ;;  %v1971_v0 = vadd.f32 %v1970_v6, %v5641_v5  ;;  %v1972_v10 = vpop.f32.mrb[3].mxu1 }
 0x1df   : > { %v2552_v34 = vmax.f32 %v1810_v50, 0.0  ;;  %v1973_v56 = vadd.f32 %v1972_v10, %v5641_v5 }
 0x1e0   : > { %v2553_v42 = vmax.f32 %v1812_v24, 0.0  ;;  %v1815_v17 = vpop.f32.mrb[4].mxu0  ;;  %v2554_v39 = vmax.f32 %v1971_v0, 0.0 }
 0x1e1   : > { %v3534_v30 = vpack.c.bf16 %v2552_v34, %v2542_v13  ;;  %v1817_v4 = vpop.f32.mrb[5].mxu0  ;;  %v2555_v15 = vmax.f32 %v1973_v56, 0.0  ;;  %v1816_v28 = vadd.f32 %v1815_v17, %v5650_v21 }
 0x1e2   : > { %v3532_v48 = vpack.c.bf16 %v2553_v42, %v2543_v8  ;;  %v1976_v19 = vpop.f32.mrb[4].mxu1  ;;  %v5652_v27 = vpack.c.bf16 %v2554_v39, %v2544_v23  ;;  %v1818_v18 = vadd.f32 %v1817_v4, %v5650_v21 }
 0x1e3   : > { %v1978_v61 = vpop.f32.mrb[5].mxu1  ;;  %v5654_v16 = vpack.c.bf16 %v2555_v15, %v2545_v29  ;;  %v1977_v53 = vadd.f32 %v1976_v19, %v5650_v21  ;;  %v2562_v12 = vmax.f32 %v1816_v28, 0.0 }
 0x1e4   : > { %3533 = vmatprep.subr.bf16.mxu1 %v3532_v48  ;;  %v1821_v36 = vpop.f32.mrb[6].mxu0  ;;  %v1979_v51 = vadd.f32 %v1978_v61, %v5650_v21  ;;  %v2563_v11 = vmax.f32 %v1818_v18, 0.0  ;;  %v5682_v48 = vpop.permute.xlu0 %1689 }
 0x1e5   : > { %3535 = vmatpush1.bf16.msra.mxu1 %v3534_v30  ;;  %v1822_v40 = vadd.f32 %v1821_v36, %v5657_v55  ;;  %v1823_v41 = vpop.f32.mrb[7].mxu0  ;;  %v2564_v2 = vmax.f32 %v1977_v53, 0.0  ;;  %v5689_v36 = vpop.permute.xlu1 %1694 }
 0x1e6   : > { %v1982_v57 = vpop.f32.mrb[6].mxu1  ;;  %v1824_v45 = vadd.f32 %v1823_v41, %v5657_v55  ;;  %v2565_v26 = vmax.f32 %v1979_v51, 0.0 }
 0x1e7   : > { %v1983_v20 = vadd.f32 %v1982_v57, %v5657_v55  ;;  %v1984_v44 = vpop.f32.mrb[7].mxu1  ;;  %v2572_v46 = vmax.f32 %v1822_v40, 0.0 }
 0x1e8   : > { %v1985_v9 = vadd.f32 %v1984_v44, %v5657_v55  ;;  %v2573_v35 = vmax.f32 %v1824_v45, 0.0  ;;  %v1827_v22 = vpop.f32.mrb[8].mxu0 }
 0x1e9   : > { %v2574_v32 = vmax.f32 %v1983_v20, 0.0  ;;  %v3538_v59 = vpack.c.bf16 %v2572_v46, %v2562_v12  ;;  %v1829_v25 = vpop.f32.mrb[9].mxu0  ;;  %v1828_v31 = vadd.f32 %v1827_v22, %v5666_v14 }
 0x1ea   : > { %v2575_v63 = vmax.f32 %v1985_v9, 0.0  ;;  %v1988_v38 = vpop.f32.mrb[8].mxu1  ;;  %v3536_v33 = vpack.c.bf16 %v2573_v35, %v2563_v11  ;;  %v1830_v43 = vadd.f32 %v1829_v25, %v5666_v14 }
 0x1eb   : > { %v5668_v60 = vpack.c.bf16 %v2574_v32, %v2564_v2  ;;  %v1990_v58 = vpop.f32.mrb[9].mxu1  ;;  %v1989_v49 = vadd.f32 %v1988_v38, %v5666_v14  ;;  %v2582_v34 = vmax.f32 %v1828_v31, 0.0 }
 0x1ec   : > { %v5670_v62 = vpack.c.bf16 %v2575_v63, %v2565_v26  ;;  %3537 = vmatprep.subr.bf16.mxu1 %v3536_v33  ;;  %v1991_v1 = vadd.f32 %v1990_v58, %v5666_v14  ;;  %v2583_v42 = vmax.f32 %v1830_v43, 0.0  ;;  %v5698_v58 = vpop.permute.xlu0 %1699 }
 0x1ed   : > { %v1833_v47 = vpop.f32.mrb[10].mxu0  ;;  %3539 = vmatpush1.bf16.msra.mxu1 %v3538_v59  ;;  %v2584_v8 = vmax.f32 %v1989_v49, 0.0 }
 0x1ee   : > { %v1834_v50 = vadd.f32 %v1833_v47, %v5673_v37  ;;  %v1994_v54 = vpop.f32.mrb[10].mxu1  ;;  %v1835_v7 = vpop.f32.mrb[11].mxu0  ;;  %v2585_v30 = vmax.f32 %v1991_v1, 0.0 }
 0x1ef   : > { %v1995_v6 = vadd.f32 %v1994_v54, %v5673_v37  ;;  %v1836_v24 = vadd.f32 %v1835_v7, %v5673_v37  ;;  %v1996_v13 = vpop.f32.mrb[11].mxu1  ;;  %v5703_v54 = vpop.permute.xlu1 %1704 }
 0x1f0   : > { %v2592_v0 = vmax.f32 %v1834_v50, 0.0  ;;  %v1997_v10 = vadd.f32 %v1996_v13, %v5673_v37 }
 0x1f1   : > { %v2594_v56 = vmax.f32 %v1995_v6, 0.0  ;;  %v2593_v17 = vmax.f32 %v1836_v24, 0.0  ;;  %v1839_v23 = vpop.f32.mrb[12].mxu0 }
 0x1f2   : > { %v3542_v39 = vpack.c.bf16 %v2592_v0, %v2582_v34  ;;  %v2595_v4 = vmax.f32 %v1997_v10, 0.0  ;;  %v1841_v29 = vpop.f32.mrb[13].mxu0  ;;  %v1840_v53 = vadd.f32 %v1839_v23, %v5682_v48 }
 0x1f3   : > { %v5684_v15 = vpack.c.bf16 %v2594_v56, %v2584_v8  ;;  %v3540_v19 = vpack.c.bf16 %v2593_v17, %v2583_v42  ;;  %v2000_v61 = vpop.f32.mrb[12].mxu1  ;;  %v1842_v51 = vadd.f32 %v1841_v29, %v5682_v48 }
 0x1f4   : > { %v5686_v28 = vpack.c.bf16 %v2595_v4, %v2585_v30  ;;  %v2002_v18 = vpop.f32.mrb[13].mxu1  ;;  %v2001_v20 = vadd.f32 %v2000_v61, %v5682_v48  ;;  %v2602_v44 = vmax.f32 %v1840_v53, 0.0 }
 0x1f5   : > { %v1845_v40 = vpop.f32.mrb[14].mxu0  ;;  %3541 = vmatprep.subr.bf16.mxu1 %v3540_v19  ;;  %v2003_v12 = vadd.f32 %v2002_v18, %v5682_v48  ;;  %v2603_v2 = vmax.f32 %v1842_v51, 0.0 }
 0x1f6   : > { %v1846_v57 = vadd.f32 %v1845_v40, %v5689_v36  ;;  %v1847_v41 = vpop.f32.mrb[15].mxu0  ;;  %3543 = vmatpush1.bf16.msra.mxu1 %v3542_v39  ;;  %v2604_v38 = vmax.f32 %v2001_v20, 0.0 }
 0x1f7   : > { %v1848_v45 = vadd.f32 %v1847_v41, %v5689_v36  ;;  %v2605_v31 = vmax.f32 %v2003_v12, 0.0 }
 0x1f8   : > { %v2612_v46 = vmax.f32 %v1846_v57, 0.0  ;;  %v2006_v9 = vpop.f32.mrb[14].mxu1 }
 0x1f9   : > { %v2007_v11 = vadd.f32 %v2006_v9, %v5689_v36  ;;  %v2613_v32 = vmax.f32 %v1848_v45, 0.0  ;;  %v2008_v35 = vpop.f32.mrb[15].mxu1  ;;  %v1851_v22 = vpop.f32.mrb[16].mxu0 }
 0x1fa   : > { %v3546_v26 = vpack.c.bf16 %v2612_v46, %v2602_v44  ;;  %v2009_v59 = vadd.f32 %v2008_v35, %v5689_v36  ;;  %v1853_v63 = vpop.f32.mrb[17].mxu0  ;;  %v1852_v1 = vadd.f32 %v1851_v22, %v5698_v58  ;;  %v5714_v45 = vpop.permute.xlu0 %1709 }
 0x1fb   : > { %v2614_v25 = vmax.f32 %v2007_v11, 0.0  ;;  %v3544_v33 = vpack.c.bf16 %v2613_v32, %v2603_v2  ;;  %v1854_v6 = vadd.f32 %v1853_v63, %v5698_v58  ;;  %v5721_v2 = vpop.permute.xlu1 %1714 }
 0x1fc   : > { %v2615_v49 = vmax.f32 %v2009_v59, 0.0  ;;  %v2012_v43 = vpop.f32.mrb[16].mxu1  ;;  %v2622_v56 = vmax.f32 %v1852_v1, 0.0 }
 0x1fd   : > { %v5700_v47 = vpack.c.bf16 %v2614_v25, %v2604_v38  ;;  %v2014_v50 = vpop.f32.mrb[17].mxu1  ;;  %3545 = vmatprep.subr.bf16.mxu1 %v3544_v33  ;;  %v2013_v13 = vadd.f32 %v2012_v43, %v5698_v58  ;;  %v2623_v39 = vmax.f32 %v1854_v6, 0.0 }
 0x1fe   : > { %v5705_v7 = vpack.c.bf16 %v2615_v49, %v2605_v31  ;;  %v1857_v24 = vpop.f32.mrb[18].mxu0  ;;  %3547 = vmatpush1.bf16.msra.mxu1 %v3546_v26  ;;  %v2015_v10 = vadd.f32 %v2014_v50, %v5698_v58 }
 0x1ff   : > { %v1858_v34 = vadd.f32 %v1857_v24, %v5703_v54  ;;  %v1859_v0 = vpop.f32.mrb[19].mxu0  ;;  %v2624_v19 = vmax.f32 %v2013_v13, 0.0 }
 0x200   : > { %v2018_v8 = vpop.f32.mrb[18].mxu1  ;;  %v1860_v42 = vadd.f32 %v1859_v0, %v5703_v54  ;;  %v2625_v51 = vmax.f32 %v2015_v10, 0.0  ;;  %v5730_v10 = vpop.permute.xlu0 %1719 }
 0x201   : > { %v2632_v17 = vmax.f32 %v1858_v34, 0.0  ;;  %v2019_v23 = vadd.f32 %v2018_v8, %v5703_v54  ;;  %v2020_v30 = vpop.f32.mrb[19].mxu1 }
 0x202   : > { %v2633_v4 = vmax.f32 %v1860_v42, 0.0  ;;  %v2021_v29 = vadd.f32 %v2020_v30, %v5703_v54 }
 0x203   : > { %v3550_v61 = vpack.c.bf16 %v2632_v17, %v2622_v56  ;;  %v2634_v53 = vmax.f32 %v2019_v23, 0.0  ;;  %v1863_v18 = vpop.f32.mrb[20].mxu0  ;;  %v5732_v17 = vpop.permute.xlu1 %1724 }
 0x204   : > { %v3548_v40 = vpack.c.bf16 %v2633_v4, %v2623_v39  ;;  %v2635_v57 = vmax.f32 %v2021_v29, 0.0  ;;  %v2024_v41 = vpop.f32.mrb[20].mxu1  ;;  %v1865_v20 = vpop.f32.mrb[21].mxu0  ;;  %v1864_v9 = vadd.f32 %v1863_v18, %v5714_v45 }
 0x205   : > { %v5716_v44 = vpack.c.bf16 %v2634_v53, %v2624_v19  ;;  %v2026_v12 = vpop.f32.mrb[21].mxu1  ;;  %v1866_v11 = vadd.f32 %v1865_v20, %v5714_v45  ;;  %v2025_v35 = vadd.f32 %v2024_v41, %v5714_v45 }
 0x206   : > { %v5718_v46 = vpack.c.bf16 %v2635_v57, %v2625_v51  ;;  %3549 = vmatprep.subr.bf16.mxu1 %v3548_v40  ;;  %v2027_v59 = vadd.f32 %v2026_v12, %v5714_v45  ;;  %v2642_v25 = vmax.f32 %v1864_v9, 0.0 }
 0x207   : > { %v1869_v32 = vpop.f32.mrb[22].mxu0  ;;  %3551 = vmatpush1.bf16.msra.mxu1 %v3550_v61  ;;  %v2643_v43 = vmax.f32 %v1866_v11, 0.0  ;;  %v2644_v24 = vmax.f32 %v2025_v35, 0.0 }
 0x208   : > { %v1870_v22 = vadd.f32 %v1869_v32, %v5721_v2  ;;  %v1871_v26 = vpop.f32.mrb[23].mxu0  ;;  %v2645_v8 = vmax.f32 %v2027_v59, 0.0 }
 0x209   : > { %v2030_v63 = vpop.f32.mrb[22].mxu1  ;;  %v1872_v38 = vadd.f32 %v1871_v26, %v5721_v2 }
 0x20a   : > { %v2652_v33 = vmax.f32 %v1870_v22, 0.0  ;;  %v2031_v31 = vadd.f32 %v2030_v63, %v5721_v2  ;;  %v2032_v49 = vpop.f32.mrb[23].mxu1 }
 0x20b   : > { %v2653_v1 = vmax.f32 %v1872_v38, 0.0  ;;  %v2033_v50 = vadd.f32 %v2032_v49, %v5721_v2 }
 0x20c   : > { %v1875_v6 = vpop.f32.mrb[24].mxu0  ;;  %v3554_v13 = vpack.c.bf16 %v2652_v33, %v2642_v25  ;;  %v2654_v34 = vmax.f32 %v2031_v31, 0.0 }
 0x20d   : > { %v1877_v0 = vpop.f32.mrb[25].mxu0  ;;  %v3552_v42 = vpack.c.bf16 %v2653_v1, %v2643_v43  ;;  %v2655_v56 = vmax.f32 %v2033_v50, 0.0  ;;  %v1876_v30 = vadd.f32 %v1875_v6, %v5730_v10  ;;  %v5746_v1 = vpop.permute.xlu0 %1729 }
 0x20e   : > { %v5734_v23 = vpack.c.bf16 %v2654_v34, %v2644_v24  ;;  %v2036_v39 = vpop.f32.mrb[24].mxu1  ;;  %v1878_v29 = vadd.f32 %v1877_v0, %v5730_v10  ;;  %v5753_v34 = vpop.permute.xlu1 %1734 }
 0x20f   : > { %v5737_v4 = vpack.c.bf16 %v2655_v56, %v2645_v8  ;;  %v2038_v19 = vpop.f32.mrb[25].mxu1  ;;  %3553 = vmatprep.subr.bf16.mxu1 %v3552_v42  ;;  %v2037_v51 = vadd.f32 %v2036_v39, %v5730_v10  ;;  %v2662_v57 = vmax.f32 %v1876_v30, 0.0 }
 0x210   : > { %v1881_v61 = vpop.f32.mrb[26].mxu0  ;;  %3555 = vmatpush1.bf16.msra.mxu1 %v3554_v13  ;;  %v2039_v41 = vadd.f32 %v2038_v19, %v5730_v10  ;;  %v2663_v9 = vmax.f32 %v1878_v29, 0.0 }
 0x211   : > { %v1882_v53 = vadd.f32 %v1881_v61, %v5732_v17  ;;  %v1883_v18 = vpop.f32.mrb[27].mxu0  ;;  %v2664_v63 = vmax.f32 %v2037_v51, 0.0 }
 0x212   : > { %v1884_v40 = vadd.f32 %v1883_v18, %v5732_v17  ;;  %v2042_v12 = vpop.f32.mrb[26].mxu1  ;;  %v2665_v31 = vmax.f32 %v2039_v41, 0.0 }
 0x213   : > { %v2672_v20 = vmax.f32 %v1882_v53, 0.0  ;;  %v2043_v11 = vadd.f32 %v2042_v12, %v5732_v17  ;;  %v2044_v35 = vpop.f32.mrb[27].mxu1 }
 0x214   : > { %v2673_v32 = vmax.f32 %v1884_v40, 0.0  ;;  %v2045_v26 = vadd.f32 %v2044_v35, %v5732_v17  ;;  %v1887_v59 = vpop.f32.mrb[28].mxu0 }
 0x215   : > { %v3558_v22 = vpack.c.bf16 %v2672_v20, %v2662_v57  ;;  %v2674_v38 = vmax.f32 %v2043_v11, 0.0  ;;  %v1889_v33 = vpop.f32.mrb[29].mxu0  ;;  %v1888_v13 = vadd.f32 %v1887_v59, %v5746_v1  ;;  %v5769_v59 = vld [vmem:[%s6049_s7] sm:$0xff] }
 0x216   : > { %v3556_v25 = vpack.c.bf16 %v2673_v32, %v2663_v9  ;;  %v2675_v49 = vmax.f32 %v2045_v26, 0.0  ;;  %v1890_v8 = vadd.f32 %v1889_v33, %v5746_v1 }
 0x217   : > { %v2048_v43 = vpop.f32.mrb[28].mxu1  ;;  %v5748_v50 = vpack.c.bf16 %v2674_v38, %v2664_v63  ;;  %v2682_v18 = vmax.f32 %v1888_v13, 0.0 }
 0x218   : > { %v2050_v6 = vpop.f32.mrb[29].mxu1  ;;  %3557 = vmatprep.subr.bf16.mxu1 %v3556_v25  ;;  %v5750_v24 = vpack.c.bf16 %v2675_v49, %v2665_v31  ;;  %v2049_v0 = vadd.f32 %v2048_v43, %v5746_v1  ;;  %v2683_v41 = vmax.f32 %v1890_v8, 0.0 }
 0x219   : > { %3559 = vmatpush1.bf16.msra.mxu1 %v3558_v22  ;;  %v1893_v42 = vpop.f32.mrb[30].mxu0  ;;  %v2051_v56 = vadd.f32 %v2050_v6, %v5746_v1 }
 0x21a   : > { %v1894_v30 = vadd.f32 %v1893_v42, %v5753_v34  ;;  %v1895_v29 = vpop.f32.mrb[31].mxu0  ;;  %v2684_v57 = vmax.f32 %v2049_v0, 0.0 }
 0x21b   : > { %v2054_v39 = vpop.f32.mrb[30].mxu1  ;;  %v1896_v61 = vadd.f32 %v1895_v29, %v5753_v34  ;;  %v2685_v9 = vmax.f32 %v2051_v56, 0.0 }
 0x21c   : > { %v2055_v19 = vadd.f32 %v2054_v39, %v5753_v34  ;;  %v2056_v53 = vpop.f32.mrb[31].mxu1  ;;  %v2692_v51 = vmax.f32 %v1894_v30, 0.0 }
 0x21d   : > { %v2057_v40 = vadd.f32 %v2056_v53, %v5753_v34  ;;  %v2693_v12 = vmax.f32 %v1896_v61, 0.0 }
 0x21e   : > { %v2694_v20 = vmax.f32 %v2055_v19, 0.0  ;;  %v3562_v11 = vpack.c.bf16 %v2692_v51, %v2682_v18 }
 0x21f   : > { %v2695_v32 = vmax.f32 %v2057_v40, 0.0  ;;  %v3560_v22 = vpack.c.bf16 %v2693_v12, %v2683_v41 }
 0x220   : > { %v5762_v35 = vpack.c.bf16 %v2694_v20, %v2684_v57 }
 0x221   : > { %v5764_v26 = vpack.c.bf16 %v2695_v32, %v2685_v9  ;;  %3561 = vmatprep.subr.bf16.mxu1 %v3560_v22 }
 0x222   : > { %3563 = vmatpush1.bf16.msra.mxu1 %v3562_v11 }
 0x223   : > { %3565 = vmatprep.subr.bf16.mxu1 %v5654_v16 }
 0x225   : > { %2774 = vmatmul.mubr.f32.vlgmr.msra.gmra.mrb[64].mxu1 %v5769_v59 }
 0x226   : > { %3567 = vmatpush1.bf16.msra.mxu1 %v5652_v27  ;;  %2844 = vmatprep.mubr.f32.mxu1 %v6221_v3 }
 0x227   : > { %3569 = vmatprep.subr.bf16.mxu1 %v5670_v62 }
 0x22a   : > { %v2125_v63 = vpop.f32.mrb[32].mxu0  ;;  %3571 = vmatpush1.bf16.msra.mxu1 %v5668_v60 }
 0x22b   : > { %v2127_v38 = vpop.f32.mrb[33].mxu0  ;;  %3573 = vmatprep.subr.bf16.mxu1 %v5686_v28  ;;  %v2126_v25 = vadd.f32 %v2125_v63, %v5638_v52 }
 0x22c   : > { %v2286_v33 = vpop.f32.mrb[32].mxu1  ;;  %v2128_v31 = vadd.f32 %v2127_v38, %v5638_v52 }
 0x22d   : > { %v2288_v16 = vpop.f32.mrb[33].mxu1  ;;  %v2287_v62 = vadd.f32 %v2286_v33, %v5638_v52  ;;  %v2546_v60 = vmax.f32 %v2126_v25, 0.0 }
 0x22e   : > { %v2131_v49 = vpop.f32.mrb[34].mxu0  ;;  %3575 = vmatpush1.bf16.msra.mxu1 %v5684_v15  ;;  %v2289_v28 = vadd.f32 %v2288_v16, %v5638_v52  ;;  %v2547_v8 = vmax.f32 %v2128_v31, 0.0 }
 0x22f   : > { %v2132_v43 = vadd.f32 %v2131_v49, %v5641_v5  ;;  %v2133_v27 = vpop.f32.mrb[35].mxu0  ;;  %3577 = vmatprep.subr.bf16.mxu1 %v5705_v7  ;;  %v2548_v19 = vmax.f32 %v2287_v62, 0.0 }
 0x230   : > { %v2134_v6 = vadd.f32 %v2133_v27, %v5641_v5  ;;  %v2292_v0 = vpop.f32.mrb[34].mxu1  ;;  %v2549_v18 = vmax.f32 %v2289_v28, 0.0 }
 0x231   : > { %v2556_v13 = vmax.f32 %v2132_v43, 0.0  ;;  %v2293_v42 = vadd.f32 %v2292_v0, %v5641_v5  ;;  %v2294_v30 = vpop.f32.mrb[35].mxu1 }
 0x232   : > { %v2557_v56 = vmax.f32 %v2134_v6, 0.0  ;;  %v2295_v29 = vadd.f32 %v2294_v30, %v5641_v5  ;;  %v2137_v15 = vpop.f32.mrb[36].mxu0  ;;  %3579 = vmatpush1.bf16.msra.mxu1 %v5700_v47 }
 0x233   : > { %v3598_v39 = vpack.c.bf16 %v2556_v13, %v2546_v60  ;;  %v2558_v61 = vmax.f32 %v2293_v42, 0.0  ;;  %v2139_v7 = vpop.f32.mrb[37].mxu0  ;;  %3581 = vmatprep.subr.bf16.mxu1 %v5718_v46  ;;  %v2138_v12 = vadd.f32 %v2137_v15, %v5650_v21 }
 0x234   : > { %v3596_v53 = vpack.c.bf16 %v2557_v56, %v2547_v8  ;;  %v2559_v51 = vmax.f32 %v2295_v29, 0.0  ;;  %v2298_v40 = vpop.f32.mrb[36].mxu1  ;;  %v2140_v9 = vadd.f32 %v2139_v7, %v5650_v21 }
 0x235   : > { %v5790_v57 = vpack.c.bf16 %v2558_v61, %v2548_v19  ;;  %v2300_v41 = vpop.f32.mrb[37].mxu1  ;;  %v2299_v47 = vadd.f32 %v2298_v40, %v5650_v21  ;;  %v2566_v31 = vmax.f32 %v2138_v12, 0.0 }
 0x236   : > { %3597 = vmatprep.subr.bf16.mxu0 %v3596_v53  ;;  %v3628_v20 = vpack.c.bf16 %v2559_v51, %v2549_v18  ;;  %3583 = vmatpush1.bf16.msra.mxu1 %v5716_v44  ;;  %v2301_v46 = vadd.f32 %v2300_v41, %v5650_v21  ;;  %v2567_v43 = vmax.f32 %v2140_v9, 0.0 }
 0x237   : > { %3599 = vmatpush1.bf16.msra.mxu0 %v3598_v39  ;;  %v2143_v11 = vpop.f32.mrb[38].mxu0  ;;  %3585 = vmatprep.subr.bf16.mxu1 %v5737_v4  ;;  %v2568_v49 = vmax.f32 %v2299_v47, 0.0 }
 0x238   : > { %v2144_v32 = vadd.f32 %v2143_v11, %v5657_v55  ;;  %v2304_v22 = vpop.f32.mrb[38].mxu1  ;;  %v2145_v63 = vpop.f32.mrb[39].mxu0  ;;  %v2569_v62 = vmax.f32 %v2301_v46, 0.0 }
 0x239   : > { %v2305_v38 = vadd.f32 %v2304_v22, %v5657_v55  ;;  %v2146_v25 = vadd.f32 %v2145_v63, %v5657_v55  ;;  %v2306_v33 = vpop.f32.mrb[39].mxu1 }
 0x23a   : > { %v2576_v44 = vmax.f32 %v2144_v32, 0.0  ;;  %v2307_v16 = vadd.f32 %v2306_v33, %v5657_v55  ;;  %3587 = vmatpush1.bf16.msra.mxu1 %v5734_v23 }
 0x23b   : > { %v2578_v4 = vmax.f32 %v2305_v38, 0.0  ;;  %v2577_v27 = vmax.f32 %v2146_v25, 0.0  ;;  %3589 = vmatprep.subr.bf16.mxu1 %v5750_v24  ;;  %v2149_v28 = vpop.f32.mrb[40].mxu0 }
 0x23c   : > { %v3602_v6 = vpack.c.bf16 %v2576_v44, %v2566_v31  ;;  %v2579_v60 = vmax.f32 %v2307_v16, 0.0  ;;  %v2151_v42 = vpop.f32.mrb[41].mxu0  ;;  %v2150_v39 = vadd.f32 %v2149_v28, %v5666_v14 }
 0x23d   : > { %v2310_v13 = vpop.f32.mrb[40].mxu1  ;;  %v3634_v0 = vpack.c.bf16 %v2578_v4, %v2568_v49  ;;  %v3600_v8 = vpack.c.bf16 %v2577_v27, %v2567_v43  ;;  %v2152_v15 = vadd.f32 %v2151_v42, %v5666_v14 }
 0x23e   : > { %v2312_v56 = vpop.f32.mrb[41].mxu1  ;;  %v3632_v30 = vpack.c.bf16 %v2579_v60, %v2569_v62  ;;  %3591 = vmatpush1.bf16.msra.mxu1 %v5748_v50  ;;  %v2311_v23 = vadd.f32 %v2310_v13, %v5666_v14  ;;  %v2586_v41 = vmax.f32 %v2150_v39, 0.0 }
 0x23f   : > { %3601 = vmatprep.subr.bf16.mxu0 %v3600_v8  ;;  %3593 = vmatprep.subr.bf16.mxu1 %v5764_v26  ;;  %v2313_v24 = vadd.f32 %v2312_v56, %v5666_v14  ;;  %v2587_v46 = vmax.f32 %v2152_v15, 0.0 }
 0x240   : > { %3603 = vmatpush1.bf16.msra.mxu0 %v3602_v6  ;;  %v2155_v19 = vpop.f32.mrb[42].mxu0  ;;  %v2588_v26 = vmax.f32 %v2311_v23, 0.0 }
 0x241   : > { %v2316_v29 = vpop.f32.mrb[42].mxu1  ;;  %v2156_v7 = vadd.f32 %v2155_v19, %v5673_v37  ;;  %v2157_v50 = vpop.f32.mrb[43].mxu0  ;;  %v2589_v12 = vmax.f32 %v2313_v24, 0.0 }
 0x242   : > { %v2317_v61 = vadd.f32 %v2316_v29, %v5673_v37  ;;  %v2318_v53 = vpop.f32.mrb[43].mxu1  ;;  %3595 = vmatpush1.bf16.msra.mxu1 %v5762_v35  ;;  %v2158_v40 = vadd.f32 %v2157_v50, %v5673_v37 }
 0x243   : > { %v2319_v18 = vadd.f32 %v2318_v53, %v5673_v37  ;;  %3629 = vmatprep.subr.bf16.mxu1 %v3628_v20  ;;  %v2596_v47 = vmax.f32 %v2156_v7, 0.0 }
 0x244   : > { %v2598_v51 = vmax.f32 %v2317_v61, 0.0  ;;  %v2597_v22 = vmax.f32 %v2158_v40, 0.0 }
 0x245   : > { %v2599_v9 = vmax.f32 %v2319_v18, 0.0  ;;  %v2322_v11 = vpop.f32.mrb[44].mxu1  ;;  %v2161_v63 = vpop.f32.mrb[44].mxu0  ;;  %2845 = vmatmul.mubr.f32.vlgmr.msra.gmra.mrb[66].mxu1 %v5769_v59  ;;  %v3606_v25 = vpack.c.bf16 %v2596_v47, %v2586_v41 }
 0x246   : > { %v3638_v32 = vpack.c.bf16 %v2598_v51, %v2588_v26  ;;  %v2324_v38 = vpop.f32.mrb[45].mxu1  ;;  %v2163_v35 = vpop.f32.mrb[45].mxu0  ;;  %3631 = vmatpush1.bf16.msra.mxu1 %v5790_v57  ;;  %v3604_v31 = vpack.c.bf16 %v2597_v22, %v2587_v46  ;;  %v2323_v20 = vadd.f32 %v2322_v11, %v5682_v48  ;;  %2986 = vmatprep.mubr.f32.mxu1 %v6221_v3 }
 0x247   : > { %v3636_v33 = vpack.c.bf16 %v2599_v9, %v2589_v12  ;;  %3633 = vmatprep.subr.bf16.mxu1 %v3632_v30  ;;  %v2325_v44 = vadd.f32 %v2324_v38, %v5682_v48  ;;  %v2162_v49 = vadd.f32 %v2161_v63, %v5682_v48  ;;  %v2164_v27 = vadd.f32 %v2163_v35, %v5682_v48 }
 0x248   : > { %3605 = vmatprep.subr.bf16.mxu0 %v3604_v31  ;;  %v2608_v6 = vmax.f32 %v2323_v20, 0.0 }
 0x249   : > { %v2328_v16 = vpop.f32.mrb[46].mxu1  ;;  %v2167_v62 = vpop.f32.mrb[46].mxu0  ;;  %3607 = vmatpush1.bf16.msra.mxu0 %v3606_v25  ;;  %v2609_v8 = vmax.f32 %v2325_v44, 0.0  ;;  %v2606_v30 = vmax.f32 %v2162_v49, 0.0  ;;  %v2607_v29 = vmax.f32 %v2164_v27, 0.0 }
 0x24a   : > { %v2329_v43 = vadd.f32 %v2328_v16, %v5689_v36  ;;  %v2330_v4 = vpop.f32.mrb[47].mxu1  ;;  %3635 = vmatpush1.bf16.msra.mxu1 %v3634_v0  ;;  %v2168_v60 = vadd.f32 %v2167_v62, %v5689_v36  ;;  %v2169_v13 = vpop.f32.mrb[47].mxu0 }
 0x24b   : > { %v2331_v57 = vadd.f32 %v2330_v4, %v5689_v36  ;;  %3637 = vmatprep.subr.bf16.mxu1 %v3636_v33  ;;  %v2170_v42 = vadd.f32 %v2169_v13, %v5689_v36 }
 0x24c   : > { %v2618_v28 = vmax.f32 %v2329_v43, 0.0  ;;  %v2616_v23 = vmax.f32 %v2168_v60, 0.0 }
 0x24d   : > { %v2619_v56 = vmax.f32 %v2331_v57, 0.0  ;;  %v2334_v24 = vpop.f32.mrb[48].mxu1  ;;  %v2617_v15 = vmax.f32 %v2170_v42, 0.0 }
 0x24e   : > { %v3642_v39 = vpack.c.bf16 %v2618_v28, %v2608_v6  ;;  %v2173_v61 = vpop.f32.mrb[48].mxu0  ;;  %v2336_v53 = vpop.f32.mrb[49].mxu1  ;;  %3639 = vmatpush1.bf16.msra.mxu1 %v3638_v32  ;;  %v3610_v0 = vpack.c.bf16 %v2616_v23, %v2606_v30  ;;  %v2335_v18 = vadd.f32 %v2334_v24, %v5698_v58 }
 0x24f   : > { %v3640_v19 = vpack.c.bf16 %v2619_v56, %v2609_v8  ;;  %v2175_v7 = vpop.f32.mrb[49].mxu0  ;;  %v3608_v50 = vpack.c.bf16 %v2617_v15, %v2607_v29  ;;  %v2174_v26 = vadd.f32 %v2173_v61, %v5698_v58  ;;  %v2337_v51 = vadd.f32 %v2336_v53, %v5698_v58 }
 0x250   : > { %v2176_v41 = vadd.f32 %v2175_v7, %v5698_v58  ;;  %v2628_v22 = vmax.f32 %v2335_v18, 0.0 }
 0x251   : > { %3641 = vmatprep.subr.bf16.mxu1 %v3640_v19  ;;  %v2340_v40 = vpop.f32.mrb[50].mxu1  ;;  %3609 = vmatprep.subr.bf16.mxu0 %v3608_v50  ;;  %v2626_v25 = vmax.f32 %v2174_v26, 0.0  ;;  %v2629_v33 = vmax.f32 %v2337_v51, 0.0 }
 0x252   : > { %v2341_v47 = vadd.f32 %v2340_v40, %v5703_v54  ;;  %v2342_v9 = vpop.f32.mrb[51].mxu1  ;;  %3643 = vmatpush1.bf16.msra.mxu1 %v3642_v39  ;;  %3611 = vmatpush1.bf16.msra.mxu0 %v3610_v0  ;;  %v2627_v44 = vmax.f32 %v2176_v41, 0.0 }
 0x253   : > { %v2179_v12 = vpop.f32.mrb[50].mxu0  ;;  %v2343_v32 = vadd.f32 %v2342_v9, %v5703_v54 }
 0x254   : > { %v2180_v11 = vadd.f32 %v2179_v12, %v5703_v54  ;;  %v2181_v46 = vpop.f32.mrb[51].mxu0  ;;  %v2638_v63 = vmax.f32 %v2341_v47, 0.0 }
 0x255   : > { %v2182_v38 = vadd.f32 %v2181_v46, %v5703_v54  ;;  %v2639_v31 = vmax.f32 %v2343_v32, 0.0  ;;  %v2346_v20 = vpop.f32.mrb[52].mxu1 }
 0x256   : > { %v2636_v35 = vmax.f32 %v2180_v11, 0.0  ;;  %v3646_v16 = vpack.c.bf16 %v2638_v63, %v2628_v22  ;;  %v2348_v4 = vpop.f32.mrb[53].mxu1  ;;  %v2347_v60 = vadd.f32 %v2346_v20, %v5714_v45 }
 0x257   : > { %v2637_v49 = vmax.f32 %v2182_v38, 0.0  ;;  %v2185_v43 = vpop.f32.mrb[52].mxu0  ;;  %v3644_v62 = vpack.c.bf16 %v2639_v31, %v2629_v33  ;;  %v2349_v13 = vadd.f32 %v2348_v4, %v5714_v45 }
 0x258   : > { %v3614_v27 = vpack.c.bf16 %v2636_v35, %v2626_v25  ;;  %v2187_v57 = vpop.f32.mrb[53].mxu0  ;;  %v2186_v28 = vadd.f32 %v2185_v43, %v5714_v45  ;;  %v2648_v15 = vmax.f32 %v2347_v60, 0.0 }
 0x259   : > { %v3612_v6 = vpack.c.bf16 %v2637_v49, %v2627_v44  ;;  %v2352_v8 = vpop.f32.mrb[54].mxu1  ;;  %3645 = vmatprep.subr.bf16.mxu1 %v3644_v62  ;;  %v2188_v42 = vadd.f32 %v2187_v57, %v5714_v45  ;;  %v2649_v0 = vmax.f32 %v2349_v13, 0.0 }
 0x25a   : > { %v2353_v30 = vadd.f32 %v2352_v8, %v5721_v2  ;;  %v2354_v23 = vpop.f32.mrb[55].mxu1  ;;  %3647 = vmatpush1.bf16.msra.mxu1 %v3646_v16  ;;  %v2646_v53 = vmax.f32 %v2186_v28, 0.0 }
 0x25b   : > { %v2191_v56 = vpop.f32.mrb[54].mxu0  ;;  %3613 = vmatprep.subr.bf16.mxu0 %v3612_v6  ;;  %v2355_v29 = vadd.f32 %v2354_v23, %v5721_v2  ;;  %v2647_v26 = vmax.f32 %v2188_v42, 0.0 }
 0x25c   : > { %v2192_v39 = vadd.f32 %v2191_v56, %v5721_v2  ;;  %v2193_v24 = vpop.f32.mrb[55].mxu0  ;;  %3615 = vmatpush1.bf16.msra.mxu0 %v3614_v27  ;;  %v2658_v19 = vmax.f32 %v2353_v30, 0.0 }
 0x25d   : > { %v2194_v61 = vadd.f32 %v2193_v24, %v5721_v2  ;;  %v2659_v50 = vmax.f32 %v2355_v29, 0.0  ;;  %v2358_v18 = vpop.f32.mrb[56].mxu1 }
 0x25e   : > { %v2656_v7 = vmax.f32 %v2192_v39, 0.0  ;;  %v3650_v51 = vpack.c.bf16 %v2658_v19, %v2648_v15  ;;  %v2360_v12 = vpop.f32.mrb[57].mxu1  ;;  %v2359_v32 = vadd.f32 %v2358_v18, %v5730_v10 }
 0x25f   : > { %v2657_v40 = vmax.f32 %v2194_v61, 0.0  ;;  %v2197_v41 = vpop.f32.mrb[56].mxu0  ;;  %v3648_v9 = vpack.c.bf16 %v2659_v50, %v2649_v0  ;;  %v2361_v63 = vadd.f32 %v2360_v12, %v5730_v10 }
 0x260   : > { %v3618_v47 = vpack.c.bf16 %v2656_v7, %v2646_v53  ;;  %v2199_v11 = vpop.f32.mrb[57].mxu0  ;;  %v2198_v22 = vadd.f32 %v2197_v41, %v5730_v10  ;;  %v2668_v49 = vmax.f32 %v2359_v32, 0.0 }
 0x261   : > { %v3616_v46 = vpack.c.bf16 %v2657_v40, %v2647_v26  ;;  %v2364_v38 = vpop.f32.mrb[58].mxu1  ;;  %3649 = vmatprep.subr.bf16.mxu1 %v3648_v9  ;;  %v2200_v25 = vadd.f32 %v2199_v11, %v5730_v10  ;;  %v2669_v62 = vmax.f32 %v2361_v63, 0.0 }
 0x262   : > { %v2365_v35 = vadd.f32 %v2364_v38, %v5732_v17  ;;  %v2366_v31 = vpop.f32.mrb[59].mxu1  ;;  %3651 = vmatpush1.bf16.msra.mxu1 %v3650_v51  ;;  %v2666_v27 = vmax.f32 %v2198_v22, 0.0 }
 0x263   : > { %v2203_v33 = vpop.f32.mrb[58].mxu0  ;;  %3617 = vmatprep.subr.bf16.mxu0 %v3616_v46  ;;  %v2367_v16 = vadd.f32 %v2366_v31, %v5732_v17  ;;  %v2667_v28 = vmax.f32 %v2200_v25, 0.0 }
 0x264   : > { %v2204_v20 = vadd.f32 %v2203_v33, %v5732_v17  ;;  %v2205_v44 = vpop.f32.mrb[59].mxu0  ;;  %3619 = vmatpush1.bf16.msra.mxu0 %v3618_v47  ;;  %v2678_v43 = vmax.f32 %v2365_v35, 0.0 }
 0x265   : > { %v2206_v4 = vadd.f32 %v2205_v44, %v5732_v17  ;;  %v2679_v6 = vmax.f32 %v2367_v16, 0.0  ;;  %v2370_v60 = vpop.f32.mrb[60].mxu1 }
 0x266   : > { %v2676_v57 = vmax.f32 %v2204_v20, 0.0  ;;  %v3654_v13 = vpack.c.bf16 %v2678_v43, %v2668_v49  ;;  %v2372_v56 = vpop.f32.mrb[61].mxu1  ;;  %v2371_v29 = vadd.f32 %v2370_v60, %v5746_v1 }
 0x267   : > { %v2677_v8 = vmax.f32 %v2206_v4, 0.0  ;;  %v2209_v42 = vpop.f32.mrb[60].mxu0  ;;  %v3652_v23 = vpack.c.bf16 %v2679_v6, %v2669_v62  ;;  %v2373_v19 = vadd.f32 %v2372_v56, %v5746_v1 }
 0x268   : > { %v3622_v30 = vpack.c.bf16 %v2676_v57, %v2666_v27  ;;  %v2211_v39 = vpop.f32.mrb[61].mxu0  ;;  %v2210_v15 = vadd.f32 %v2209_v42, %v5746_v1  ;;  %v2688_v40 = vmax.f32 %v2371_v29, 0.0 }
 0x269   : > { %v3620_v24 = vpack.c.bf16 %v2677_v8, %v2667_v28  ;;  %v2376_v61 = vpop.f32.mrb[62].mxu1  ;;  %3653 = vmatprep.subr.bf16.mxu1 %v3652_v23  ;;  %v2212_v53 = vadd.f32 %v2211_v39, %v5746_v1  ;;  %v2689_v9 = vmax.f32 %v2373_v19, 0.0 }
 0x26a   : > { %v2377_v7 = vadd.f32 %v2376_v61, %v5753_v34  ;;  %v2378_v50 = vpop.f32.mrb[63].mxu1  ;;  %3655 = vmatpush1.bf16.msra.mxu1 %v3654_v13  ;;  %v2686_v47 = vmax.f32 %v2210_v15, 0.0 }
 0x26b   : > { %v2215_v0 = vpop.f32.mrb[62].mxu0  ;;  %3621 = vmatprep.subr.bf16.mxu0 %v3620_v24  ;;  %v2379_v51 = vadd.f32 %v2378_v50, %v5753_v34  ;;  %v2687_v32 = vmax.f32 %v2212_v53, 0.0 }
 0x26c   : > { %v2216_v18 = vadd.f32 %v2215_v0, %v5753_v34  ;;  %v2217_v26 = vpop.f32.mrb[63].mxu0  ;;  %3623 = vmatpush1.bf16.msra.mxu0 %v3622_v30  ;;  %v2698_v41 = vmax.f32 %v2377_v7, 0.0 }
 0x26d   : > { %v2218_v12 = vadd.f32 %v2217_v26, %v5753_v34  ;;  %v2699_v46 = vmax.f32 %v2379_v51, 0.0 }
 0x26e   : > { %v2696_v11 = vmax.f32 %v2216_v18, 0.0  ;;  %v3658_v22 = vpack.c.bf16 %v2698_v41, %v2688_v40 }
 0x26f   : > { %v2697_v63 = vmax.f32 %v2218_v12, 0.0  ;;  %v2447_v38 = vpop.f32.mrb[64].mxu0  ;;  %v3656_v33 = vpack.c.bf16 %v2699_v46, %v2689_v9 }
 0x270   : > { %v3626_v25 = vpack.c.bf16 %v2696_v11, %v2686_v47  ;;  %v2449_v35 = vpop.f32.mrb[65].mxu0  ;;  %v2448_v20 = vadd.f32 %v2447_v38, %v5638_v52 }
 0x271   : > { %v3624_v31 = vpack.c.bf16 %v2697_v63, %v2687_v32  ;;  %3657 = vmatprep.subr.bf16.mxu1 %v3656_v33  ;;  %v2450_v44 = vadd.f32 %v2449_v35, %v5638_v52 }
 0x272   : > { %3659 = vmatpush1.bf16.msra.mxu1 %v3658_v22  ;;  %v2550_v27 = vmax.f32 %v2448_v20, 0.0 }
 0x273   : > { %v2453_v16 = vpop.f32.mrb[66].mxu0  ;;  %3625 = vmatprep.subr.bf16.mxu0 %v3624_v31  ;;  %v2551_v57 = vmax.f32 %v2450_v44, 0.0 }
 0x274   : > { %v2454_v49 = vadd.f32 %v2453_v16, %v5641_v5  ;;  %v2455_v43 = vpop.f32.mrb[67].mxu0  ;;  %3627 = vmatpush1.bf16.msra.mxu0 %v3626_v25 }
 0x275   : > { %v2456_v4 = vadd.f32 %v2455_v43, %v5641_v5  ;;  %2987 = vmatmul.mubr.f32.vlgmr.msra.gmra.mrb[68].mxu1 %v5769_v59 }
 0x276   : > { %v2560_v62 = vmax.f32 %v2454_v49, 0.0 }
 0x277   : > { %v2561_v6 = vmax.f32 %v2456_v4, 0.0  ;;  %v2459_v60 = vpop.f32.mrb[68].mxu0  ;;  %2916 = vmatmul.mubr.f32.vlgmr.msra.gmra.mrb[96].mxu0 %v5769_v59 }
 0x278   : > { %v3662_v28 = vpack.c.bf16 %v2560_v62, %v2550_v27  ;;  %v2461_v52 = vpop.f32.mrb[69].mxu0  ;;  %3057 = vmatprep.mubr.f32.mxu0 %v6221_v3  ;;  %v2460_v8 = vadd.f32 %v2459_v60, %v5650_v21 }
 0x279   : > { %v3660_v13 = vpack.c.bf16 %v2561_v6, %v2551_v57  ;;  %v2462_v42 = vadd.f32 %v2461_v52, %v5650_v21 }
 0x27a   : > { %v2570_v39 = vmax.f32 %v2460_v8, 0.0 }
 0x27b   : > { %v2465_v56 = vpop.f32.mrb[70].mxu0  ;;  %3661 = vmatprep.subr.bf16.mxu0 %v3660_v13  ;;  %v2571_v29 = vmax.f32 %v2462_v42, 0.0 }
 0x27c   : > { %v2466_v5 = vadd.f32 %v2465_v56, %v5657_v55  ;;  %v2467_v30 = vpop.f32.mrb[71].mxu0  ;;  %3663 = vmatpush1.bf16.msra.mxu0 %v3662_v28 }
 0x27d   : > { %v2468_v23 = vadd.f32 %v2467_v30, %v5657_v55 }
 0x27e   : > { %v2580_v24 = vmax.f32 %v2466_v5, 0.0 }
 0x27f   : > { %v2581_v15 = vmax.f32 %v2468_v23, 0.0  ;;  %v2471_v19 = vpop.f32.mrb[72].mxu0 }
 0x280   : > { %v3666_v61 = vpack.c.bf16 %v2580_v24, %v2570_v39  ;;  %v2473_v3 = vpop.f32.mrb[73].mxu0  ;;  %v2472_v0 = vadd.f32 %v2471_v19, %v5666_v14 }
 0x281   : > { %v3664_v53 = vpack.c.bf16 %v2581_v15, %v2571_v29  ;;  %v2474_v21 = vadd.f32 %v2473_v3, %v5666_v14 }
 0x282   : > { %v2590_v26 = vmax.f32 %v2472_v0, 0.0 }
 0x283   : > { %v2477_v7 = vpop.f32.mrb[74].mxu0  ;;  %3665 = vmatprep.subr.bf16.mxu0 %v3664_v53  ;;  %v2591_v40 = vmax.f32 %v2474_v21, 0.0 }
 0x284   : > { %v2478_v50 = vadd.f32 %v2477_v7, %v5673_v37  ;;  %v2479_v18 = vpop.f32.mrb[75].mxu0  ;;  %3667 = vmatpush1.bf16.msra.mxu0 %v3666_v61 }
 0x285   : > { %v2480_v55 = vadd.f32 %v2479_v18, %v5673_v37 }
 0x286   : > { %v2600_v51 = vmax.f32 %v2478_v50, 0.0 }
 0x287   : > { %v2601_v41 = vmax.f32 %v2480_v55, 0.0  ;;  %v2483_v12 = vpop.f32.mrb[76].mxu0 }
 0x288   : > { %v3670_v47 = vpack.c.bf16 %v2600_v51, %v2590_v26  ;;  %v2485_v9 = vpop.f32.mrb[77].mxu0  ;;  %v2484_v46 = vadd.f32 %v2483_v12, %v5682_v48 }
 0x289   : > { %v3668_v11 = vpack.c.bf16 %v2601_v41, %v2591_v40  ;;  %v2486_v14 = vadd.f32 %v2485_v9, %v5682_v48 }
 0x28a   : > { %v2610_v38 = vmax.f32 %v2484_v46, 0.0 }
 0x28b   : > { %v2489_v32 = vpop.f32.mrb[78].mxu0  ;;  %3669 = vmatprep.subr.bf16.mxu0 %v3668_v11  ;;  %v2611_v33 = vmax.f32 %v2486_v14, 0.0 }
 0x28c   : > { %v2490_v22 = vadd.f32 %v2489_v32, %v5689_v36  ;;  %v2491_v63 = vpop.f32.mrb[79].mxu0  ;;  %3671 = vmatpush1.bf16.msra.mxu0 %v3670_v47 }
 0x28d   : > { %v2492_v37 = vadd.f32 %v2491_v63, %v5689_v36 }
 0x28e   : > { %v2620_v25 = vmax.f32 %v2490_v22, 0.0 }
 0x28f   : > { %v2621_v35 = vmax.f32 %v2492_v37, 0.0  ;;  %v2495_v31 = vpop.f32.mrb[80].mxu0 }
 0x290   : > { %v3674_v20 = vpack.c.bf16 %v2620_v25, %v2610_v38  ;;  %v2497_v44 = vpop.f32.mrb[81].mxu0  ;;  %v2496_v49 = vadd.f32 %v2495_v31, %v5698_v58  ;;  %v5899_v31 = vstv %s3133_s30  ;;  %s3860_s30 = smov [#allocation4]  }
 0x291   : > { %v3672_v16 = vpack.c.bf16 %v2621_v35, %v2611_v33  ;;  %v2498_v48 = vadd.f32 %v2497_v44, %v5698_v58  ;;  %v3756_v33 = vld [vmem:[%s4151_s27] sm:$0x77]  ;;  %v5902_v44 = vpop.permute.xlu0 %2706 }
 0x292   : > { %v2630_v62 = vmax.f32 %v2496_v49, 0.0  ;;  %v3157_v35 = vcombine.high %v3756_v33, %v3756_v33 }
 0x293   : > { %v2501_v43 = vpop.f32.mrb[82].mxu0  ;;  %3673 = vmatprep.subr.bf16.mxu0 %v3672_v16  ;;  %v2631_v6 = vmax.f32 %v2498_v48, 0.0 }
 0x294   : > { %v2502_v4 = vadd.f32 %v2501_v43, %v5703_v54  ;;  %v2503_v27 = vpop.f32.mrb[83].mxu0  ;;  %3675 = vmatpush1.bf16.msra.mxu0 %v3674_v20  ;;  %v3162_v20 = vrot.slane %v3756_v33, 1  ;;  %v3163_v48 = vrot.slane %v3157_v35, 1  ;;  %v5907_v43 = vstv %s3145_s28  ;;  %s3765_s28 = sshll.u32 %s3860_s30, 4  ;;  %s3766_s28 = int_to_ptr.vmem [resolvable:$false] %s3765_s28 }
 0x295   : > { %v2504_v36 = vadd.f32 %v2503_v27, %v5703_v54  ;;  %s3767_s11 = scalar_lea.vmem %s3766_s28, 640  ;;  %p3768_p0 = scmp.lt.s32.totalorder %s3256_s13, %s3766_s28 }
 0x296   : > { %v2640_v57 = vmax.f32 %v2502_v4, 0.0  ;;  %p3769_p1 = scmp.lt.s32.totalorder %s3767_s11, %s3761_s26 }
 0x297   : > { %v2641_v60 = vmax.f32 %v2504_v36, 0.0  ;;  %v2507_v28 = vpop.f32.mrb[84].mxu0 }
 0x298   : > { %v3678_v52 = vpack.c.bf16 %v2640_v57, %v2630_v62  ;;  %v2509_v13 = vpop.f32.mrb[85].mxu0  ;;  %v2508_v42 = vadd.f32 %v2507_v28, %v5714_v45  ;;  %p3770_p2 = por %p3769_p1, %p3768_p0 }
 0x299   : > { %v3676_v8 = vpack.c.bf16 %v2641_v60, %v2631_v6  ;;  %v2510_v58 = vadd.f32 %v2509_v13, %v5714_v45 }
 0x29a   : > { %v2650_v23 = vmax.f32 %v2508_v42, 0.0  ;;  %p3771_p3 = pnand %p3770_p2, %p3764_p13 }
 0x29b   : > { %v2513_v56 = vpop.f32.mrb[86].mxu0  ;;  %3677 = vmatprep.subr.bf16.mxu0 %v3676_v8  ;;  %v2651_v24 = vmax.f32 %v2510_v58, 0.0 }
 0x29c   : > { %v2514_v5 = vadd.f32 %v2513_v56, %v5721_v2  ;;  %v2515_v30 = vpop.f32.mrb[87].mxu0  ;;  %3679 = vmatpush1.bf16.msra.mxu0 %v3678_v52  ;;  %v3859_v56 = vmov 1983009808  }
 0x29d   : > { %v2516_v54 = vadd.f32 %v2515_v30, %v5721_v2 }
 0x29e   : > { %v2660_v39 = vmax.f32 %v2514_v5, 0.0  ;;  %v3077_v5 = vunpack.c.l.s4 %v3859_v56 }
 0x29f   : > { %v2661_v29 = vmax.f32 %v2516_v54, 0.0  ;;  %v2519_v15 = vpop.f32.mrb[88].mxu0  ;;  %v3757_v54 = vld [vmem:[%s4151_s27 + $0x8] sm:$0x77] }
 0x2a0   : > { %v3682_v19 = vpack.c.bf16 %v2660_v39, %v2650_v23  ;;  %v2521_v61 = vpop.f32.mrb[89].mxu0  ;;  %v2520_v53 = vadd.f32 %v2519_v15, %v5730_v10  ;;  %v3158_v23 = vcombine.high %v3757_v54, %v3757_v54 }
 0x2a1   : > { %v3680_v3 = vpack.c.bf16 %v2661_v29, %v2651_v24  ;;  %v2522_v45 = vadd.f32 %v2521_v61, %v5730_v10  ;;  %v3078_v24 = vunpack.c.0.s8 %v3077_v5  ;;  %v3164_v29 = vrot.slane %v3757_v54, 1 }
 0x2a2   : > { %v2670_v50 = vmax.f32 %v2520_v53, 0.0  ;;  %v3165_v61 = vrot.slane %v3158_v23, 1 }
 0x2a3   : > { %v2525_v0 = vpop.f32.mrb[90].mxu0  ;;  %3681 = vmatprep.subr.bf16.mxu0 %v3680_v3  ;;  %v2671_v55 = vmax.f32 %v2522_v45, 0.0 }
 0x2a4   : > { %v2526_v21 = vadd.f32 %v2525_v0, %v5732_v17  ;;  %v2527_v7 = vpop.f32.mrb[91].mxu0  ;;  %3683 = vmatpush1.bf16.msra.mxu0 %v3682_v19  ;;  %v6289_v0 = vld [vmem:[#allocation10_spill] sm:$0xff] }
 0x2a5   : > { %v2528_v2 = vadd.f32 %v2527_v7, %v5732_v17 }
 0x2a6   : > { %v2680_v18 = vmax.f32 %v2526_v21, 0.0  ;;  %v3081_v21 = vsub.s32 %v3078_v24, %v6289_v0 }
 0x2a7   : > { %v2681_v26 = vmax.f32 %v2528_v2, 0.0  ;;  %v2531_v51 = vpop.f32.mrb[92].mxu0 }
 0x2a8   : > { %v3686_v40 = vpack.c.bf16 %v2680_v18, %v2670_v50  ;;  %v2533_v41 = vpop.f32.mrb[93].mxu0  ;;  %v2532_v47 = vadd.f32 %v2531_v51, %v5746_v1 }
 0x2a9   : > { %v3684_v12 = vpack.c.bf16 %v2681_v26, %v2671_v55  ;;  %v2534_v10 = vadd.f32 %v2533_v41, %v5746_v1  ;;  %v6288_v1 = vlaneseq }
 0x2aa   : > { %v2690_v14 = vmax.f32 %v2532_v47, 0.0 }
 0x2ab   : > { %v2537_v9 = vpop.f32.mrb[94].mxu0  ;;  %3685 = vmatprep.subr.bf16.mxu0 %v3684_v12  ;;  %v2691_v22 = vmax.f32 %v2534_v10, 0.0  ;;  %v5895_v25 = vand.u32 127, %v6288_v1 }
 0x2ac   : > { %v2538_v11 = vadd.f32 %v2537_v9, %v5753_v34  ;;  %v2539_v46 = vpop.f32.mrb[95].mxu0  ;;  %3687 = vmatpush1.bf16.msra.mxu0 %v3686_v40 }
 0x2ad   : > { %v2540_v17 = vadd.f32 %v2539_v46, %v5753_v34  ;;  %v3124_v34 = vadd.s32 128, %v5895_v25  ;;  %v3135_v49 = vadd.s32 %v5899_v31, %v5895_v25  ;;  %v3125_v30 = vadd.s32 256, %v5895_v25 }
 0x2ae   : > { %v2700_v32 = vmax.f32 %v2538_v11, 0.0  ;;  %v3126_v39 = vadd.s32 384, %v5895_v25 }
 0x2af   : > { %v2701_v63 = vmax.f32 %v2540_v17, 0.0  ;;  %v3136_v27 = vadd.s32 %v5899_v31, %v3124_v34  ;;  %vm3147_vm0 = vcmp.lt.s32.totalorder %v3135_v49, %v5907_v43  ;;  %v3137_v19 = vadd.s32 %v5899_v31, %v3125_v30  ;;  %v3758_v17 = vld [vmem:[%s4151_s27 + $0x18] sm:$0x77] }
 0x2b0   : > { %v3690_v37 = vpack.c.bf16 %v2700_v32, %v2690_v14  ;;  %v3138_v45 = vadd.s32 %v5899_v31, %v3126_v39  ;;  %v3160_v14 = vcombine.high %v3758_v17, %v3758_v17  ;;  %v3127_v32 = vadd.s32 512, %v5895_v25 }
 0x2b1   : > { %v3688_v38 = vpack.c.bf16 %v2701_v63, %v2691_v22  ;;  %vm3148_vm2 = vcmp.lt.s32.totalorder %v3136_v27, %v5907_v43  ;;  %vm3149_vm3 = vcmp.lt.s32.totalorder %v3137_v19, %v5907_v43  ;;  %v3759_v22 = vld [vmem:[%s4151_s27 + $0x10] sm:$0x77]  ;;  %v3168_v1 = vrot.slane %v3758_v17, 1 }
 0x2b2   : > { %vm3150_vm4 = vcmp.lt.s32.totalorder %v3138_v45, %v5907_v43  ;;  %v3159_v63 = vcombine.high %v3759_v22, %v3759_v22  ;;  %v3166_v33 = vrot.slane %v3759_v22, 1  ;;  %v3169_v34 = vrot.slane %v3160_v14, 1 }
 0x2b3   : > { %3689 = vmatprep.subr.bf16.mxu0 %v3688_v38  ;;  %v3129_v38 = vadd.s32 768, %v5895_v25 }
 0x2b4   : > { %3691 = vmatpush1.bf16.msra.mxu0 %v3690_v37  ;;  %v3128_v37 = vadd.s32 640, %v5895_v25 }
 0x2b7   : > { %3058 = vmatmul.mubr.f32.vlgmr.msra.gmra.mrb[98].mxu0 %v5769_v59 }
 0x2f8   : > { %v2775_v16 = vpop.f32.mrb[64].mxu1 }
 0x2f9   : > { %v2776_v59 = vadd.f32 %v2775_v16, %v5902_v44  ;;  %v2777_v4 = vpop.f32.mrb[65].mxu1  ;;  %v3139_v16 = vadd.s32 %v5899_v31, %v3127_v32 }
 0x2fa   : > { %v2778_v36 = vadd.f32 %v2777_v4, %v5902_v44  ;;  %v3130_v4 = vadd.s32 896, %v5895_v25 }
 0x2fb   : > { %v3182_v62 = vsub.f32 %v2776_v59, %v3162_v20  ;;  %vm3151_vm5 = vcmp.lt.s32.totalorder %v3139_v16, %v5907_v43 }
 0x2fc   : > { %v3074_v57 = vcombine.low %v2776_v59, %v2778_v36  ;;  %v3183_v6 = vsub.f32 %v2778_v36, %v3163_v48  ;;  %v3167_v48 = vrot.slane %v3159_v63, 1  ;;  %v3142_v56 = vadd.s32 %v5899_v31, %v3130_v4 }
 0x2fd   : > { %v3192_v60 = vmul.f32 %v3182_v62, %v3182_v62  ;;  %v3140_v62 = vadd.s32 %v5899_v31, %v3128_v37 }
 0x2fe   : > { %v3193_v28 = vmul.f32 %v3183_v6, %v3183_v6  ;;  %v3082_v26 = vrot.slane %v3074_v57, %v3081_v21  ;;  %v3141_v6 = vadd.s32 %v5899_v31, %v3129_v38  ;;  %vm3154_vm8 = vcmp.lt.s32.totalorder %v3142_v56, %v5907_v43 }
 0x2ff   : > { %v3202_v52 = vsel %vm3147_vm0, %v3192_v60, 0.0  ;;  %vm3152_vm6 = vcmp.lt.s32.totalorder %v3140_v62, %v5907_v43 }
 0x300   : > { %v3213_v13 = vsel %vm3212_vm1, %v3202_v52, 0.0  ;;  %v3203_v8 = vsel %vm3148_vm2, %v3193_v28, 0.0  ;;  %vm3153_vm7 = vcmp.lt.s32.totalorder %v3141_v6, %v5907_v43 }
 0x301   : > { %v3214_v42 = vsel %vm3212_vm1, %v3203_v8, 0.0 }
 0x302   : > { %v3215_v58 = vadd.f32 %v3214_v42, %v3213_v13 }
 0x318   : > { %v2846_v15 = vpop.f32.mrb[66].mxu1 }
 0x319   : > { %v2847_v3 = vadd.f32 %v2846_v15, %v5902_v44  ;;  %v2848_v53 = vpop.f32.mrb[67].mxu1 }
 0x31a   : > { %v2849_v7 = vadd.f32 %v2848_v53, %v5902_v44 }
 0x31b   : > { %v3184_v2 = vsub.f32 %v2847_v3, %v3164_v29 }
 0x31c   : > { %v3075_v50 = vcombine.low %v2847_v3, %v2849_v7  ;;  %v3185_v18 = vsub.f32 %v2849_v7, %v3165_v61 }
 0x31d   : > { %v3194_v55 = vmul.f32 %v3184_v2, %v3184_v2 }
 0x31e   : > { %v3089_v51 = vrot.slane %v3075_v50, %v3081_v21  ;;  %v3195_v40 = vmul.f32 %v3185_v18, %v3185_v18 }
 0x31f   : > { %v3204_v41 = vsel %vm3149_vm3, %v3194_v55, 0.0  ;;  %v3131_v55 = vadd.s32 1024, %v5895_v25 }
 0x320   : > { %v3216_v12 = vsel %vm3212_vm1, %v3204_v41, 0.0  ;;  %v3090_v47 = vcombine.low %v3082_v26, %v3089_v51  ;;  %v3205_v10 = vsel %vm3150_vm4, %v3195_v40, 0.0  ;;  %v3760_v26 = vld [vmem:[%s4151_s27 + $0x20] sm:$0x77]  ;;  %v3132_v40 = vadd.s32 1152, %v5895_v25  ;;  %s3371_s27 = smul.u32 320, %s3941_s0 }
 0x321   : > { %v3217_v9 = vadd.f32 %v3216_v12, %v3215_v58  ;;  %v3218_v11 = vsel %vm3212_vm1, %v3205_v10, 0.0  ;;  %v3161_v51 = vcombine.high %v3760_v26, %v3760_v26  ;;  %v3170_v41 = vrot.slane %v3760_v26, 1 }
 0x322   : > { %3119 = vst [vmem:[%s5931_s12] sm:$0xff] %v3090_v47  ;;  %v3143_v47 = vadd.s32 %v5899_v31, %v3131_v55  ;;  %s5974_s21 = scalar_lea.hbm %s6051_s9, %s3371_s27 }
 0x323   : > { %v3219_v46 = vadd.f32 %v3218_v11, %v3217_v9  ;;  %v3171_v10 = vrot.slane %v3161_v51, 1 }
 0x324   : > { %vm3155_vm9 = vcmp.lt.s32.totalorder %v3143_v47, %v5907_v43 }
 0x348   : > { %v2988_v35 = vpop.f32.mrb[68].mxu1 }
 0x349   : > { %v2989_v49 = vadd.f32 %v2988_v35, %v5902_v44  ;;  %v2990_v59 = vpop.f32.mrb[69].mxu1 }
 0x34a   : > { %v2917_v20 = vpop.f32.mrb[96].mxu0  ;;  %v2991_v57 = vadd.f32 %v2990_v59, %v5902_v44 }
 0x34b   : > { %v2918_v27 = vadd.f32 %v2917_v20, %v5902_v44  ;;  %v2919_v36 = vpop.f32.mrb[97].mxu0  ;;  %v3188_v60 = vsub.f32 %v2989_v49, %v3168_v1 }
 0x34c   : > { %v2920_v28 = vadd.f32 %v2919_v36, %v5902_v44  ;;  %v3092_v13 = vcombine.low %v2989_v49, %v2991_v57  ;;  %v3189_v8 = vsub.f32 %v2991_v57, %v3169_v34 }
 0x34d   : > { %v3186_v52 = vsub.f32 %v2918_v27, %v3166_v33  ;;  %v3198_v30 = vmul.f32 %v3188_v60, %v3188_v60 }
 0x34e   : > { %v3091_v42 = vcombine.low %v2918_v27, %v2920_v28  ;;  %v3187_v58 = vsub.f32 %v2920_v28, %v3167_v48  ;;  %v3106_v54 = vrot.slane %v3092_v13, %v3081_v21  ;;  %v3199_v29 = vmul.f32 %v3189_v8, %v3189_v8 }
 0x34f   : > { %v3196_v5 = vmul.f32 %v3186_v52, %v3186_v52  ;;  %v3208_v53 = vsel %vm3153_vm7, %v3198_v30, 0.0 }
 0x350   : > { %v3099_v23 = vrot.slane %v3091_v42, %v3081_v21  ;;  %v3197_v39 = vmul.f32 %v3187_v58, %v3187_v58  ;;  %v3209_v7 = vsel %vm3154_vm8, %v3199_v29, 0.0  ;;  %v3224_v2 = vsel %vm3212_vm1, %v3208_v53, 0.0 }
 0x351   : > { %v3206_v24 = vsel %vm3151_vm5, %v3196_v5, 0.0  ;;  %v3226_v50 = vsel %vm3212_vm1, %v3209_v7, 0.0 }
 0x352   : > { %v3220_v15 = vsel %vm3212_vm1, %v3206_v24, 0.0  ;;  %v3207_v19 = vsel %vm3152_vm6, %v3197_v39, 0.0  ;;  %v3107_v61 = vcombine.low %v3099_v23, %v3106_v54 }
 0x353   : > { %v3221_v3 = vadd.f32 %v3220_v15, %v3219_v46  ;;  %v3222_v45 = vsel %vm3212_vm1, %v3207_v19, 0.0  ;;  %v3144_v46 = vadd.s32 %v5899_v31, %v3132_v40 }
 0x354   : > { %3120 = vst [vmem:[%s5931_s12 + $0x8] sm:$0xff] %v3107_v61 }
 0x355   : > { %v3223_v0 = vadd.f32 %v3222_v45, %v3221_v3  ;;  %vm3156_vm10 = vcmp.lt.s32.totalorder %v3144_v46, %v5907_v43 }
 0x357   : > { %v3225_v21 = vadd.f32 %v3224_v2, %v3223_v0 }
 0x359   : > { %v3227_v18 = vadd.f32 %v3226_v50, %v3225_v21 }
 0x38a   : > { %v3059_v12 = vpop.f32.mrb[98].mxu0 }
 0x38b   : > { %v3060_v9 = vadd.f32 %v3059_v12, %v5902_v44  ;;  %v3061_v11 = vpop.f32.mrb[99].mxu0 }
 0x38c   : > { %v3062_v17 = vadd.f32 %v3061_v11, %v5902_v44 }
 0x38d   : > { %v3190_v14 = vsub.f32 %v3060_v9, %v3170_v41 }
 0x38e   : > { %v3108_v32 = vcombine.low %v3060_v9, %v3062_v17  ;;  %v3191_v22 = vsub.f32 %v3062_v17, %v3171_v10 }
 0x38f   : > { %v3200_v25 = vmul.f32 %v3190_v14, %v3190_v14 }
 0x390   : > { %3365 = vst.sshfl [vmem:[%s5931_s12 + $0x10] sm:$0x33 pattern:$0x76325410] %v3108_v32  ;;  %v3201_v63 = vmul.f32 %v3191_v22, %v3191_v22 }
 0x391   : > { %v3210_v37 = vsel %vm3155_vm9, %v3200_v25, 0.0 }
 0x392   : > { %v3211_v38 = vsel %vm3156_vm10, %v3201_v63, 0.0  ;;  %v3228_v31 = vsel %vm3212_vm1, %v3210_v37, 0.0 }
 0x393   : > { %v3229_v1 = vadd.f32 %v3228_v31, %v3227_v18  ;;  %v3230_v44 = vsel %vm3212_vm1, %v3211_v38, 0.0 }
 0x395   : > { %v3231_v33 = vadd.f32 %v3230_v44, %v3229_v1 }
 0x397   : > { %3232 = vadd.xlane.f32.xlu1 %v3231_v33 }
 0x398   : > { %3774 = shalt.err (!%p3771_p3)
}
 0x399   : > { %s3775_s12 = scalar_lea.hbm %s5974_s21, 320  ;;  %s3779_s19 = scalar_lea.hbm %s6051_s9, 640 }
 0x39a   : > { %p3776_p4 = scmp.ne.s32.totalorder %s5974_s21, %s3775_s12  ;;  %p3780_p9 = scmp.lt.u32.totalorder %s5974_s21, %s6051_s9 }
 0x39b   : > { %p3781_p10 = scmp.lt.u32.totalorder %s3779_s19, %s3775_s12  ;;  %p3783_p12 = scmp.lt.u32.totalorder %s3775_s12, %s5974_s21 }
 0x39c   : > { %p3777_p7 = pnand %p3776_p4, %p3958_p5 }
 0x39d   : > { %p3782_p11 = por %p3781_p10, %p3780_p9 }
 0x39e   : > { %p3778_p8 = pneg %p3777_p7 }
 0x39f   : > { %p3784_p13 = por %p3783_p12, %p3782_p11 }
 0x3a1   : > { %p3785_p0 = pnand %p3784_p13, %p3778_p8 }
 0x3a3   : > { %3788 = shalt.err (!%p3785_p0)
}
 0x3a4   : > { %3693 = dma.vmem_to_hbm [thread:$0]  (%p3958_p5), %s3256_s13, 320, %s5974_s21, %s3236_s22  }
 0x3a5   : > { %s3363_s26 = sshll.u32 %s5920_s29, 1  ;;  %s3368_s14 = sshll.u32 %s3941_s0, 5 }
 0x3a6   : > { %s339_s11 = scalar_lea.vmem [#allocation6], %s3363_s26  ;;  %s6001_s12 = scalar_lea.hbm %s6052_s10, %s3368_s14 }
 0x3a7   : > { %s3268_s27 = sshll.u32 %s339_s11, 4  ;;  %s3241_s28 = scalar_lea.sflag [#allocation7], %s5920_s29  ;;  %s5996_s27 = int_to_ptr.vmem [resolvable:$true] %s3268_s27 }
 0x3a8   : > { %s3789_s1 = scalar_lea.vmem %s5996_s27, 32  ;;  %s3861_s13 = smov [#allocation6]  }
 0x3a9   : > { %p3790_p1 = scmp.ne.s32.totalorder %s5996_s27, %s3789_s1  ;;  %s3793_s0 = sshll.u32 %s3861_s13, 4  ;;  %s3794_s0 = int_to_ptr.vmem [resolvable:$false] %s3793_s0 }
 0x3aa   : > { %s3795_s21 = scalar_lea.vmem %s3794_s0, 64  ;;  %p3796_p4 = scmp.lt.s32.totalorder %s5996_s27, %s3794_s0 }
 0x3ab   : > { %p3791_p2 = pnand %p3790_p1, %p3958_p5  ;;  %p3797_p7 = scmp.lt.s32.totalorder %s3795_s21, %s3789_s1 }
 0x3ad   : > { %p3792_p3 = pneg %p3791_p2  ;;  %p3798_p8 = por %p3797_p7, %p3796_p4 }
 0x3af   : > { %p3799_p9 = pnand %p3798_p8, %p3792_p3 }
 0x424   : > { %v3233_v43 = vpop.xlane.xlu1 %3232 }
 0x425   : > { %3234 = vst [vmem:[%s339_s11] sm:$0x3] %v3233_v43 }
 0x426   : > { %3802 = shalt.err (!%p3799_p9)
}
 0x427   : > { %s3803_s29 = scalar_lea.hbm %s6001_s12, 32  ;;  %s3807_s11 = scalar_lea.hbm %s6052_s10, 64 }
 0x428   : > { %p3804_p10 = scmp.ne.s32.totalorder %s6001_s12, %s3803_s29  ;;  %p3808_p13 = scmp.lt.u32.totalorder %s6001_s12, %s6052_s10 }
 0x429   : > { %p3809_p0 = scmp.lt.u32.totalorder %s3807_s11, %s3803_s29  ;;  %p3811_p2 = scmp.lt.u32.totalorder %s3803_s29, %s6001_s12 }
 0x42a   : > { %p3805_p11 = pnand %p3804_p10, %p3958_p5 }
 0x42b   : > { %p3810_p1 = por %p3809_p0, %p3808_p13 }
 0x42c   : > { %p3806_p12 = pneg %p3805_p11 }
 0x42d   : > { %p3812_p3 = por %p3811_p2, %p3810_p1 }
 0x42f   : > { %p3813_p4 = pnand %p3812_p3, %p3806_p12 }
 0x431   : > { %3816 = shalt.err (!%p3813_p4)
}
 0x432   : > { %3694 = dma.vmem_to_hbm [thread:$0]  (%p3958_p5), %s5996_s27, 32, %s6001_s12, %s3241_s28  }
 0x433 PF: > { %p3704_p7 = scmp.ge.s32.totalorder %s3855_s18, 2  ;;  %s3280_s1 = sand.u32 1, %s3843_s15  }
 0x434   : > { %s3281_s30 = scalar_lea.sflag [#allocation5], %s3280_s1 }
 0x435   : > { %p3698_p8 = pnand %p3704_p7, %p3962_p6 }
 0x437   : > { %3834 = dma.done.wait (!%p3698_p8), %s3281_s30, 320  }
 0x438   : > { %3836 = vsyncadd (!%p3698_p8), %s3281_s30, 4294966976  ;;  %s3290_s13 = scalar_lea.sflag [#allocation7], %s3280_s1 }
 0x439   : > { %3838 = dma.done.wait (!%p3698_p8), %s3290_s13, 32  }
 0x43a   : > { %3840 = vsyncadd (!%p3698_p8), %s3290_s13, 4294967264  ;;  %p25_p5 = scmp.ge.s32.totalorder %s3945_s20, 4   ;;  %s6290_s15 = smov %s3847_s16 }
 0x43b   : > { %s6291_s16 = smov %s3851_s17  ;;  %s6292_s17 = smov %s3956_s23 }
 0x43c   : > { %s6293_s18 = smov %s3945_s20  ;;  %27 = sbr.rel (!%p25_p5) target bundleno = 8 (0x8), region = 104 }
 0x443   :  { %3295 = vsyncpa [#allocation5], 1 }
 0x444   :  { %3297 = vsyncpa [#allocation5 + $0x1], 1 }
 0x445   :  { %3298 = vsyncpa [#allocation7], 1 }
 0x446   :  { %3300 = vsyncpa [#allocation7 + $0x1], 1 }

</bundles_post_ra>
